<compile_context>
chip_gen: v5e
topology: v5e:2x2
jax: 0.10.0
libtpu: 0.0.40
codegen_flags: <defaults>
</compile_context>

<pallas_src>
import functools

import jax
import jax.numpy as jnp
from jax import lax
from jax.experimental import pallas as pl
from jax.experimental.pallas import tpu as pltpu


def _ode_rk4_kernel(dt_ref, x_ref, a_ref, w_ref, b_ref, out_ref, *,
                    num_steps, bt, n, d, unroll):
    """One grid point = one batch block; integrates all T time points in-kernel.

    dt_ref : SMEM (T,)          float32   dt[t] = vt[t] - vt[t-1]  (dt[0] unused)
    x_ref  : VMEM (Bt, N, D)    input     initial states for this batch block
    a_ref  : VMEM (N, N)        bfloat16  graph operator
    w_ref  : VMEM (D, D)        bfloat16  linear weight (applied as x @ W)
    b_ref  : VMEM (1, D)        float32   bias
    out_ref: VMEM (T, Bt, N, D)           trajectory, out[0] == x (odeint conv.)
    """
    a = a_ref[...]                                   # (N, N) bf16 (MXU operand)
    w = w_ref[...]                                   # (D, D) bf16 (MXU operand)

    # Hoisted broadcasts: emitted ONCE, not per unrolled RK4 stage.
    a_b = jnp.broadcast_to(a, (bt, n, n))            # batched MXU lhs
    bias_b = jnp.broadcast_to(b_ref[...], (bt * n, d))   # (Bt*N, D) f32

    def f(y):
        # y: (Bt*N, D) f32 state.  bf16 MXU operands, f32 accumulation;
        # elementwise math stays f32.
        y16 = y.astype(jnp.bfloat16).reshape(bt, n, d)
        ay = jnp.einsum('bnm,bmd->bnd', a_b, y16,
                        preferred_element_type=jnp.float32)
        # Fuse the batch into MXU rows: (Bt*N, D) @ (D, D).
        # TODO(synk): keep W stationary via pltpu.matmul_push_rhs/acc_lhs/pop
        # once measured safe (MRF pop ordering on v5e/v6e).
        h = jnp.dot(ay.reshape(bt * n, d).astype(jnp.bfloat16), w,
                    preferred_element_type=jnp.float32) + bias_b
        return jnp.tanh(h)

    y0 = x_ref[...].astype(jnp.float32).reshape(bt * n, d)
    out_ref[0] = x_ref[...].astype(out_ref.dtype)    # odeint returns x at vt[0]

    def step(t, y):
        dt = dt_ref[t]                               # f32 scalar from SMEM
        # Incremental RK4 combine (fewer simultaneously-live [Bt*N,D] temps).
        k1 = f(y)
        acc = y + (dt * (1.0 / 6.0)) * k1
        k2 = f(y + (0.5 * dt) * k1)
        acc = acc + (dt * (1.0 / 3.0)) * k2
        k3 = f(y + (0.5 * dt) * k2)
        acc = acc + (dt * (1.0 / 3.0)) * k3
        k4 = f(y + dt * k3)
        y_new = acc + (dt * (1.0 / 6.0)) * k4
        out_ref[t] = y_new.reshape(bt, n, d).astype(out_ref.dtype)
        return y_new

    lax.fori_loop(1, num_steps, step, y0, unroll=unroll)


def ode_block_forward(vt, x, A, W, b, *, batch_block=None):
    """Pallas implementation of ODEBlock.forward(vt, x) with an NDCN odefunc.

    x may be (N, D) or batched (B, N, D).  Returns the full trajectory
    (terminal=False semantics): shape (T, N, D) or (T, B, N, D)."""
    squeeze_batch = (x.ndim == 2)
    if squeeze_batch:
        x = x[None]
    B, N, D = x.shape
    T = vt.shape[0]

    if batch_block is None:
        # >=2 grid points when possible so the "parallel" batch axis can shard
        # across v7x's two TensorCores (no effect on v5e/v6e: 1 TC).
        batch_block = B // 2 if (B % 2 == 0 and B >= 2) else B
    assert B % batch_block == 0, "batch size must be divisible by batch_block"
    num_blocks = B // batch_block

    vt32 = vt.astype(jnp.float32)                    # dt math in f32 always
    dts = jnp.concatenate(
        [jnp.zeros((1,), jnp.float32), vt32[1:] - vt32[:-1]])
    a16 = A.astype(jnp.bfloat16)                     # MXU operands in bf16
    w16 = W.astype(jnp.bfloat16)
    b32 = b.astype(jnp.float32).reshape(1, D)

    # Full unroll only while operands + unrolled per-step temporaries stay well
    # inside the 64-vreg budget; at 128x128-class shapes drop to a rolled loop
    # (and check ld/st slot utilization before chasing spills).
    full_unroll = (T <= 16) and (batch_block * N * D <= 16 * 1024)

    kernel = functools.partial(_ode_rk4_kernel, num_steps=T,
                               bt=batch_block, n=N, d=D, unroll=full_unroll)

    out = pl.pallas_call(
        kernel,
        out_shape=jax.ShapeDtypeStruct((T, B, N, D), x.dtype),
        grid=(num_blocks,),                           # batch blocks; time loop in-kernel
        in_specs=[
            pl.BlockSpec(memory_space=pltpu.SMEM),                   # dts (scalars)
            pl.BlockSpec((batch_block, N, D), lambda i: (i, 0, 0)),  # x0 block
            pl.BlockSpec((N, N), lambda i: (0, 0)),                  # A  (bf16)
            pl.BlockSpec((D, D), lambda i: (0, 0)),                  # W  (bf16)
            pl.BlockSpec((1, D), lambda i: (0, 0)),                  # b
        ],
        out_specs=pl.BlockSpec((T, batch_block, N, D),
                               lambda i: (0, i, 0, 0)),
        compiler_params=pltpu.CompilerParams(
            dimension_semantics=("parallel",)),
    )(dts, x, a16, w16, b32)

    return out[:, 0] if squeeze_batch else out


# ----------------------------- references -----------------------------------

def _rk4_traj(f, y0, dts):
    def step(y, dt):
        k1 = f(y)
        k2 = f(y + 0.5 * dt * k1)
        k3 = f(y + 0.5 * dt * k2)
        k4 = f(y + dt * k3)
        y_new = y + (dt / 6.0) * (k1 + 2.0 * k2 + 2.0 * k3 + k4)
        return y_new, y_new

    _, traj = lax.scan(step, y0, dts)
    return jnp.concatenate([y0[None], traj], axis=0)


def _reference_mixed(vt, x, A, W, b):
    """Pure-JAX RK4 reference with the same bf16-operand / f32-accumulate math."""
    a16 = A.astype(jnp.bfloat16)
    w16 = W.astype(jnp.bfloat16)
    b32 = b.astype(jnp.float32)

    def f(y):
        ay = jnp.einsum('nm,bmd->bnd', a16, y.astype(jnp.bfloat16),
                        preferred_element_type=jnp.float32)
        h = jnp.einsum('bnd,de->bne', ay.astype(jnp.bfloat16), w16,
                       preferred_element_type=jnp.float32) + b32
        return jnp.tanh(h)

    dts = (vt[1:] - vt[:-1]).astype(jnp.float32)
    return _rk4_traj(f, x.astype(jnp.float32), dts).astype(x.dtype)


def _reference_f32(vt, x, A, W, b):
    """Full-f32 RK4 reference (loosened-tolerance sanity check)."""
    def f(y):
        return jnp.tanh(jnp.einsum('nm,bmd->bnd', A, y) @ W + b)

    dts = vt[1:] - vt[:-1]
    return _rk4_traj(f, x, dts)


if __name__ == "__main__":
    key = jax.random.PRNGKey(0)
    k_x, k_a, k_w = jax.random.split(key, 3)

    T, B, N, D = 8, 4, 16, 32                  # time points, batch, nodes, hidden
    x = jax.random.normal(k_x, (B, N, D), dtype=jnp.float32)

    # deterministic row-normalized adjacency (dense, synthetic graph)
    raw = jax.random.uniform(k_a, (N, N), dtype=jnp.float32)
    adj = (raw > 0.5).astype(jnp.float32) + jnp.eye(N, dtype=jnp.float32)
    A = adj / jnp.sum(adj, axis=1, keepdims=True)

    W = 0.1 * jax.random.normal(k_w, (D, D), dtype=jnp.float32)
    b = jnp.zeros((D,), dtype=jnp.float32)

    vt = jnp.linspace(0.0, 1.0, T, dtype=jnp.float32)   # integration time vector

    out = jax.block_until_ready(ode_block_forward(vt, x, A, W, b))
    assert out.shape == (T, B, N, D)

    ref_mixed = jax.block_until_ready(_reference_mixed(vt, x, A, W, b))
    ref_f32 = jax.block_until_ready(_reference_f32(vt, x, A, W, b))

    # kernel vs. reference using identical mixed precision (checks kernel logic)
    assert jnp.allclose(out, ref_mixed, rtol=2e-3, atol=2e-3), \
        "mismatch vs mixed-precision JAX reference"
    # kernel vs. pure-f32 reference (checks bf16 MXU operands don't hurt accuracy)
    assert jnp.allclose(out, ref_f32, rtol=5e-2, atol=5e-2), \
        "mismatch vs f32 JAX reference"

    # unbatched (N, D) path still supported (original module shape)
    out_single = jax.block_until_ready(ode_block_forward(vt, x[0], A, W, b))
    assert out_single.shape == (T, N, D)
    assert jnp.allclose(out_single, out[:, 0], rtol=2e-3, atol=2e-3), \
        "unbatched path disagrees with batched path"

    print("KERNEL_OK")
</pallas_src>

<mosaic_0001>
module attributes {stable_mosaic.version = 11 : i64} {
  func.func @_ode_rk4_kernel(%arg0: i32, %arg1: memref<8xf32, #tpu.memory_space<smem>>, %arg2: memref<2x16x32xf32, #tpu.memory_space<vmem>>, %arg3: memref<16x16xbf16, #tpu.memory_space<vmem>>, %arg4: memref<32x32xbf16, #tpu.memory_space<vmem>>, %arg5: memref<1x32xf32, #tpu.memory_space<vmem>>, %arg6: memref<8x2x16x32xf32, #tpu.memory_space<vmem>>) attributes {dimension_semantics = [#tpu.dimension_semantics<parallel>], iteration_bounds = array<i64: 2>, scalar_prefetch = 0 : i64, scratch_operands = 0 : i64, tpu.core_type = #tpu.core_type<tc>, window_params = [{transform_indices = @transform_0, window_bounds = array<i64: 8>}, {transform_indices = @transform_1, window_bounds = array<i64: 2, 16, 32>}, {pipeline_mode = #tpu.pipeline_mode<synchronous>, transform_indices = @transform_2, window_bounds = array<i64: 16, 16>}, {pipeline_mode = #tpu.pipeline_mode<synchronous>, transform_indices = @transform_3, window_bounds = array<i64: 32, 32>}, {pipeline_mode = #tpu.pipeline_mode<synchronous>, transform_indices = @transform_4, window_bounds = array<i64: 1, 32>}, {transform_indices = @transform_5, window_bounds = array<i64: 8, 2, 16, 32>}]} {
    %c0 = arith.constant 0 : index
    %c0_0 = arith.constant 0 : index
    %0 = vector.load %arg3[%c0, %c0_0] : memref<16x16xbf16, #tpu.memory_space<vmem>>, vector<16x16xbf16>
    %c0_1 = arith.constant 0 : index
    %c0_2 = arith.constant 0 : index
    %1 = vector.load %arg4[%c0_1, %c0_2] : memref<32x32xbf16, #tpu.memory_space<vmem>>, vector<32x32xbf16>
    %2 = vector.shape_cast %0 : vector<16x16xbf16> to vector<1x16x16xbf16>
    %3 = vector.broadcast %2 : vector<1x16x16xbf16> to vector<2x16x16xbf16>
    %c0_3 = arith.constant 0 : index
    %c0_4 = arith.constant 0 : index
    %4 = vector.load %arg5[%c0_3, %c0_4] : memref<1x32xf32, #tpu.memory_space<vmem>>, vector<1x32xf32>
    %5 = vector.shape_cast %4 : vector<1x32xf32> to vector<1x32xf32>
    %6 = vector.broadcast %5 : vector<1x32xf32> to vector<32x32xf32>
    %c0_5 = arith.constant 0 : index
    %c0_6 = arith.constant 0 : index
    %c0_7 = arith.constant 0 : index
    %7 = vector.load %arg2[%c0_5, %c0_6, %c0_7] : memref<2x16x32xf32, #tpu.memory_space<vmem>>, vector<2x16x32xf32>
    %8 = vector.shape_cast %7 : vector<2x16x32xf32> to vector<32x32xf32>
    %c0_8 = arith.constant 0 : index
    %c0_9 = arith.constant 0 : index
    %c0_10 = arith.constant 0 : index
    %9 = vector.load %arg2[%c0_8, %c0_9, %c0_10] : memref<2x16x32xf32, #tpu.memory_space<vmem>>, vector<2x16x32xf32>
    %c0_11 = arith.constant 0 : index
    %c0_12 = arith.constant 0 : index
    %c0_13 = arith.constant 0 : index
    %c0_14 = arith.constant 0 : index
    %10 = vector.load %arg6[%c0_11, %c0_12, %c0_13, %c0_14] : memref<8x2x16x32xf32, #tpu.memory_space<vmem>>, vector<1x2x16x32xf32>
    %11 = vector.shape_cast %10 : vector<1x2x16x32xf32> to vector<2x16x32xf32>
    %12 = vector.shape_cast %9 : vector<2x16x32xf32> to vector<1x2x16x32xf32>
    tpu.vector_store %arg6[%c0_11, %c0_12, %c0_13, %c0_14], %12 {strides = array<i32>} : memref<8x2x16x32xf32, #tpu.memory_space<vmem>>, vector<1x2x16x32xf32>,
    %c1_i32 = arith.constant 1 : i32
    %13 = arith.index_cast %c1_i32 : i32 to index
    %14 = memref.load %arg1[%13] : memref<8xf32, #tpu.memory_space<smem>>
    %15 = arith.truncf %8 : vector<32x32xf32> to vector<32x32xbf16>
    %16 = vector.shape_cast %15 : vector<32x32xbf16> to vector<2x16x32xbf16>
    "tpu.trace_start"() <{level = 10 : i32, message = "bnm,bmd->bnd"}> : () -> ()
    %cst = arith.constant dense<0.000000e+00> : vector<2x16x32xf32>
    %17 = tpu.matmul %3, %16, %cst {dimension_numbers = #tpu.dot_dimension_numbers<[2], [1], [1], [2], [0, 0, 0, 1, 1, 2], [0], [0]>} : vector<2x16x16xbf16>, vector<2x16x32xbf16>, vector<2x16x32xf32> -> vector<2x16x32xf32>
    "tpu.trace_stop"() : () -> ()
    %18 = vector.shape_cast %17 : vector<2x16x32xf32> to vector<32x32xf32>
    %19 = arith.truncf %18 : vector<32x32xf32> to vector<32x32xbf16>
    %cst_15 = arith.constant dense<0.000000e+00> : vector<32x32xf32>
    %20 = tpu.matmul %19, %1, %cst_15 {dimension_numbers = #tpu.dot_dimension_numbers<[1], [0], [0], [1], [0, 0, 1, 1], [], []>} : vector<32x32xbf16>, vector<32x32xbf16>, vector<32x32xf32> -> vector<32x32xf32>
    %21 = arith.addf %20, %6 : vector<32x32xf32>
    %22 = math.tanh %21 : vector<32x32xf32>
    %cst_16 = arith.constant 0.166666672 : f32
    %23 = arith.mulf %14, %cst_16 : f32
    %24 = vector.broadcast %23 : f32 to vector<32x32xf32>
    %25 = arith.mulf %24, %22 : vector<32x32xf32>
    %26 = arith.addf %8, %25 : vector<32x32xf32>
    %cst_17 = arith.constant 5.000000e-01 : f32
    %27 = arith.mulf %cst_17, %14 : f32
    %28 = vector.broadcast %27 : f32 to vector<32x32xf32>
    %29 = arith.mulf %28, %22 : vector<32x32xf32>
    %30 = arith.addf %8, %29 : vector<32x32xf32>
    %31 = arith.truncf %30 : vector<32x32xf32> to vector<32x32xbf16>
    %32 = vector.shape_cast %31 : vector<32x32xbf16> to vector<2x16x32xbf16>
    "tpu.trace_start"() <{level = 10 : i32, message = "bnm,bmd->bnd"}> : () -> ()
    %cst_18 = arith.constant dense<0.000000e+00> : vector<2x16x32xf32>
    %33 = tpu.matmul %3, %32, %cst_18 {dimension_numbers = #tpu.dot_dimension_numbers<[2], [1], [1], [2], [0, 0, 0, 1, 1, 2], [0], [0]>} : vector<2x16x16xbf16>, vector<2x16x32xbf16>, vector<2x16x32xf32> -> vector<2x16x32xf32>
    "tpu.trace_stop"() : () -> ()
    %34 = vector.shape_cast %33 : vector<2x16x32xf32> to vector<32x32xf32>
    %35 = arith.truncf %34 : vector<32x32xf32> to vector<32x32xbf16>
    %cst_19 = arith.constant dense<0.000000e+00> : vector<32x32xf32>
    %36 = tpu.matmul %35, %1, %cst_19 {dimension_numbers = #tpu.dot_dimension_numbers<[1], [0], [0], [1], [0, 0, 1, 1], [], []>} : vector<32x32xbf16>, vector<32x32xbf16>, vector<32x32xf32> -> vector<32x32xf32>
    %37 = arith.addf %36, %6 : vector<32x32xf32>
    %38 = math.tanh %37 : vector<32x32xf32>
    %cst_20 = arith.constant 0.333333343 : f32
    %39 = arith.mulf %14, %cst_20 : f32
    %40 = vector.broadcast %39 : f32 to vector<32x32xf32>
    %41 = arith.mulf %40, %38 : vector<32x32xf32>
    %42 = arith.addf %26, %41 : vector<32x32xf32>
    %cst_21 = arith.constant 5.000000e-01 : f32
    %43 = arith.mulf %cst_21, %14 : f32
    %44 = vector.broadcast %43 : f32 to vector<32x32xf32>
    %45 = arith.mulf %44, %38 : vector<32x32xf32>
    %46 = arith.addf %8, %45 : vector<32x32xf32>
    %47 = arith.truncf %46 : vector<32x32xf32> to vector<32x32xbf16>
    %48 = vector.shape_cast %47 : vector<32x32xbf16> to vector<2x16x32xbf16>
    "tpu.trace_start"() <{level = 10 : i32, message = "bnm,bmd->bnd"}> : () -> ()
    %cst_22 = arith.constant dense<0.000000e+00> : vector<2x16x32xf32>
    %49 = tpu.matmul %3, %48, %cst_22 {dimension_numbers = #tpu.dot_dimension_numbers<[2], [1], [1], [2], [0, 0, 0, 1, 1, 2], [0], [0]>} : vector<2x16x16xbf16>, vector<2x16x32xbf16>, vector<2x16x32xf32> -> vector<2x16x32xf32>
    "tpu.trace_stop"() : () -> ()
    %50 = vector.shape_cast %49 : vector<2x16x32xf32> to vector<32x32xf32>
    %51 = arith.truncf %50 : vector<32x32xf32> to vector<32x32xbf16>
    %cst_23 = arith.constant dense<0.000000e+00> : vector<32x32xf32>
    %52 = tpu.matmul %51, %1, %cst_23 {dimension_numbers = #tpu.dot_dimension_numbers<[1], [0], [0], [1], [0, 0, 1, 1], [], []>} : vector<32x32xbf16>, vector<32x32xbf16>, vector<32x32xf32> -> vector<32x32xf32>
    %53 = arith.addf %52, %6 : vector<32x32xf32>
    %54 = math.tanh %53 : vector<32x32xf32>
    %cst_24 = arith.constant 0.333333343 : f32
    %55 = arith.mulf %14, %cst_24 : f32
    %56 = vector.broadcast %55 : f32 to vector<32x32xf32>
    %57 = arith.mulf %56, %54 : vector<32x32xf32>
    %58 = arith.addf %42, %57 : vector<32x32xf32>
    %59 = vector.broadcast %14 : f32 to vector<32x32xf32>
    %60 = arith.mulf %59, %54 : vector<32x32xf32>
    %61 = arith.addf %8, %60 : vector<32x32xf32>
    %62 = arith.truncf %61 : vector<32x32xf32> to vector<32x32xbf16>
    %63 = vector.shape_cast %62 : vector<32x32xbf16> to vector<2x16x32xbf16>
    "tpu.trace_start"() <{level = 10 : i32, message = "bnm,bmd->bnd"}> : () -> ()
    %cst_25 = arith.constant dense<0.000000e+00> : vector<2x16x32xf32>
    %64 = tpu.matmul %3, %63, %cst_25 {dimension_numbers = #tpu.dot_dimension_numbers<[2], [1], [1], [2], [0, 0, 0, 1, 1, 2], [0], [0]>} : vector<2x16x16xbf16>, vector<2x16x32xbf16>, vector<2x16x32xf32> -> vector<2x16x32xf32>
    "tpu.trace_stop"() : () -> ()
    %65 = vector.shape_cast %64 : vector<2x16x32xf32> to vector<32x32xf32>
    %66 = arith.truncf %65 : vector<32x32xf32> to vector<32x32xbf16>
    %cst_26 = arith.constant dense<0.000000e+00> : vector<32x32xf32>
    %67 = tpu.matmul %66, %1, %cst_26 {dimension_numbers = #tpu.dot_dimension_numbers<[1], [0], [0], [1], [0, 0, 1, 1], [], []>} : vector<32x32xbf16>, vector<32x32xbf16>, vector<32x32xf32> -> vector<32x32xf32>
    %68 = arith.addf %67, %6 : vector<32x32xf32>
    %69 = math.tanh %68 : vector<32x32xf32>
    %cst_27 = arith.constant 0.166666672 : f32
    %70 = arith.mulf %14, %cst_27 : f32
    %71 = vector.broadcast %70 : f32 to vector<32x32xf32>
    %72 = arith.mulf %71, %69 : vector<32x32xf32>
    %73 = arith.addf %58, %72 : vector<32x32xf32>
    %74 = vector.shape_cast %73 : vector<32x32xf32> to vector<2x16x32xf32>
    %75 = arith.index_cast %c1_i32 : i32 to index
    %c0_28 = arith.constant 0 : index
    %c0_29 = arith.constant 0 : index
    %c0_30 = arith.constant 0 : index
    %76 = vector.load %arg6[%75, %c0_28, %c0_29, %c0_30] : memref<8x2x16x32xf32, #tpu.memory_space<vmem>>, vector<1x2x16x32xf32>
    %77 = vector.shape_cast %76 : vector<1x2x16x32xf32> to vector<2x16x32xf32>
    %78 = vector.shape_cast %74 : vector<2x16x32xf32> to vector<1x2x16x32xf32>
    tpu.vector_store %arg6[%75, %c0_28, %c0_29, %c0_30], %78 {strides = array<i32>} : memref<8x2x16x32xf32, #tpu.memory_space<vmem>>, vector<1x2x16x32xf32>,
    %c2_i32 = arith.constant 2 : i32
    %79 = arith.index_cast %c2_i32 : i32 to index
    %80 = memref.load %arg1[%79] : memref<8xf32, #tpu.memory_space<smem>>
    %81 = arith.truncf %73 : vector<32x32xf32> to vector<32x32xbf16>
    %82 = vector.shape_cast %81 : vector<32x32xbf16> to vector<2x16x32xbf16>
    "tpu.trace_start"() <{level = 10 : i32, message = "bnm,bmd->bnd"}> : () -> ()
    %cst_31 = arith.constant dense<0.000000e+00> : vector<2x16x32xf32>
    %83 = tpu.matmul %3, %82, %cst_31 {dimension_numbers = #tpu.dot_dimension_numbers<[2], [1], [1], [2], [0, 0, 0, 1, 1, 2], [0], [0]>} : vector<2x16x16xbf16>, vector<2x16x32xbf16>, vector<2x16x32xf32> -> vector<2x16x32xf32>
    "tpu.trace_stop"() : () -> ()
    %84 = vector.shape_cast %83 : vector<2x16x32xf32> to vector<32x32xf32>
    %85 = arith.truncf %84 : vector<32x32xf32> to vector<32x32xbf16>
    %cst_32 = arith.constant dense<0.000000e+00> : vector<32x32xf32>
    %86 = tpu.matmul %85, %1, %cst_32 {dimension_numbers = #tpu.dot_dimension_numbers<[1], [0], [0], [1], [0, 0, 1, 1], [], []>} : vector<32x32xbf16>, vector<32x32xbf16>, vector<32x32xf32> -> vector<32x32xf32>
    %87 = arith.addf %86, %6 : vector<32x32xf32>
    %88 = math.tanh %87 : vector<32x32xf32>
    %cst_33 = arith.constant 0.166666672 : f32
    %89 = arith.mulf %80, %cst_33 : f32
    %90 = vector.broadcast %89 : f32 to vector<32x32xf32>
    %91 = arith.mulf %90, %88 : vector<32x32xf32>
    %92 = arith.addf %73, %91 : vector<32x32xf32>
    %cst_34 = arith.constant 5.000000e-01 : f32
    %93 = arith.mulf %cst_34, %80 : f32
    %94 = vector.broadcast %93 : f32 to vector<32x32xf32>
    %95 = arith.mulf %94, %88 : vector<32x32xf32>
    %96 = arith.addf %73, %95 : vector<32x32xf32>
    %97 = arith.truncf %96 : vector<32x32xf32> to vector<32x32xbf16>
    %98 = vector.shape_cast %97 : vector<32x32xbf16> to vector<2x16x32xbf16>
    "tpu.trace_start"() <{level = 10 : i32, message = "bnm,bmd->bnd"}> : () -> ()
    %cst_35 = arith.constant dense<0.000000e+00> : vector<2x16x32xf32>
    %99 = tpu.matmul %3, %98, %cst_35 {dimension_numbers = #tpu.dot_dimension_numbers<[2], [1], [1], [2], [0, 0, 0, 1, 1, 2], [0], [0]>} : vector<2x16x16xbf16>, vector<2x16x32xbf16>, vector<2x16x32xf32> -> vector<2x16x32xf32>
    "tpu.trace_stop"() : () -> ()
    %100 = vector.shape_cast %99 : vector<2x16x32xf32> to vector<32x32xf32>
    %101 = arith.truncf %100 : vector<32x32xf32> to vector<32x32xbf16>
    %cst_36 = arith.constant dense<0.000000e+00> : vector<32x32xf32>
    %102 = tpu.matmul %101, %1, %cst_36 {dimension_numbers = #tpu.dot_dimension_numbers<[1], [0], [0], [1], [0, 0, 1, 1], [], []>} : vector<32x32xbf16>, vector<32x32xbf16>, vector<32x32xf32> -> vector<32x32xf32>
    %103 = arith.addf %102, %6 : vector<32x32xf32>
    %104 = math.tanh %103 : vector<32x32xf32>
    %cst_37 = arith.constant 0.333333343 : f32
    %105 = arith.mulf %80, %cst_37 : f32
    %106 = vector.broadcast %105 : f32 to vector<32x32xf32>
    %107 = arith.mulf %106, %104 : vector<32x32xf32>
    %108 = arith.addf %92, %107 : vector<32x32xf32>
    %cst_38 = arith.constant 5.000000e-01 : f32
    %109 = arith.mulf %cst_38, %80 : f32
    %110 = vector.broadcast %109 : f32 to vector<32x32xf32>
    %111 = arith.mulf %110, %104 : vector<32x32xf32>
    %112 = arith.addf %73, %111 : vector<32x32xf32>
    %113 = arith.truncf %112 : vector<32x32xf32> to vector<32x32xbf16>
    %114 = vector.shape_cast %113 : vector<32x32xbf16> to vector<2x16x32xbf16>
    "tpu.trace_start"() <{level = 10 : i32, message = "bnm,bmd->bnd"}> : () -> ()
    %cst_39 = arith.constant dense<0.000000e+00> : vector<2x16x32xf32>
    %115 = tpu.matmul %3, %114, %cst_39 {dimension_numbers = #tpu.dot_dimension_numbers<[2], [1], [1], [2], [0, 0, 0, 1, 1, 2], [0], [0]>} : vector<2x16x16xbf16>, vector<2x16x32xbf16>, vector<2x16x32xf32> -> vector<2x16x32xf32>
    "tpu.trace_stop"() : () -> ()
    %116 = vector.shape_cast %115 : vector<2x16x32xf32> to vector<32x32xf32>
    %117 = arith.truncf %116 : vector<32x32xf32> to vector<32x32xbf16>
    %cst_40 = arith.constant dense<0.000000e+00> : vector<32x32xf32>
    %118 = tpu.matmul %117, %1, %cst_40 {dimension_numbers = #tpu.dot_dimension_numbers<[1], [0], [0], [1], [0, 0, 1, 1], [], []>} : vector<32x32xbf16>, vector<32x32xbf16>, vector<32x32xf32> -> vector<32x32xf32>
    %119 = arith.addf %118, %6 : vector<32x32xf32>
    %120 = math.tanh %119 : vector<32x32xf32>
    %cst_41 = arith.constant 0.333333343 : f32
    %121 = arith.mulf %80, %cst_41 : f32
    %122 = vector.broadcast %121 : f32 to vector<32x32xf32>
    %123 = arith.mulf %122, %120 : vector<32x32xf32>
    %124 = arith.addf %108, %123 : vector<32x32xf32>
    %125 = vector.broadcast %80 : f32 to vector<32x32xf32>
    %126 = arith.mulf %125, %120 : vector<32x32xf32>
    %127 = arith.addf %73, %126 : vector<32x32xf32>
    %128 = arith.truncf %127 : vector<32x32xf32> to vector<32x32xbf16>
    %129 = vector.shape_cast %128 : vector<32x32xbf16> to vector<2x16x32xbf16>
    "tpu.trace_start"() <{level = 10 : i32, message = "bnm,bmd->bnd"}> : () -> ()
    %cst_42 = arith.constant dense<0.000000e+00> : vector<2x16x32xf32>
    %130 = tpu.matmul %3, %129, %cst_42 {dimension_numbers = #tpu.dot_dimension_numbers<[2], [1], [1], [2], [0, 0, 0, 1, 1, 2], [0], [0]>} : vector<2x16x16xbf16>, vector<2x16x32xbf16>, vector<2x16x32xf32> -> vector<2x16x32xf32>
    "tpu.trace_stop"() : () -> ()
    %131 = vector.shape_cast %130 : vector<2x16x32xf32> to vector<32x32xf32>
    %132 = arith.truncf %131 : vector<32x32xf32> to vector<32x32xbf16>
    %cst_43 = arith.constant dense<0.000000e+00> : vector<32x32xf32>
    %133 = tpu.matmul %132, %1, %cst_43 {dimension_numbers = #tpu.dot_dimension_numbers<[1], [0], [0], [1], [0, 0, 1, 1], [], []>} : vector<32x32xbf16>, vector<32x32xbf16>, vector<32x32xf32> -> vector<32x32xf32>
    %134 = arith.addf %133, %6 : vector<32x32xf32>
    %135 = math.tanh %134 : vector<32x32xf32>
    %cst_44 = arith.constant 0.166666672 : f32
    %136 = arith.mulf %80, %cst_44 : f32
    %137 = vector.broadcast %136 : f32 to vector<32x32xf32>
    %138 = arith.mulf %137, %135 : vector<32x32xf32>
    %139 = arith.addf %124, %138 : vector<32x32xf32>
    %140 = vector.shape_cast %139 : vector<32x32xf32> to vector<2x16x32xf32>
    %141 = arith.index_cast %c2_i32 : i32 to index
    %c0_45 = arith.constant 0 : index
    %c0_46 = arith.constant 0 : index
    %c0_47 = arith.constant 0 : index
    %142 = vector.load %arg6[%141, %c0_45, %c0_46, %c0_47] : memref<8x2x16x32xf32, #tpu.memory_space<vmem>>, vector<1x2x16x32xf32>
    %143 = vector.shape_cast %142 : vector<1x2x16x32xf32> to vector<2x16x32xf32>
    %144 = vector.shape_cast %140 : vector<2x16x32xf32> to vector<1x2x16x32xf32>
    tpu.vector_store %arg6[%141, %c0_45, %c0_46, %c0_47], %144 {strides = array<i32>} : memref<8x2x16x32xf32, #tpu.memory_space<vmem>>, vector<1x2x16x32xf32>,
    %c3_i32 = arith.constant 3 : i32
    %145 = arith.index_cast %c3_i32 : i32 to index
    %146 = memref.load %arg1[%145] : memref<8xf32, #tpu.memory_space<smem>>
    %147 = arith.truncf %139 : vector<32x32xf32> to vector<32x32xbf16>
    %148 = vector.shape_cast %147 : vector<32x32xbf16> to vector<2x16x32xbf16>
    "tpu.trace_start"() <{level = 10 : i32, message = "bnm,bmd->bnd"}> : () -> ()
    %cst_48 = arith.constant dense<0.000000e+00> : vector<2x16x32xf32>
    %149 = tpu.matmul %3, %148, %cst_48 {dimension_numbers = #tpu.dot_dimension_numbers<[2], [1], [1], [2], [0, 0, 0, 1, 1, 2], [0], [0]>} : vector<2x16x16xbf16>, vector<2x16x32xbf16>, vector<2x16x32xf32> -> vector<2x16x32xf32>
    "tpu.trace_stop"() : () -> ()
    %150 = vector.shape_cast %149 : vector<2x16x32xf32> to vector<32x32xf32>
    %151 = arith.truncf %150 : vector<32x32xf32> to vector<32x32xbf16>
    %cst_49 = arith.constant dense<0.000000e+00> : vector<32x32xf32>
    %152 = tpu.matmul %151, %1, %cst_49 {dimension_numbers = #tpu.dot_dimension_numbers<[1], [0], [0], [1], [0, 0, 1, 1], [], []>} : vector<32x32xbf16>, vector<32x32xbf16>, vector<32x32xf32> -> vector<32x32xf32>
    %153 = arith.addf %152, %6 : vector<32x32xf32>
    %154 = math.tanh %153 : vector<32x32xf32>
    %cst_50 = arith.constant 0.166666672 : f32
    %155 = arith.mulf %146, %cst_50 : f32
    %156 = vector.broadcast %155 : f32 to vector<32x32xf32>
    %157 = arith.mulf %156, %154 : vector<32x32xf32>
    %158 = arith.addf %139, %157 : vector<32x32xf32>
    %cst_51 = arith.constant 5.000000e-01 : f32
    %159 = arith.mulf %cst_51, %146 : f32
    %160 = vector.broadcast %159 : f32 to vector<32x32xf32>
    %161 = arith.mulf %160, %154 : vector<32x32xf32>
    %162 = arith.addf %139, %161 : vector<32x32xf32>
    %163 = arith.truncf %162 : vector<32x32xf32> to vector<32x32xbf16>
    %164 = vector.shape_cast %163 : vector<32x32xbf16> to vector<2x16x32xbf16>
    "tpu.trace_start"() <{level = 10 : i32, message = "bnm,bmd->bnd"}> : () -> ()
    %cst_52 = arith.constant dense<0.000000e+00> : vector<2x16x32xf32>
    %165 = tpu.matmul %3, %164, %cst_52 {dimension_numbers = #tpu.dot_dimension_numbers<[2], [1], [1], [2], [0, 0, 0, 1, 1, 2], [0], [0]>} : vector<2x16x16xbf16>, vector<2x16x32xbf16>, vector<2x16x32xf32> -> vector<2x16x32xf32>
    "tpu.trace_stop"() : () -> ()
    %166 = vector.shape_cast %165 : vector<2x16x32xf32> to vector<32x32xf32>
    %167 = arith.truncf %166 : vector<32x32xf32> to vector<32x32xbf16>
    %cst_53 = arith.constant dense<0.000000e+00> : vector<32x32xf32>
    %168 = tpu.matmul %167, %1, %cst_53 {dimension_numbers = #tpu.dot_dimension_numbers<[1], [0], [0], [1], [0, 0, 1, 1], [], []>} : vector<32x32xbf16>, vector<32x32xbf16>, vector<32x32xf32> -> vector<32x32xf32>
    %169 = arith.addf %168, %6 : vector<32x32xf32>
    %170 = math.tanh %169 : vector<32x32xf32>
    %cst_54 = arith.constant 0.333333343 : f32
    %171 = arith.mulf %146, %cst_54 : f32
    %172 = vector.broadcast %171 : f32 to vector<32x32xf32>
    %173 = arith.mulf %172, %170 : vector<32x32xf32>
    %174 = arith.addf %158, %173 : vector<32x32xf32>
    %cst_55 = arith.constant 5.000000e-01 : f32
    %175 = arith.mulf %cst_55, %146 : f32
    %176 = vector.broadcast %175 : f32 to vector<32x32xf32>
    %177 = arith.mulf %176, %170 : vector<32x32xf32>
    %178 = arith.addf %139, %177 : vector<32x32xf32>
    %179 = arith.truncf %178 : vector<32x32xf32> to vector<32x32xbf16>
    %180 = vector.shape_cast %179 : vector<32x32xbf16> to vector<2x16x32xbf16>
    "tpu.trace_start"() <{level = 10 : i32, message = "bnm,bmd->bnd"}> : () -> ()
    %cst_56 = arith.constant dense<0.000000e+00> : vector<2x16x32xf32>
    %181 = tpu.matmul %3, %180, %cst_56 {dimension_numbers = #tpu.dot_dimension_numbers<[2], [1], [1], [2], [0, 0, 0, 1, 1, 2], [0], [0]>} : vector<2x16x16xbf16>, vector<2x16x32xbf16>, vector<2x16x32xf32> -> vector<2x16x32xf32>
    "tpu.trace_stop"() : () -> ()
    %182 = vector.shape_cast %181 : vector<2x16x32xf32> to vector<32x32xf32>
    %183 = arith.truncf %182 : vector<32x32xf32> to vector<32x32xbf16>
    %cst_57 = arith.constant dense<0.000000e+00> : vector<32x32xf32>
    %184 = tpu.matmul %183, %1, %cst_57 {dimension_numbers = #tpu.dot_dimension_numbers<[1], [0], [0], [1], [0, 0, 1, 1], [], []>} : vector<32x32xbf16>, vector<32x32xbf16>, vector<32x32xf32> -> vector<32x32xf32>
    %185 = arith.addf %184, %6 : vector<32x32xf32>
    %186 = math.tanh %185 : vector<32x32xf32>
    %cst_58 = arith.constant 0.333333343 : f32
    %187 = arith.mulf %146, %cst_58 : f32
    %188 = vector.broadcast %187 : f32 to vector<32x32xf32>
    %189 = arith.mulf %188, %186 : vector<32x32xf32>
    %190 = arith.addf %174, %189 : vector<32x32xf32>
    %191 = vector.broadcast %146 : f32 to vector<32x32xf32>
    %192 = arith.mulf %191, %186 : vector<32x32xf32>
    %193 = arith.addf %139, %192 : vector<32x32xf32>
    %194 = arith.truncf %193 : vector<32x32xf32> to vector<32x32xbf16>
    %195 = vector.shape_cast %194 : vector<32x32xbf16> to vector<2x16x32xbf16>
    "tpu.trace_start"() <{level = 10 : i32, message = "bnm,bmd->bnd"}> : () -> ()
    %cst_59 = arith.constant dense<0.000000e+00> : vector<2x16x32xf32>
    %196 = tpu.matmul %3, %195, %cst_59 {dimension_numbers = #tpu.dot_dimension_numbers<[2], [1], [1], [2], [0, 0, 0, 1, 1, 2], [0], [0]>} : vector<2x16x16xbf16>, vector<2x16x32xbf16>, vector<2x16x32xf32> -> vector<2x16x32xf32>
    "tpu.trace_stop"() : () -> ()
    %197 = vector.shape_cast %196 : vector<2x16x32xf32> to vector<32x32xf32>
    %198 = arith.truncf %197 : vector<32x32xf32> to vector<32x32xbf16>
    %cst_60 = arith.constant dense<0.000000e+00> : vector<32x32xf32>
    %199 = tpu.matmul %198, %1, %cst_60 {dimension_numbers = #tpu.dot_dimension_numbers<[1], [0], [0], [1], [0, 0, 1, 1], [], []>} : vector<32x32xbf16>, vector<32x32xbf16>, vector<32x32xf32> -> vector<32x32xf32>
    %200 = arith.addf %199, %6 : vector<32x32xf32>
    %201 = math.tanh %200 : vector<32x32xf32>
    %cst_61 = arith.constant 0.166666672 : f32
    %202 = arith.mulf %146, %cst_61 : f32
    %203 = vector.broadcast %202 : f32 to vector<32x32xf32>
    %204 = arith.mulf %203, %201 : vector<32x32xf32>
    %205 = arith.addf %190, %204 : vector<32x32xf32>
    %206 = vector.shape_cast %205 : vector<32x32xf32> to vector<2x16x32xf32>
    %207 = arith.index_cast %c3_i32 : i32 to index
    %c0_62 = arith.constant 0 : index
    %c0_63 = arith.constant 0 : index
    %c0_64 = arith.constant 0 : index
    %208 = vector.load %arg6[%207, %c0_62, %c0_63, %c0_64] : memref<8x2x16x32xf32, #tpu.memory_space<vmem>>, vector<1x2x16x32xf32>
    %209 = vector.shape_cast %208 : vector<1x2x16x32xf32> to vector<2x16x32xf32>
    %210 = vector.shape_cast %206 : vector<2x16x32xf32> to vector<1x2x16x32xf32>
    tpu.vector_store %arg6[%207, %c0_62, %c0_63, %c0_64], %210 {strides = array<i32>} : memref<8x2x16x32xf32, #tpu.memory_space<vmem>>, vector<1x2x16x32xf32>,
    %c4_i32 = arith.constant 4 : i32
    %211 = arith.index_cast %c4_i32 : i32 to index
    %212 = memref.load %arg1[%211] : memref<8xf32, #tpu.memory_space<smem>>
    %213 = arith.truncf %205 : vector<32x32xf32> to vector<32x32xbf16>
    %214 = vector.shape_cast %213 : vector<32x32xbf16> to vector<2x16x32xbf16>
    "tpu.trace_start"() <{level = 10 : i32, message = "bnm,bmd->bnd"}> : () -> ()
    %cst_65 = arith.constant dense<0.000000e+00> : vector<2x16x32xf32>
    %215 = tpu.matmul %3, %214, %cst_65 {dimension_numbers = #tpu.dot_dimension_numbers<[2], [1], [1], [2], [0, 0, 0, 1, 1, 2], [0], [0]>} : vector<2x16x16xbf16>, vector<2x16x32xbf16>, vector<2x16x32xf32> -> vector<2x16x32xf32>
    "tpu.trace_stop"() : () -> ()
    %216 = vector.shape_cast %215 : vector<2x16x32xf32> to vector<32x32xf32>
    %217 = arith.truncf %216 : vector<32x32xf32> to vector<32x32xbf16>
    %cst_66 = arith.constant dense<0.000000e+00> : vector<32x32xf32>
    %218 = tpu.matmul %217, %1, %cst_66 {dimension_numbers = #tpu.dot_dimension_numbers<[1], [0], [0], [1], [0, 0, 1, 1], [], []>} : vector<32x32xbf16>, vector<32x32xbf16>, vector<32x32xf32> -> vector<32x32xf32>
    %219 = arith.addf %218, %6 : vector<32x32xf32>
    %220 = math.tanh %219 : vector<32x32xf32>
    %cst_67 = arith.constant 0.166666672 : f32
    %221 = arith.mulf %212, %cst_67 : f32
    %222 = vector.broadcast %221 : f32 to vector<32x32xf32>
    %223 = arith.mulf %222, %220 : vector<32x32xf32>
    %224 = arith.addf %205, %223 : vector<32x32xf32>
    %cst_68 = arith.constant 5.000000e-01 : f32
    %225 = arith.mulf %cst_68, %212 : f32
    %226 = vector.broadcast %225 : f32 to vector<32x32xf32>
    %227 = arith.mulf %226, %220 : vector<32x32xf32>
    %228 = arith.addf %205, %227 : vector<32x32xf32>
    %229 = arith.truncf %228 : vector<32x32xf32> to vector<32x32xbf16>
    %230 = vector.shape_cast %229 : vector<32x32xbf16> to vector<2x16x32xbf16>
    "tpu.trace_start"() <{level = 10 : i32, message = "bnm,bmd->bnd"}> : () -> ()
    %cst_69 = arith.constant dense<0.000000e+00> : vector<2x16x32xf32>
    %231 = tpu.matmul %3, %230, %cst_69 {dimension_numbers = #tpu.dot_dimension_numbers<[2], [1], [1], [2], [0, 0, 0, 1, 1, 2], [0], [0]>} : vector<2x16x16xbf16>, vector<2x16x32xbf16>, vector<2x16x32xf32> -> vector<2x16x32xf32>
    "tpu.trace_stop"() : () -> ()
    %232 = vector.shape_cast %231 : vector<2x16x32xf32> to vector<32x32xf32>
    %233 = arith.truncf %232 : vector<32x32xf32> to vector<32x32xbf16>
    %cst_70 = arith.constant dense<0.000000e+00> : vector<32x32xf32>
    %234 = tpu.matmul %233, %1, %cst_70 {dimension_numbers = #tpu.dot_dimension_numbers<[1], [0], [0], [1], [0, 0, 1, 1], [], []>} : vector<32x32xbf16>, vector<32x32xbf16>, vector<32x32xf32> -> vector<32x32xf32>
    %235 = arith.addf %234, %6 : vector<32x32xf32>
    %236 = math.tanh %235 : vector<32x32xf32>
    %cst_71 = arith.constant 0.333333343 : f32
    %237 = arith.mulf %212, %cst_71 : f32
    %238 = vector.broadcast %237 : f32 to vector<32x32xf32>
    %239 = arith.mulf %238, %236 : vector<32x32xf32>
    %240 = arith.addf %224, %239 : vector<32x32xf32>
    %cst_72 = arith.constant 5.000000e-01 : f32
    %241 = arith.mulf %cst_72, %212 : f32
    %242 = vector.broadcast %241 : f32 to vector<32x32xf32>
    %243 = arith.mulf %242, %236 : vector<32x32xf32>
    %244 = arith.addf %205, %243 : vector<32x32xf32>
    %245 = arith.truncf %244 : vector<32x32xf32> to vector<32x32xbf16>
    %246 = vector.shape_cast %245 : vector<32x32xbf16> to vector<2x16x32xbf16>
    "tpu.trace_start"() <{level = 10 : i32, message = "bnm,bmd->bnd"}> : () -> ()
    %cst_73 = arith.constant dense<0.000000e+00> : vector<2x16x32xf32>
    %247 = tpu.matmul %3, %246, %cst_73 {dimension_numbers = #tpu.dot_dimension_numbers<[2], [1], [1], [2], [0, 0, 0, 1, 1, 2], [0], [0]>} : vector<2x16x16xbf16>, vector<2x16x32xbf16>, vector<2x16x32xf32> -> vector<2x16x32xf32>
    "tpu.trace_stop"() : () -> ()
    %248 = vector.shape_cast %247 : vector<2x16x32xf32> to vector<32x32xf32>
    %249 = arith.truncf %248 : vector<32x32xf32> to vector<32x32xbf16>
    %cst_74 = arith.constant dense<0.000000e+00> : vector<32x32xf32>
    %250 = tpu.matmul %249, %1, %cst_74 {dimension_numbers = #tpu.dot_dimension_numbers<[1], [0], [0], [1], [0, 0, 1, 1], [], []>} : vector<32x32xbf16>, vector<32x32xbf16>, vector<32x32xf32> -> vector<32x32xf32>
    %251 = arith.addf %250, %6 : vector<32x32xf32>
    %252 = math.tanh %251 : vector<32x32xf32>
    %cst_75 = arith.constant 0.333333343 : f32
    %253 = arith.mulf %212, %cst_75 : f32
    %254 = vector.broadcast %253 : f32 to vector<32x32xf32>
    %255 = arith.mulf %254, %252 : vector<32x32xf32>
    %256 = arith.addf %240, %255 : vector<32x32xf32>
    %257 = vector.broadcast %212 : f32 to vector<32x32xf32>
    %258 = arith.mulf %257, %252 : vector<32x32xf32>
    %259 = arith.addf %205, %258 : vector<32x32xf32>
    %260 = arith.truncf %259 : vector<32x32xf32> to vector<32x32xbf16>
    %261 = vector.shape_cast %260 : vector<32x32xbf16> to vector<2x16x32xbf16>
    "tpu.trace_start"() <{level = 10 : i32, message = "bnm,bmd->bnd"}> : () -> ()
    %cst_76 = arith.constant dense<0.000000e+00> : vector<2x16x32xf32>
    %262 = tpu.matmul %3, %261, %cst_76 {dimension_numbers = #tpu.dot_dimension_numbers<[2], [1], [1], [2], [0, 0, 0, 1, 1, 2], [0], [0]>} : vector<2x16x16xbf16>, vector<2x16x32xbf16>, vector<2x16x32xf32> -> vector<2x16x32xf32>
    "tpu.trace_stop"() : () -> ()
    %263 = vector.shape_cast %262 : vector<2x16x32xf32> to vector<32x32xf32>
    %264 = arith.truncf %263 : vector<32x32xf32> to vector<32x32xbf16>
    %cst_77 = arith.constant dense<0.000000e+00> : vector<32x32xf32>
    %265 = tpu.matmul %264, %1, %cst_77 {dimension_numbers = #tpu.dot_dimension_numbers<[1], [0], [0], [1], [0, 0, 1, 1], [], []>} : vector<32x32xbf16>, vector<32x32xbf16>, vector<32x32xf32> -> vector<32x32xf32>
    %266 = arith.addf %265, %6 : vector<32x32xf32>
    %267 = math.tanh %266 : vector<32x32xf32>
    %cst_78 = arith.constant 0.166666672 : f32
    %268 = arith.mulf %212, %cst_78 : f32
    %269 = vector.broadcast %268 : f32 to vector<32x32xf32>
    %270 = arith.mulf %269, %267 : vector<32x32xf32>
    %271 = arith.addf %256, %270 : vector<32x32xf32>
    %272 = vector.shape_cast %271 : vector<32x32xf32> to vector<2x16x32xf32>
    %273 = arith.index_cast %c4_i32 : i32 to index
    %c0_79 = arith.constant 0 : index
    %c0_80 = arith.constant 0 : index
    %c0_81 = arith.constant 0 : index
    %274 = vector.load %arg6[%273, %c0_79, %c0_80, %c0_81] : memref<8x2x16x32xf32, #tpu.memory_space<vmem>>, vector<1x2x16x32xf32>
    %275 = vector.shape_cast %274 : vector<1x2x16x32xf32> to vector<2x16x32xf32>
    %276 = vector.shape_cast %272 : vector<2x16x32xf32> to vector<1x2x16x32xf32>
    tpu.vector_store %arg6[%273, %c0_79, %c0_80, %c0_81], %276 {strides = array<i32>} : memref<8x2x16x32xf32, #tpu.memory_space<vmem>>, vector<1x2x16x32xf32>,
    %c5_i32 = arith.constant 5 : i32
    %277 = arith.index_cast %c5_i32 : i32 to index
    %278 = memref.load %arg1[%277] : memref<8xf32, #tpu.memory_space<smem>>
    %279 = arith.truncf %271 : vector<32x32xf32> to vector<32x32xbf16>
    %280 = vector.shape_cast %279 : vector<32x32xbf16> to vector<2x16x32xbf16>
    "tpu.trace_start"() <{level = 10 : i32, message = "bnm,bmd->bnd"}> : () -> ()
    %cst_82 = arith.constant dense<0.000000e+00> : vector<2x16x32xf32>
    %281 = tpu.matmul %3, %280, %cst_82 {dimension_numbers = #tpu.dot_dimension_numbers<[2], [1], [1], [2], [0, 0, 0, 1, 1, 2], [0], [0]>} : vector<2x16x16xbf16>, vector<2x16x32xbf16>, vector<2x16x32xf32> -> vector<2x16x32xf32>
    "tpu.trace_stop"() : () -> ()
    %282 = vector.shape_cast %281 : vector<2x16x32xf32> to vector<32x32xf32>
    %283 = arith.truncf %282 : vector<32x32xf32> to vector<32x32xbf16>
    %cst_83 = arith.constant dense<0.000000e+00> : vector<32x32xf32>
    %284 = tpu.matmul %283, %1, %cst_83 {dimension_numbers = #tpu.dot_dimension_numbers<[1], [0], [0], [1], [0, 0, 1, 1], [], []>} : vector<32x32xbf16>, vector<32x32xbf16>, vector<32x32xf32> -> vector<32x32xf32>
    %285 = arith.addf %284, %6 : vector<32x32xf32>
    %286 = math.tanh %285 : vector<32x32xf32>
    %cst_84 = arith.constant 0.166666672 : f32
    %287 = arith.mulf %278, %cst_84 : f32
    %288 = vector.broadcast %287 : f32 to vector<32x32xf32>
    %289 = arith.mulf %288, %286 : vector<32x32xf32>
    %290 = arith.addf %271, %289 : vector<32x32xf32>
    %cst_85 = arith.constant 5.000000e-01 : f32
    %291 = arith.mulf %cst_85, %278 : f32
    %292 = vector.broadcast %291 : f32 to vector<32x32xf32>
    %293 = arith.mulf %292, %286 : vector<32x32xf32>
    %294 = arith.addf %271, %293 : vector<32x32xf32>
    %295 = arith.truncf %294 : vector<32x32xf32> to vector<32x32xbf16>
    %296 = vector.shape_cast %295 : vector<32x32xbf16> to vector<2x16x32xbf16>
    "tpu.trace_start"() <{level = 10 : i32, message = "bnm,bmd->bnd"}> : () -> ()
    %cst_86 = arith.constant dense<0.000000e+00> : vector<2x16x32xf32>
    %297 = tpu.matmul %3, %296, %cst_86 {dimension_numbers = #tpu.dot_dimension_numbers<[2], [1], [1], [2], [0, 0, 0, 1, 1, 2], [0], [0]>} : vector<2x16x16xbf16>, vector<2x16x32xbf16>, vector<2x16x32xf32> -> vector<2x16x32xf32>
    "tpu.trace_stop"() : () -> ()
    %298 = vector.shape_cast %297 : vector<2x16x32xf32> to vector<32x32xf32>
    %299 = arith.truncf %298 : vector<32x32xf32> to vector<32x32xbf16>
    %cst_87 = arith.constant dense<0.000000e+00> : vector<32x32xf32>
    %300 = tpu.matmul %299, %1, %cst_87 {dimension_numbers = #tpu.dot_dimension_numbers<[1], [0], [0], [1], [0, 0, 1, 1], [], []>} : vector<32x32xbf16>, vector<32x32xbf16>, vector<32x32xf32> -> vector<32x32xf32>
    %301 = arith.addf %300, %6 : vector<32x32xf32>
    %302 = math.tanh %301 : vector<32x32xf32>
    %cst_88 = arith.constant 0.333333343 : f32
    %303 = arith.mulf %278, %cst_88 : f32
    %304 = vector.broadcast %303 : f32 to vector<32x32xf32>
    %305 = arith.mulf %304, %302 : vector<32x32xf32>
    %306 = arith.addf %290, %305 : vector<32x32xf32>
    %cst_89 = arith.constant 5.000000e-01 : f32
    %307 = arith.mulf %cst_89, %278 : f32
    %308 = vector.broadcast %307 : f32 to vector<32x32xf32>
    %309 = arith.mulf %308, %302 : vector<32x32xf32>
    %310 = arith.addf %271, %309 : vector<32x32xf32>
    %311 = arith.truncf %310 : vector<32x32xf32> to vector<32x32xbf16>
    %312 = vector.shape_cast %311 : vector<32x32xbf16> to vector<2x16x32xbf16>
    "tpu.trace_start"() <{level = 10 : i32, message = "bnm,bmd->bnd"}> : () -> ()
    %cst_90 = arith.constant dense<0.000000e+00> : vector<2x16x32xf32>
    %313 = tpu.matmul %3, %312, %cst_90 {dimension_numbers = #tpu.dot_dimension_numbers<[2], [1], [1], [2], [0, 0, 0, 1, 1, 2], [0], [0]>} : vector<2x16x16xbf16>, vector<2x16x32xbf16>, vector<2x16x32xf32> -> vector<2x16x32xf32>
    "tpu.trace_stop"() : () -> ()
    %314 = vector.shape_cast %313 : vector<2x16x32xf32> to vector<32x32xf32>
    %315 = arith.truncf %314 : vector<32x32xf32> to vector<32x32xbf16>
    %cst_91 = arith.constant dense<0.000000e+00> : vector<32x32xf32>
    %316 = tpu.matmul %315, %1, %cst_91 {dimension_numbers = #tpu.dot_dimension_numbers<[1], [0], [0], [1], [0, 0, 1, 1], [], []>} : vector<32x32xbf16>, vector<32x32xbf16>, vector<32x32xf32> -> vector<32x32xf32>
    %317 = arith.addf %316, %6 : vector<32x32xf32>
    %318 = math.tanh %317 : vector<32x32xf32>
    %cst_92 = arith.constant 0.333333343 : f32
    %319 = arith.mulf %278, %cst_92 : f32
    %320 = vector.broadcast %319 : f32 to vector<32x32xf32>
    %321 = arith.mulf %320, %318 : vector<32x32xf32>
    %322 = arith.addf %306, %321 : vector<32x32xf32>
    %323 = vector.broadcast %278 : f32 to vector<32x32xf32>
    %324 = arith.mulf %323, %318 : vector<32x32xf32>
    %325 = arith.addf %271, %324 : vector<32x32xf32>
    %326 = arith.truncf %325 : vector<32x32xf32> to vector<32x32xbf16>
    %327 = vector.shape_cast %326 : vector<32x32xbf16> to vector<2x16x32xbf16>
    "tpu.trace_start"() <{level = 10 : i32, message = "bnm,bmd->bnd"}> : () -> ()
    %cst_93 = arith.constant dense<0.000000e+00> : vector<2x16x32xf32>
    %328 = tpu.matmul %3, %327, %cst_93 {dimension_numbers = #tpu.dot_dimension_numbers<[2], [1], [1], [2], [0, 0, 0, 1, 1, 2], [0], [0]>} : vector<2x16x16xbf16>, vector<2x16x32xbf16>, vector<2x16x32xf32> -> vector<2x16x32xf32>
    "tpu.trace_stop"() : () -> ()
    %329 = vector.shape_cast %328 : vector<2x16x32xf32> to vector<32x32xf32>
    %330 = arith.truncf %329 : vector<32x32xf32> to vector<32x32xbf16>
    %cst_94 = arith.constant dense<0.000000e+00> : vector<32x32xf32>
    %331 = tpu.matmul %330, %1, %cst_94 {dimension_numbers = #tpu.dot_dimension_numbers<[1], [0], [0], [1], [0, 0, 1, 1], [], []>} : vector<32x32xbf16>, vector<32x32xbf16>, vector<32x32xf32> -> vector<32x32xf32>
    %332 = arith.addf %331, %6 : vector<32x32xf32>
    %333 = math.tanh %332 : vector<32x32xf32>
    %cst_95 = arith.constant 0.166666672 : f32
    %334 = arith.mulf %278, %cst_95 : f32
    %335 = vector.broadcast %334 : f32 to vector<32x32xf32>
    %336 = arith.mulf %335, %333 : vector<32x32xf32>
    %337 = arith.addf %322, %336 : vector<32x32xf32>
    %338 = vector.shape_cast %337 : vector<32x32xf32> to vector<2x16x32xf32>
    %339 = arith.index_cast %c5_i32 : i32 to index
    %c0_96 = arith.constant 0 : index
    %c0_97 = arith.constant 0 : index
    %c0_98 = arith.constant 0 : index
    %340 = vector.load %arg6[%339, %c0_96, %c0_97, %c0_98] : memref<8x2x16x32xf32, #tpu.memory_space<vmem>>, vector<1x2x16x32xf32>
    %341 = vector.shape_cast %340 : vector<1x2x16x32xf32> to vector<2x16x32xf32>
    %342 = vector.shape_cast %338 : vector<2x16x32xf32> to vector<1x2x16x32xf32>
    tpu.vector_store %arg6[%339, %c0_96, %c0_97, %c0_98], %342 {strides = array<i32>} : memref<8x2x16x32xf32, #tpu.memory_space<vmem>>, vector<1x2x16x32xf32>,
    %c6_i32 = arith.constant 6 : i32
    %343 = arith.index_cast %c6_i32 : i32 to index
    %344 = memref.load %arg1[%343] : memref<8xf32, #tpu.memory_space<smem>>
    %345 = arith.truncf %337 : vector<32x32xf32> to vector<32x32xbf16>
    %346 = vector.shape_cast %345 : vector<32x32xbf16> to vector<2x16x32xbf16>
    "tpu.trace_start"() <{level = 10 : i32, message = "bnm,bmd->bnd"}> : () -> ()
    %cst_99 = arith.constant dense<0.000000e+00> : vector<2x16x32xf32>
    %347 = tpu.matmul %3, %346, %cst_99 {dimension_numbers = #tpu.dot_dimension_numbers<[2], [1], [1], [2], [0, 0, 0, 1, 1, 2], [0], [0]>} : vector<2x16x16xbf16>, vector<2x16x32xbf16>, vector<2x16x32xf32> -> vector<2x16x32xf32>
    "tpu.trace_stop"() : () -> ()
    %348 = vector.shape_cast %347 : vector<2x16x32xf32> to vector<32x32xf32>
    %349 = arith.truncf %348 : vector<32x32xf32> to vector<32x32xbf16>
    %cst_100 = arith.constant dense<0.000000e+00> : vector<32x32xf32>
    %350 = tpu.matmul %349, %1, %cst_100 {dimension_numbers = #tpu.dot_dimension_numbers<[1], [0], [0], [1], [0, 0, 1, 1], [], []>} : vector<32x32xbf16>, vector<32x32xbf16>, vector<32x32xf32> -> vector<32x32xf32>
    %351 = arith.addf %350, %6 : vector<32x32xf32>
    %352 = math.tanh %351 : vector<32x32xf32>
    %cst_101 = arith.constant 0.166666672 : f32
    %353 = arith.mulf %344, %cst_101 : f32
    %354 = vector.broadcast %353 : f32 to vector<32x32xf32>
    %355 = arith.mulf %354, %352 : vector<32x32xf32>
    %356 = arith.addf %337, %355 : vector<32x32xf32>
    %cst_102 = arith.constant 5.000000e-01 : f32
    %357 = arith.mulf %cst_102, %344 : f32
    %358 = vector.broadcast %357 : f32 to vector<32x32xf32>
    %359 = arith.mulf %358, %352 : vector<32x32xf32>
    %360 = arith.addf %337, %359 : vector<32x32xf32>
    %361 = arith.truncf %360 : vector<32x32xf32> to vector<32x32xbf16>
    %362 = vector.shape_cast %361 : vector<32x32xbf16> to vector<2x16x32xbf16>
    "tpu.trace_start"() <{level = 10 : i32, message = "bnm,bmd->bnd"}> : () -> ()
    %cst_103 = arith.constant dense<0.000000e+00> : vector<2x16x32xf32>
    %363 = tpu.matmul %3, %362, %cst_103 {dimension_numbers = #tpu.dot_dimension_numbers<[2], [1], [1], [2], [0, 0, 0, 1, 1, 2], [0], [0]>} : vector<2x16x16xbf16>, vector<2x16x32xbf16>, vector<2x16x32xf32> -> vector<2x16x32xf32>
    "tpu.trace_stop"() : () -> ()
    %364 = vector.shape_cast %363 : vector<2x16x32xf32> to vector<32x32xf32>
    %365 = arith.truncf %364 : vector<32x32xf32> to vector<32x32xbf16>
    %cst_104 = arith.constant dense<0.000000e+00> : vector<32x32xf32>
    %366 = tpu.matmul %365, %1, %cst_104 {dimension_numbers = #tpu.dot_dimension_numbers<[1], [0], [0], [1], [0, 0, 1, 1], [], []>} : vector<32x32xbf16>, vector<32x32xbf16>, vector<32x32xf32> -> vector<32x32xf32>
    %367 = arith.addf %366, %6 : vector<32x32xf32>
    %368 = math.tanh %367 : vector<32x32xf32>
    %cst_105 = arith.constant 0.333333343 : f32
    %369 = arith.mulf %344, %cst_105 : f32
    %370 = vector.broadcast %369 : f32 to vector<32x32xf32>
    %371 = arith.mulf %370, %368 : vector<32x32xf32>
    %372 = arith.addf %356, %371 : vector<32x32xf32>
    %cst_106 = arith.constant 5.000000e-01 : f32
    %373 = arith.mulf %cst_106, %344 : f32
    %374 = vector.broadcast %373 : f32 to vector<32x32xf32>
    %375 = arith.mulf %374, %368 : vector<32x32xf32>
    %376 = arith.addf %337, %375 : vector<32x32xf32>
    %377 = arith.truncf %376 : vector<32x32xf32> to vector<32x32xbf16>
    %378 = vector.shape_cast %377 : vector<32x32xbf16> to vector<2x16x32xbf16>
    "tpu.trace_start"() <{level = 10 : i32, message = "bnm,bmd->bnd"}> : () -> ()
    %cst_107 = arith.constant dense<0.000000e+00> : vector<2x16x32xf32>
    %379 = tpu.matmul %3, %378, %cst_107 {dimension_numbers = #tpu.dot_dimension_numbers<[2], [1], [1], [2], [0, 0, 0, 1, 1, 2], [0], [0]>} : vector<2x16x16xbf16>, vector<2x16x32xbf16>, vector<2x16x32xf32> -> vector<2x16x32xf32>
    "tpu.trace_stop"() : () -> ()
    %380 = vector.shape_cast %379 : vector<2x16x32xf32> to vector<32x32xf32>
    %381 = arith.truncf %380 : vector<32x32xf32> to vector<32x32xbf16>
    %cst_108 = arith.constant dense<0.000000e+00> : vector<32x32xf32>
    %382 = tpu.matmul %381, %1, %cst_108 {dimension_numbers = #tpu.dot_dimension_numbers<[1], [0], [0], [1], [0, 0, 1, 1], [], []>} : vector<32x32xbf16>, vector<32x32xbf16>, vector<32x32xf32> -> vector<32x32xf32>
    %383 = arith.addf %382, %6 : vector<32x32xf32>
    %384 = math.tanh %383 : vector<32x32xf32>
    %cst_109 = arith.constant 0.333333343 : f32
    %385 = arith.mulf %344, %cst_109 : f32
    %386 = vector.broadcast %385 : f32 to vector<32x32xf32>
    %387 = arith.mulf %386, %384 : vector<32x32xf32>
    %388 = arith.addf %372, %387 : vector<32x32xf32>
    %389 = vector.broadcast %344 : f32 to vector<32x32xf32>
    %390 = arith.mulf %389, %384 : vector<32x32xf32>
    %391 = arith.addf %337, %390 : vector<32x32xf32>
    %392 = arith.truncf %391 : vector<32x32xf32> to vector<32x32xbf16>
    %393 = vector.shape_cast %392 : vector<32x32xbf16> to vector<2x16x32xbf16>
    "tpu.trace_start"() <{level = 10 : i32, message = "bnm,bmd->bnd"}> : () -> ()
    %cst_110 = arith.constant dense<0.000000e+00> : vector<2x16x32xf32>
    %394 = tpu.matmul %3, %393, %cst_110 {dimension_numbers = #tpu.dot_dimension_numbers<[2], [1], [1], [2], [0, 0, 0, 1, 1, 2], [0], [0]>} : vector<2x16x16xbf16>, vector<2x16x32xbf16>, vector<2x16x32xf32> -> vector<2x16x32xf32>
    "tpu.trace_stop"() : () -> ()
    %395 = vector.shape_cast %394 : vector<2x16x32xf32> to vector<32x32xf32>
    %396 = arith.truncf %395 : vector<32x32xf32> to vector<32x32xbf16>
    %cst_111 = arith.constant dense<0.000000e+00> : vector<32x32xf32>
    %397 = tpu.matmul %396, %1, %cst_111 {dimension_numbers = #tpu.dot_dimension_numbers<[1], [0], [0], [1], [0, 0, 1, 1], [], []>} : vector<32x32xbf16>, vector<32x32xbf16>, vector<32x32xf32> -> vector<32x32xf32>
    %398 = arith.addf %397, %6 : vector<32x32xf32>
    %399 = math.tanh %398 : vector<32x32xf32>
    %cst_112 = arith.constant 0.166666672 : f32
    %400 = arith.mulf %344, %cst_112 : f32
    %401 = vector.broadcast %400 : f32 to vector<32x32xf32>
    %402 = arith.mulf %401, %399 : vector<32x32xf32>
    %403 = arith.addf %388, %402 : vector<32x32xf32>
    %404 = vector.shape_cast %403 : vector<32x32xf32> to vector<2x16x32xf32>
    %405 = arith.index_cast %c6_i32 : i32 to index
    %c0_113 = arith.constant 0 : index
    %c0_114 = arith.constant 0 : index
    %c0_115 = arith.constant 0 : index
    %406 = vector.load %arg6[%405, %c0_113, %c0_114, %c0_115] : memref<8x2x16x32xf32, #tpu.memory_space<vmem>>, vector<1x2x16x32xf32>
    %407 = vector.shape_cast %406 : vector<1x2x16x32xf32> to vector<2x16x32xf32>
    %408 = vector.shape_cast %404 : vector<2x16x32xf32> to vector<1x2x16x32xf32>
    tpu.vector_store %arg6[%405, %c0_113, %c0_114, %c0_115], %408 {strides = array<i32>} : memref<8x2x16x32xf32, #tpu.memory_space<vmem>>, vector<1x2x16x32xf32>,
    %c7_i32 = arith.constant 7 : i32
    %409 = arith.index_cast %c7_i32 : i32 to index
    %410 = memref.load %arg1[%409] : memref<8xf32, #tpu.memory_space<smem>>
    %411 = arith.truncf %403 : vector<32x32xf32> to vector<32x32xbf16>
    %412 = vector.shape_cast %411 : vector<32x32xbf16> to vector<2x16x32xbf16>
    "tpu.trace_start"() <{level = 10 : i32, message = "bnm,bmd->bnd"}> : () -> ()
    %cst_116 = arith.constant dense<0.000000e+00> : vector<2x16x32xf32>
    %413 = tpu.matmul %3, %412, %cst_116 {dimension_numbers = #tpu.dot_dimension_numbers<[2], [1], [1], [2], [0, 0, 0, 1, 1, 2], [0], [0]>} : vector<2x16x16xbf16>, vector<2x16x32xbf16>, vector<2x16x32xf32> -> vector<2x16x32xf32>
    "tpu.trace_stop"() : () -> ()
    %414 = vector.shape_cast %413 : vector<2x16x32xf32> to vector<32x32xf32>
    %415 = arith.truncf %414 : vector<32x32xf32> to vector<32x32xbf16>
    %cst_117 = arith.constant dense<0.000000e+00> : vector<32x32xf32>
    %416 = tpu.matmul %415, %1, %cst_117 {dimension_numbers = #tpu.dot_dimension_numbers<[1], [0], [0], [1], [0, 0, 1, 1], [], []>} : vector<32x32xbf16>, vector<32x32xbf16>, vector<32x32xf32> -> vector<32x32xf32>
    %417 = arith.addf %416, %6 : vector<32x32xf32>
    %418 = math.tanh %417 : vector<32x32xf32>
    %cst_118 = arith.constant 0.166666672 : f32
    %419 = arith.mulf %410, %cst_118 : f32
    %420 = vector.broadcast %419 : f32 to vector<32x32xf32>
    %421 = arith.mulf %420, %418 : vector<32x32xf32>
    %422 = arith.addf %403, %421 : vector<32x32xf32>
    %cst_119 = arith.constant 5.000000e-01 : f32
    %423 = arith.mulf %cst_119, %410 : f32
    %424 = vector.broadcast %423 : f32 to vector<32x32xf32>
    %425 = arith.mulf %424, %418 : vector<32x32xf32>
    %426 = arith.addf %403, %425 : vector<32x32xf32>
    %427 = arith.truncf %426 : vector<32x32xf32> to vector<32x32xbf16>
    %428 = vector.shape_cast %427 : vector<32x32xbf16> to vector<2x16x32xbf16>
    "tpu.trace_start"() <{level = 10 : i32, message = "bnm,bmd->bnd"}> : () -> ()
    %cst_120 = arith.constant dense<0.000000e+00> : vector<2x16x32xf32>
    %429 = tpu.matmul %3, %428, %cst_120 {dimension_numbers = #tpu.dot_dimension_numbers<[2], [1], [1], [2], [0, 0, 0, 1, 1, 2], [0], [0]>} : vector<2x16x16xbf16>, vector<2x16x32xbf16>, vector<2x16x32xf32> -> vector<2x16x32xf32>
    "tpu.trace_stop"() : () -> ()
    %430 = vector.shape_cast %429 : vector<2x16x32xf32> to vector<32x32xf32>
    %431 = arith.truncf %430 : vector<32x32xf32> to vector<32x32xbf16>
    %cst_121 = arith.constant dense<0.000000e+00> : vector<32x32xf32>
    %432 = tpu.matmul %431, %1, %cst_121 {dimension_numbers = #tpu.dot_dimension_numbers<[1], [0], [0], [1], [0, 0, 1, 1], [], []>} : vector<32x32xbf16>, vector<32x32xbf16>, vector<32x32xf32> -> vector<32x32xf32>
    %433 = arith.addf %432, %6 : vector<32x32xf32>
    %434 = math.tanh %433 : vector<32x32xf32>
    %cst_122 = arith.constant 0.333333343 : f32
    %435 = arith.mulf %410, %cst_122 : f32
    %436 = vector.broadcast %435 : f32 to vector<32x32xf32>
    %437 = arith.mulf %436, %434 : vector<32x32xf32>
    %438 = arith.addf %422, %437 : vector<32x32xf32>
    %cst_123 = arith.constant 5.000000e-01 : f32
    %439 = arith.mulf %cst_123, %410 : f32
    %440 = vector.broadcast %439 : f32 to vector<32x32xf32>
    %441 = arith.mulf %440, %434 : vector<32x32xf32>
    %442 = arith.addf %403, %441 : vector<32x32xf32>
    %443 = arith.truncf %442 : vector<32x32xf32> to vector<32x32xbf16>
    %444 = vector.shape_cast %443 : vector<32x32xbf16> to vector<2x16x32xbf16>
    "tpu.trace_start"() <{level = 10 : i32, message = "bnm,bmd->bnd"}> : () -> ()
    %cst_124 = arith.constant dense<0.000000e+00> : vector<2x16x32xf32>
    %445 = tpu.matmul %3, %444, %cst_124 {dimension_numbers = #tpu.dot_dimension_numbers<[2], [1], [1], [2], [0, 0, 0, 1, 1, 2], [0], [0]>} : vector<2x16x16xbf16>, vector<2x16x32xbf16>, vector<2x16x32xf32> -> vector<2x16x32xf32>
    "tpu.trace_stop"() : () -> ()
    %446 = vector.shape_cast %445 : vector<2x16x32xf32> to vector<32x32xf32>
    %447 = arith.truncf %446 : vector<32x32xf32> to vector<32x32xbf16>
    %cst_125 = arith.constant dense<0.000000e+00> : vector<32x32xf32>
    %448 = tpu.matmul %447, %1, %cst_125 {dimension_numbers = #tpu.dot_dimension_numbers<[1], [0], [0], [1], [0, 0, 1, 1], [], []>} : vector<32x32xbf16>, vector<32x32xbf16>, vector<32x32xf32> -> vector<32x32xf32>
    %449 = arith.addf %448, %6 : vector<32x32xf32>
    %450 = math.tanh %449 : vector<32x32xf32>
    %cst_126 = arith.constant 0.333333343 : f32
    %451 = arith.mulf %410, %cst_126 : f32
    %452 = vector.broadcast %451 : f32 to vector<32x32xf32>
    %453 = arith.mulf %452, %450 : vector<32x32xf32>
    %454 = arith.addf %438, %453 : vector<32x32xf32>
    %455 = vector.broadcast %410 : f32 to vector<32x32xf32>
    %456 = arith.mulf %455, %450 : vector<32x32xf32>
    %457 = arith.addf %403, %456 : vector<32x32xf32>
    %458 = arith.truncf %457 : vector<32x32xf32> to vector<32x32xbf16>
    %459 = vector.shape_cast %458 : vector<32x32xbf16> to vector<2x16x32xbf16>
    "tpu.trace_start"() <{level = 10 : i32, message = "bnm,bmd->bnd"}> : () -> ()
    %cst_127 = arith.constant dense<0.000000e+00> : vector<2x16x32xf32>
    %460 = tpu.matmul %3, %459, %cst_127 {dimension_numbers = #tpu.dot_dimension_numbers<[2], [1], [1], [2], [0, 0, 0, 1, 1, 2], [0], [0]>} : vector<2x16x16xbf16>, vector<2x16x32xbf16>, vector<2x16x32xf32> -> vector<2x16x32xf32>
    "tpu.trace_stop"() : () -> ()
    %461 = vector.shape_cast %460 : vector<2x16x32xf32> to vector<32x32xf32>
    %462 = arith.truncf %461 : vector<32x32xf32> to vector<32x32xbf16>
    %cst_128 = arith.constant dense<0.000000e+00> : vector<32x32xf32>
    %463 = tpu.matmul %462, %1, %cst_128 {dimension_numbers = #tpu.dot_dimension_numbers<[1], [0], [0], [1], [0, 0, 1, 1], [], []>} : vector<32x32xbf16>, vector<32x32xbf16>, vector<32x32xf32> -> vector<32x32xf32>
    %464 = arith.addf %463, %6 : vector<32x32xf32>
    %465 = math.tanh %464 : vector<32x32xf32>
    %cst_129 = arith.constant 0.166666672 : f32
    %466 = arith.mulf %410, %cst_129 : f32
    %467 = vector.broadcast %466 : f32 to vector<32x32xf32>
    %468 = arith.mulf %467, %465 : vector<32x32xf32>
    %469 = arith.addf %454, %468 : vector<32x32xf32>
    %470 = vector.shape_cast %469 : vector<32x32xf32> to vector<2x16x32xf32>
    %471 = arith.index_cast %c7_i32 : i32 to index
    %c0_130 = arith.constant 0 : index
    %c0_131 = arith.constant 0 : index
    %c0_132 = arith.constant 0 : index
    %472 = vector.load %arg6[%471, %c0_130, %c0_131, %c0_132] : memref<8x2x16x32xf32, #tpu.memory_space<vmem>>, vector<1x2x16x32xf32>
    %473 = vector.shape_cast %472 : vector<1x2x16x32xf32> to vector<2x16x32xf32>
    %474 = vector.shape_cast %470 : vector<2x16x32xf32> to vector<1x2x16x32xf32>
    tpu.vector_store %arg6[%471, %c0_130, %c0_131, %c0_132], %474 {strides = array<i32>} : memref<8x2x16x32xf32, #tpu.memory_space<vmem>>, vector<1x2x16x32xf32>,
    %c7_i32_133 = arith.constant 7 : i32
    return
  }
  func.func @transform_0(%arg0: i32) -> i32 {
    %c0_i32 = arith.constant 0 : i32
    %c0_i32_0 = arith.constant 0 : i32
    return %c0_i32 : i32
  }
  func.func @transform_1(%arg0: i32) -> (i32, i32, i32) {
    %c0_i32 = arith.constant 0 : i32
    %c0_i32_0 = arith.constant 0 : i32
    %c0_i32_1 = arith.constant 0 : i32
    return %arg0, %c0_i32, %c0_i32_0 : i32, i32, i32
  }
  func.func @transform_2(%arg0: i32) -> (i32, i32) {
    %c0_i32 = arith.constant 0 : i32
    %c0_i32_0 = arith.constant 0 : i32
    %c0_i32_1 = arith.constant 0 : i32
    return %c0_i32, %c0_i32_0 : i32, i32
  }
  func.func @transform_3(%arg0: i32) -> (i32, i32) {
    %c0_i32 = arith.constant 0 : i32
    %c0_i32_0 = arith.constant 0 : i32
    %c0_i32_1 = arith.constant 0 : i32
    return %c0_i32, %c0_i32_0 : i32, i32
  }
  func.func @transform_4(%arg0: i32) -> (i32, i32) {
    %c0_i32 = arith.constant 0 : i32
    %c0_i32_0 = arith.constant 0 : i32
    %c0_i32_1 = arith.constant 0 : i32
    return %c0_i32, %c0_i32_0 : i32, i32
  }
  func.func @transform_5(%arg0: i32) -> (i32, i32, i32, i32) {
    %c0_i32 = arith.constant 0 : i32
    %c0_i32_0 = arith.constant 0 : i32
    %c0_i32_1 = arith.constant 0 : i32
    %c0_i32_2 = arith.constant 0 : i32
    return %c0_i32, %arg0, %c0_i32_0, %c0_i32_1 : i32, i32, i32, i32
  }
}

</mosaic_0001>

<bundles_post_ra>
// kernel: tpu_custom_call.1
= control target key start
LH: loop header
LB: loop body
LE: loop exit
PB: predicated region body
PF: predicated region fallthrough
CT: control target
= control target key end

     0   :  { %10 = vsyncpa [#allocation5], 0  ;;  %s4920_s0 = inlined_call_operand.hbm [shape: f32[8], index: 0, kind: input, shape index: {}]   ;;  %s4921_s1 = inlined_call_operand.hbm [shape: f32[4,16,32], index: 1, kind: input, shape index: {}]   ;;  %s4922_s2 = inlined_call_operand.hbm [shape: bf16[16,16], index: 2, kind: input, shape index: {}]   ;;  %s4923_s3 = inlined_call_operand.hbm [shape: bf16[32,32], index: 3, kind: input, shape index: {}]   ;;  %s4924_s4 = inlined_call_operand.vmem [shape: f32[1,32], index: 4, kind: input, shape index: {}]   ;;  %s4925_s5 = inlined_call_operand.hbm [shape: f32[8,4,16,32], index: 5, kind: output, shape index: {}]  }
   0x1   :  { %11 = vsyncpa [#allocation3], 0 }
   0x2   :  { %13 = vsyncpa [#allocation3 + $0x1], 0 }
   0x3   :  { %14 = vsyncpa [#allocation8], 0 }
   0x4   :  { %15 = vsyncpa [#allocation4], 0 }
   0x5   :  { %17 = vsyncpa [#allocation4 + $0x1], 0  ;;  %s3777_s18 = smov 0   ;;  %s3779_s19 = smov 0  }
   0x6   :  { %s3781_s20 = smov 0   ;;  %s3783_s21 = smov 0  }
   0x7 LB: > { %s3798_s22 = sadd.s32 4294967295, %s3731_s21   ;;  %s3063_s23 = sadd.s32 4294967294, %s3731_s21   ;;  %s3731_s21 = sphi %s3783_s21, %s4936_s21   ;;  %s3727_s20 = sphi %s3781_s20, %s4935_s20   ;;  %s3723_s19 = sphi %s3779_s19, %s4934_s19   ;;  %s3719_s18 = sphi %s3777_s18, %s4933_s18  }
   0x8   : > { %p64_p0 = scmp.ne.s32.totalorder %s3723_s19, %s3719_s18  ;;  %p65_p1 = scmp.eq.s32.totalorder %s3798_s22, 0 }
   0x9   : > { %p151_p2 = scmp.eq.s32.totalorder %s3798_s22, 1  ;;  %p157_p3 = scmp.eq.s32.totalorder %s3063_s23, 1 }
   0xa   : > { %p3807_p4 = por %p65_p1, %p64_p0  ;;  %p3064_p5 = scmp.ge.s32.totalorder %s3731_s21, 1 }
   0xb   : > { %p3812_p6 = por %p157_p3, %p64_p0  ;;  %p164_p7 = scmp.lt.s32.totalorder %s3731_s21, 3 }
   0xc   : > { %s185_s28 = sshll.u32 %s4922_s2, 4  ;;  %s3733_s30 = smov [#allocation7]   ;;  %s186_s28 = int_to_ptr.hbm [resolvable:$true] %s185_s28 }
   0xd   : > { %p3820_p8 = pnand %p3064_p5, %p164_p7  ;;  %s187_s6 = sshll.u32 %s3733_s30, 4  ;;  %s188_s6 = int_to_ptr.vmem [resolvable:$true] %s187_s6 }
   0xe   : > { %s176_s10 = sshll.u32 %s4920_s0, 4  ;;  %s3734_s11 = smov 64   ;;  %s177_s10 = int_to_ptr.hbm [resolvable:$true] %s176_s10 }
   0xf   : > { %p3273_p9 = pneg %p3820_p8  ;;  %s3735_s12 = smov 4  }
  0x10   : > { %s3736_s13 = smov [#allocation2]   ;;  %s199_s16 = sshll.u32 %s4923_s3, 4  ;;  %s200_s16 = int_to_ptr.hbm [resolvable:$true] %s199_s16 }
  0x11   : > { %p3828_p10 = pnand %p3273_p9, %p65_p1  ;;  %s3737_s17 = smov [#allocation9]  }
  0x12   : > { %s201_s23 = sshll.u32 %s3737_s17, 4  ;;  %s3846_s26 = sadd.s32 1, %s3731_s21   ;;  %s202_s23 = int_to_ptr.vmem [resolvable:$true] %s201_s23 }
  0x13   : > { %3279 = dma.hbm_to_vmem [thread:$0]  (!%p3828_p10), %s186_s28, 128, %s188_s6, [#allocation8], %s3734_s11, %s3734_s11, %s3735_s12  }
  0x14   : > { %3276 = dma.hbm_to_smem (!%p3828_p10), %s177_s10, 16, %s3736_s13, [#allocation5]  }
  0x15   : > { %3282 = dma.hbm_to_vmem [thread:$0]  (!%p3828_p10), %s200_s16, 256, %s202_s23, [#allocation8], %s3734_s11, %s3734_s11, %s3735_s12  }
  0x16   : > { %s48_s27 = ssub.s32 %s3731_s21, %s3846_s26  ;;  %s51_s28 = sadd.s32 1, %s3727_s20 }
  0x17   : > { %p49_p12 = scmp.eq.s32.totalorder %s48_s27, 0  ;;  %p58_p13 = scmp.ne.s32.totalorder %s3727_s20, %s3723_s19 }
  0x18   : > { %p59_p0 = scmp.eq.s32.totalorder %s3731_s21, 0  ;;  %p3294_p3 = scmp.lt.s32.totalorder %s3731_s21, 2 }
  0x19   : > { %s3856_s30 = scalar_select %p49_p12, %s3727_s20, %s51_s28  }
  0x1a   : > { %p60_p5 = por %p59_p0, %p58_p13  ;;  %p3860_p7 = por %p151_p2, %p58_p13 }
  0x1b   : > { %s218_s7 = sand.u32 1, %s3727_s20   ;;  %s3245_s8 = sshll.u32 %s3731_s21, 5 }
  0x1c   : > { %s3069_s9 = sshll.u32 %s218_s7, 5  ;;  %s228_s12 = scalar_lea.hbm %s4921_s1, %s3245_s8 }
  0x1d   : > { %s229_s13 = sshll.u32 %s228_s12, 4  ;;  %s222_s14 = scalar_lea.vmem [#allocation6], %s3069_s9  ;;  %s230_s13 = int_to_ptr.hbm [resolvable:$true] %s229_s13 }
  0x1e   : > { %s231_s15 = sshll.u32 %s222_s14, 4  ;;  %p3871_p9 = pnand %p3294_p3, %p60_p5  ;;  %s232_s15 = int_to_ptr.vmem [resolvable:$true] %s231_s15 }
  0x1f   : > { %s219_s17 = scalar_lea.sflag [#allocation3], %s218_s7  ;;  %s3655_s23 = sshra.s32 %s230_s13, 4  ;;  %s3656_s23 = int_to_ptr.hbm [resolvable:$true] %s3655_s23 }
  0x20   : > { %s3657_s27 = scalar_lea.hbm %s3656_s23, 32  ;;  %p3659_p10 = pneg %p3871_p9 }
  0x21   : > { %p3658_p2 = scmp.ne.s32.totalorder %s3656_s23, %s3657_s27  ;;  %s3662_s9 = scalar_lea.hbm %s4921_s1, 64 }
  0x22   : > { %p3663_p0 = scmp.lt.s32.totalorder %s3656_s23, %s4921_s1  ;;  %p3664_p3 = scmp.lt.s32.totalorder %s3662_s9, %s3657_s27 }
  0x23   : > { %p3660_p12 = pnand %p3659_p10, %p3658_p2 }
  0x24   : > { %p3665_p5 = por %p3664_p3, %p3663_p0 }
  0x25   : > { %p3661_p13 = pneg %p3660_p12 }
  0x27   : > { %p3666_p11 = pnand %p3665_p5, %p3661_p13 }
  0x29   : > { %3669 = shalt.err (!%p3666_p11)
}
  0x2a   : > { %s3738_s7 = smov 128   ;;  %s3739_s12 = smov 8  }
  0x2b   : > { %3286 = dma.hbm_to_vmem [thread:$0]  (!%p3871_p9), %s230_s13, 512, %s232_s15, %s219_s17, %s3738_s7, %s3738_s7, %s3739_s12  }
  0x2c   : > { %243 = sbr.rel (%p3820_p8) target bundleno = 8508 (0x213c), region = 40 }
  0x31   : > { %3702 = dma.done.wait (%p65_p1), [#allocation5], 16  }
  0x32   : > { %3704 = vsyncadd (%p65_p1), [#allocation5], 4294967280  ;;  %s3892_s14 = sand.u32 1, %s3723_s19  }
  0x33   : > { %s3075_s23 = sshll.u32 %s3892_s14, 5  ;;  %s251_s27 = scalar_lea.sflag [#allocation3], %s3892_s14 }
  0x34   : > { %s254_s28 = scalar_lea.vmem [#allocation6], %s3075_s23 }
  0x35   : > { %3706 = dma.done.wait (%p3807_p4), %s251_s27, 512  }
  0x36   : > { %3708 = vsyncadd (%p3807_p4), %s251_s27, 4294966784 }
  0x37   : > { %3710 = dma.done.wait (%p65_p1), [#allocation8], 384  }
  0x38   : > { %3712 = vsyncadd (%p65_p1), [#allocation8], 4294966912 }
  0x39   : > { %270 = sfence }
  0x3a   : > { %s3078_s29 = sshll.u32 %s3892_s14, 8  ;;  %v3905_v0 = vld [vmem:[%s254_s28] sm:$0xff]  ;;  %v3907_v1 = vld [vmem:[%s254_s28 + $0x8] sm:$0xff]  ;;  %vm310_vm0 = vcmask 261120   ;;  %v3913_v4 = vld [vmem:[%s254_s28 + $0x10] sm:$0xff]  ;;  %vm331_vm1 = vcmask 130048  }
  0x3b   : > { %v316_v2 = vpack.c.bf16 %v3905_v0, %v3905_v0  ;;  %v317_v3 = vpack.c.bf16 %v3907_v1, %v3907_v1  ;;  %v3915_v5 = vld [vmem:[%s254_s28 + $0x18] sm:$0xff]  ;;  %s3917_s24 = scalar_lea.vmem [#allocation10], %s3078_s29  ;;  %v318_v6 = vpack.c.bf16 %v3913_v4, %v3913_v4  ;;  %v3935_v13 = vld [vmem:[#allocation7] sm:$0xff]  ;;  %v3941_v15 = vld [vmem:[#allocation9 + $0x8] sm:$0xff]  ;;  %s3958_s16 = sld [smem:[#allocation2 + $0x1]] }
  0x3c   : > { %311 = vst.msk [vmem:[%s3917_s24] sm:$0xff] %vm310_vm0, %v3905_v0  ;;  %v319_v7 = vpack.c.bf16 %v3915_v5, %v3915_v5  ;;  %490 = vmatpush.bf16.msra.mxu1 %v3941_v15  ;;  %v3945_v16 = vld [vmem:[#allocation9] sm:$0xff]  ;;  %v3956_v23 = vld [vmem:[%s4924_s4] ss:$0 sm:$0xff]  ;;  %s4103_s10 = sld [smem:[#allocation2 + $0x2]] }
  0x3d   : > { %312 = vst.msk [vmem:[%s3917_s24 + $0x8] sm:$0xff] %vm310_vm0, %v3907_v1  ;;  %v327_v8 = vunpack.c.l.b16 %v316_v2  ;;  %v328_v9 = vunpack.c.l.b16 %v317_v3  ;;  %v351_v10 = vunpack.c.l.b16 %v318_v6  ;;  %s4234_s23 = sld [smem:[#allocation2 + $0x3]] }
  0x3e   : > { %313 = vst.msk [vmem:[%s3917_s24 + $0x10] sm:$0xff] %vm310_vm0, %v3913_v4  ;;  %v352_v11 = vunpack.c.l.b16 %v319_v7 }
  0x3f   : > { %v329_v12 = vpack.c.b16 %v328_v9, %v327_v8  ;;  %314 = vst.msk [vmem:[%s3917_s24 + $0x18] sm:$0xff] %vm310_vm0, %v3915_v5 }
  0x40   : > { %v353_v14 = vpack.c.b16 %v352_v11, %v351_v10  ;;  %491 = vmatpush.bf16.msra.mxu1 %v3945_v16 }
  0x41   : > { %342 = vmatpush.bf16.msra.mxu0 %v329_v12  ;;  %s422_s17 = smul.f32 0.5, %s3958_s16 }
  0x42   : > { %362 = vmatpush.bf16.msra.mxu2 %v353_v14  ;;  %s412_s8 = smul.f32 0.16666667, %s3958_s16 }
  0x43   : > { %v3963_v29 = vstv %s422_s17  ;;  %s507_s9 = smul.f32 0.33333334, %s3958_s16 }
  0x44   : > { %3084 = vmatmul.msk.bf16.vlgmr.msra.gmra.mxu0 %vm331_vm1, %v3935_v13  ;;  %675 = vmatpush.bf16.msrb.mxu1 %v3941_v15  ;;  %v3988_v63 = vstv %s412_s8  ;;  %s791_s11 = smul.f32 0.5, %s4103_s10 }
  0x45   : > { %3085 = vmatmul.msk.bf16.vlgmr.msra.gmra.mxu2 %vm331_vm1, %v3935_v13  ;;  %v3992_v3 = vstv %s507_s9  ;;  %s781_s7 = smul.f32 0.16666667, %s4103_s10 }
  0x46   : > { %395 = vmatpush.bf16.msrb.mxu2 %v3941_v15  ;;  %s876_s12 = smul.f32 0.33333334, %s4103_s10 }
  0x47   : > { %s1160_s27 = smul.f32 0.5, %s4234_s23 }
  0x48   : > { %676 = vmatpush.bf16.msrb.mxu1 %v3945_v16  ;;  %s1150_s28 = smul.f32 0.16666667, %s4234_s23 }
  0x49   : > { %s1245_s15 = smul.f32 0.33333334, %s4234_s23 }
  0x4a   : > { %396 = vmatpush.bf16.msrb.mxu2 %v3945_v16 }
  0xc1   : > { %v344_v17 = vpop.f32.mrf.mxu0 }
  0xc8   : > { %v364_v20 = vpop.f32.mrf.mxu2 }
  0xc9   : > { %v346_v18 = vpop.f32.mrf.mxu0 }
  0xca   : > { %v369_v19 = vpack.c.bf16 %v346_v18, %v344_v17 }
  0xcc   : > { %3094 = vmatmul.msk.bf16.vlgmr.msrb.gmra.mxu2 %vm310_vm0, %v369_v19 }
  0xd0   : > { %v366_v21 = vpop.f32.mrf.mxu2 }
  0xd1   : > { %v370_v22 = vpack.c.bf16 %v366_v21, %v364_v20 }
  0xdc   : > { %3095 = vmatmul.msk.bf16.gmra.mxu2 %vm310_vm0, %v370_v22 }
 0x14f   : > { %v398_v24 = vpop.f32.mrf.mxu2 }
 0x150   : > { %v399_v25 = vadd.f32 %v3956_v23, %v398_v24 }
 0x152   : > { %3346 = vtanh.f32 %v399_v25 }
 0x157   : > { %v400_v26 = vpop.f32.mrf.mxu2 }
 0x158   : > { %v3347_v27 = vpop.eup %3346  ;;  %v401_v28 = vadd.f32 %v3956_v23, %v400_v26 }
 0x159   : > { %v424_v30 = vmul.f32 %v3347_v27, %v3963_v29  ;;  %v414_v2 = vmul.f32 %v3347_v27, %v3988_v63 }
 0x15a   : > { %3348 = vtanh.f32 %v401_v28 }
 0x15b   : > { %v428_v32 = vadd.f32 %v424_v30, %v3905_v0  ;;  %v418_v9 = vadd.f32 %v414_v2, %v3905_v0  ;;  %v608_v2 = vstv %s3958_s16  ;;  %s4380_s16 = sld [smem:[#allocation2 + $0x4]] }
 0x15d   : > { %v432_v37 = vpack.c.bf16 %v428_v32, %v428_v32 }
 0x15f   : > { %v403_v31 = vpop.f32.mrf.mxu2  ;;  %v438_v39 = vunpack.c.l.b16 %v432_v37 }
 0x160   : > { %v3349_v33 = vpop.eup %3348  ;;  %v404_v34 = vadd.f32 %v3956_v23, %v403_v31 }
 0x161   : > { %v425_v35 = vmul.f32 %v3349_v33, %v3963_v29  ;;  %v415_v14 = vmul.f32 %v3349_v33, %v3988_v63  ;;  %s1529_s17 = smul.f32 0.5, %s4380_s16 }
 0x162   : > { %3350 = vtanh.f32 %v404_v34  ;;  %s1519_s8 = smul.f32 0.16666667, %s4380_s16 }
 0x163   : > { %v429_v36 = vadd.f32 %v425_v35, %v3907_v1  ;;  %v419_v21 = vadd.f32 %v415_v14, %v3907_v1  ;;  %s1614_s9 = smul.f32 0.33333334, %s4380_s16 }
 0x165   : > { %v433_v38 = vpack.c.bf16 %v429_v36, %v429_v36 }
 0x167   : > { %v439_v40 = vunpack.c.l.b16 %v433_v38  ;;  %v405_v41 = vpop.f32.mrf.mxu2 }
 0x168   : > { %v3351_v42 = vpop.eup %3350  ;;  %v406_v43 = vadd.f32 %v3956_v23, %v405_v41 }
 0x169   : > { %v440_v44 = vpack.c.b16 %v439_v40, %v438_v39  ;;  %v426_v45 = vmul.f32 %v3351_v42, %v3963_v29  ;;  %v416_v28 = vmul.f32 %v3351_v42, %v3988_v63 }
 0x16a   : > { %3352 = vtanh.f32 %v406_v43 }
 0x16b   : > { %449 = vmatpush.bf16.msra.mxu3 %v440_v44  ;;  %v430_v46 = vadd.f32 %v426_v45, %v3913_v4  ;;  %v420_v36 = vadd.f32 %v416_v28, %v3913_v4 }
 0x16d   : > { %v434_v49 = vpack.c.bf16 %v430_v46, %v430_v46 }
 0x16e   : > { %3096 = vmatmul.msk.bf16.vlgmr.msra.gmra.mxu3 %vm331_vm1, %v3935_v13 }
 0x16f   : > { %v458_v52 = vunpack.c.l.b16 %v434_v49 }
 0x170   : > { %v3975_v47 = vpop.eup %3352 }
 0x171   : > { %v427_v48 = vmul.f32 %v3975_v47, %v3963_v29  ;;  %v417_v41 = vmul.f32 %v3975_v47, %v3988_v63 }
 0x173   : > { %v431_v50 = vadd.f32 %v427_v48, %v3915_v5  ;;  %v421_v44 = vadd.f32 %v417_v41, %v3915_v5 }
 0x175   : > { %v435_v51 = vpack.c.bf16 %v431_v50, %v431_v50 }
 0x177   : > { %v459_v53 = vunpack.c.l.b16 %v435_v51 }
 0x179   : > { %v460_v54 = vpack.c.b16 %v459_v53, %v458_v52 }
 0x17b   : > { %469 = vmatpush.bf16.msrb.mxu0 %v460_v54 }
 0x17e   : > { %3097 = vmatmul.msk.bf16.vlgmr.msrb.gmra.mxu0 %vm331_vm1, %v3935_v13 }
 0x1f1   : > { %v451_v55 = vpop.f32.mrf.mxu3 }
 0x1f9   : > { %v453_v56 = vpop.f32.mrf.mxu3 }
 0x1fa   : > { %v476_v57 = vpack.c.bf16 %v453_v56, %v451_v55 }
 0x1fb   : > { %v471_v58 = vpop.f32.mrf.mxu0 }
 0x1fc   : > { %3098 = vmatmul.msk.bf16.vlgmr.msra.gmra.mxu1 %vm310_vm0, %v476_v57 }
 0x1fd   : > { %859 = vmatpush.bf16.msra.mxu1 %v3941_v15 }
 0x201   : > { %860 = vmatpush.bf16.msra.mxu1 %v3945_v16 }
 0x203   : > { %v473_v59 = vpop.f32.mrf.mxu0 }
 0x204   : > { %v477_v60 = vpack.c.bf16 %v473_v59, %v471_v58 }
 0x20c   : > { %3099 = vmatmul.msk.bf16.gmra.mxu1 %vm310_vm0, %v477_v60 }
 0x279   : > { %v493_v61 = vpop.f32.mrf.mxu1 }
 0x27a   : > { %v494_v62 = vadd.f32 %v3956_v23, %v493_v61 }
 0x27c   : > { %3354 = vtanh.f32 %v494_v62 }
 0x281   : > { %v495_v6 = vpop.f32.mrf.mxu1 }
 0x282   : > { %v3355_v7 = vpop.eup %3354  ;;  %v496_v8 = vadd.f32 %v3956_v23, %v495_v6 }
 0x283   : > { %v509_v10 = vmul.f32 %v3355_v7, %v3992_v3  ;;  %v517_v12 = vmul.f32 %v3355_v7, %v3963_v29 }
 0x284   : > { %3356 = vtanh.f32 %v496_v8 }
 0x285   : > { %v3997_v11 = vadd.f32 %v509_v10, %v418_v9  ;;  %v521_v18 = vadd.f32 %v517_v12, %v3905_v0 }
 0x287   : > { %v525_v27 = vpack.c.bf16 %v521_v18, %v521_v18 }
 0x289   : > { %v498_v17 = vpop.f32.mrf.mxu1  ;;  %v531_v32 = vunpack.c.l.b16 %v525_v27 }
 0x28a   : > { %v3357_v19 = vpop.eup %3356  ;;  %v499_v20 = vadd.f32 %v3956_v23, %v498_v17 }
 0x28b   : > { %v510_v22 = vmul.f32 %v3357_v19, %v3992_v3  ;;  %v518_v24 = vmul.f32 %v3357_v19, %v3963_v29 }
 0x28c   : > { %3358 = vtanh.f32 %v499_v20 }
 0x28d   : > { %v4006_v25 = vadd.f32 %v510_v22, %v419_v21  ;;  %v522_v26 = vadd.f32 %v518_v24, %v3907_v1 }
 0x28f   : > { %v526_v30 = vpack.c.bf16 %v522_v26, %v522_v26 }
 0x291   : > { %v500_v31 = vpop.f32.mrf.mxu1  ;;  %v532_v33 = vunpack.c.l.b16 %v526_v30 }
 0x292   : > { %v3359_v34 = vpop.eup %3358  ;;  %v501_v35 = vadd.f32 %v3956_v23, %v500_v31 }
 0x293   : > { %v511_v37 = vmul.f32 %v3359_v34, %v3992_v3  ;;  %v519_v38 = vmul.f32 %v3359_v34, %v3963_v29  ;;  %v533_v39 = vpack.c.b16 %v532_v33, %v531_v32 }
 0x294   : > { %3360 = vtanh.f32 %v501_v35 }
 0x295   : > { %v4014_v40 = vadd.f32 %v511_v37, %v420_v36  ;;  %542 = vmatpush.bf16.msrb.mxu3 %v533_v39  ;;  %v523_v42 = vadd.f32 %v519_v38, %v3913_v4 }
 0x297   : > { %v527_v48 = vpack.c.bf16 %v523_v42, %v523_v42 }
 0x298   : > { %3100 = vmatmul.msk.bf16.vlgmr.msrb.gmra.mxu3 %vm331_vm1, %v3935_v13 }
 0x299   : > { %583 = vmatpush.bf16.msra.mxu3 %v3941_v15  ;;  %v551_v51 = vunpack.c.l.b16 %v527_v48 }
 0x29a   : > { %v3361_v43 = vpop.eup %3360 }
 0x29b   : > { %v512_v45 = vmul.f32 %v3361_v43, %v3992_v3  ;;  %v520_v46 = vmul.f32 %v3361_v43, %v3963_v29 }
 0x29d   : > { %584 = vmatpush.bf16.msra.mxu3 %v3945_v16  ;;  %v516_v49 = vadd.f32 %v512_v45, %v421_v44  ;;  %v524_v47 = vadd.f32 %v520_v46, %v3915_v5 }
 0x29f   : > { %v528_v50 = vpack.c.bf16 %v524_v47, %v524_v47 }
 0x2a1   : > { %764 = vmatpush.bf16.msrb.mxu3 %v3941_v15  ;;  %v552_v52 = vunpack.c.l.b16 %v528_v50 }
 0x2a3   : > { %v553_v53 = vpack.c.b16 %v552_v52, %v551_v51 }
 0x2a5   : > { %765 = vmatpush.bf16.msrb.mxu3 %v3945_v16  ;;  %562 = vmatpush.bf16.msra.mxu0 %v553_v53 }
 0x2a8   : > { %3101 = vmatmul.msk.bf16.vlgmr.msra.gmra.mxu0 %vm331_vm1, %v3935_v13 }
 0x31b   : > { %v544_v54 = vpop.f32.mrf.mxu3 }
 0x323   : > { %v546_v55 = vpop.f32.mrf.mxu3 }
 0x324   : > { %v569_v29 = vpack.c.bf16 %v546_v55, %v544_v54 }
 0x325   : > { %v564_v56 = vpop.f32.mrf.mxu0 }
 0x326   : > { %3102 = vmatmul.msk.bf16.vlgmr.msra.gmra.mxu3 %vm310_vm0, %v569_v29 }
 0x327   : > { %952 = vmatpush.bf16.msra.mxu3 %v3941_v15 }
 0x32b   : > { %953 = vmatpush.bf16.msra.mxu3 %v3945_v16 }
 0x32d   : > { %v566_v57 = vpop.f32.mrf.mxu0 }
 0x32e   : > { %v570_v58 = vpack.c.bf16 %v566_v57, %v564_v56 }
 0x336   : > { %3103 = vmatmul.msk.bf16.gmra.mxu3 %vm310_vm0, %v570_v58 }
 0x3a9   : > { %v586_v59 = vpop.f32.mrf.mxu3 }
 0x3aa   : > { %v587_v60 = vadd.f32 %v3956_v23, %v586_v59 }
 0x3ac   : > { %3362 = vtanh.f32 %v587_v60 }
 0x3b1   : > { %v588_v61 = vpop.f32.mrf.mxu3 }
 0x3b2   : > { %v3363_v62 = vpop.eup %3362  ;;  %v589_v6 = vadd.f32 %v3956_v23, %v588_v61 }
 0x3b3   : > { %v600_v7 = vmul.f32 %v3363_v62, %v3992_v3  ;;  %v609_v9 = vmul.f32 %v3363_v62, %v608_v2 }
 0x3b4   : > { %3364 = vtanh.f32 %v589_v6 }
 0x3b5   : > { %v604_v8 = vadd.f32 %v600_v7, %v3997_v11  ;;  %v613_v10 = vadd.f32 %v609_v9, %v3905_v0 }
 0x3b7   : > { %v617_v22 = vpack.c.bf16 %v613_v10, %v613_v10 }
 0x3b9   : > { %v591_v12 = vpop.f32.mrf.mxu3  ;;  %v623_v27 = vunpack.c.l.b16 %v617_v22 }
 0x3ba   : > { %v3365_v14 = vpop.eup %3364  ;;  %v592_v17 = vadd.f32 %v3956_v23, %v591_v12 }
 0x3bb   : > { %v601_v18 = vmul.f32 %v3365_v14, %v3992_v3  ;;  %v610_v19 = vmul.f32 %v3365_v14, %v608_v2 }
 0x3bc   : > { %3366 = vtanh.f32 %v592_v17 }
 0x3bd   : > { %v605_v20 = vadd.f32 %v601_v18, %v4006_v25  ;;  %v614_v21 = vadd.f32 %v610_v19, %v3907_v1 }
 0x3bf   : > { %v618_v24 = vpack.c.bf16 %v614_v21, %v614_v21 }
 0x3c1   : > { %v593_v26 = vpop.f32.mrf.mxu3  ;;  %v624_v11 = vunpack.c.l.b16 %v618_v24 }
 0x3c2   : > { %v3367_v28 = vpop.eup %3366  ;;  %v594_v0 = vadd.f32 %v3956_v23, %v593_v26 }
 0x3c3   : > { %v602_v30 = vmul.f32 %v3367_v28, %v3992_v3  ;;  %v611_v31 = vmul.f32 %v3367_v28, %v608_v2  ;;  %v625_v32 = vpack.c.b16 %v624_v11, %v623_v27 }
 0x3c4   : > { %3368 = vtanh.f32 %v594_v0 }
 0x3c5   : > { %v606_v33 = vadd.f32 %v602_v30, %v4014_v40  ;;  %634 = vmatpush.bf16.msra.mxu2 %v625_v32  ;;  %v615_v25 = vadd.f32 %v611_v31, %v3913_v4  ;;  %v4107_v31 = vstv %s791_s11 }
 0x3c7   : > { %v619_v36 = vpack.c.bf16 %v615_v25, %v615_v25 }
 0x3c8   : > { %3104 = vmatmul.msk.bf16.vlgmr.msra.gmra.mxu2 %vm331_vm1, %v3935_v13 }
 0x3c9   : > { %v643_v41 = vunpack.c.l.b16 %v619_v36 }
 0x3ca   : > { %v3369_v1 = vpop.eup %3368 }
 0x3cb   : > { %v603_v34 = vmul.f32 %v3369_v1, %v3992_v3  ;;  %v612_v35 = vmul.f32 %v3369_v1, %v608_v2 }
 0x3cd   : > { %v607_v37 = vadd.f32 %v603_v34, %v516_v49  ;;  %v616_v38 = vadd.f32 %v612_v35, %v3915_v5 }
 0x3cf   : > { %v620_v39 = vpack.c.bf16 %v616_v38, %v616_v38 }
 0x3d1   : > { %v644_v42 = vunpack.c.l.b16 %v620_v39 }
 0x3d3   : > { %v645_v43 = vpack.c.b16 %v644_v42, %v643_v41 }
 0x3d5   : > { %654 = vmatpush.bf16.msrb.mxu0 %v645_v43 }
 0x3d8   : > { %3105 = vmatmul.msk.bf16.vlgmr.msrb.gmra.mxu0 %vm331_vm1, %v3935_v13 }
 0x44b   : > { %v636_v4 = vpop.f32.mrf.mxu2 }
 0x453   : > { %v638_v40 = vpop.f32.mrf.mxu2 }
 0x454   : > { %v661_v44 = vpack.c.bf16 %v638_v40, %v636_v4 }
 0x455   : > { %v656_v45 = vpop.f32.mrf.mxu0 }
 0x456   : > { %3106 = vmatmul.msk.bf16.vlgmr.msrb.gmra.mxu1 %vm310_vm0, %v661_v44 }
 0x457   : > { %1044 = vmatpush.bf16.msrb.mxu1 %v3941_v15 }
 0x45b   : > { %1045 = vmatpush.bf16.msrb.mxu1 %v3945_v16 }
 0x45d   : > { %v658_v5 = vpop.f32.mrf.mxu0 }
 0x45e   : > { %v662_v3 = vpack.c.bf16 %v658_v5, %v656_v45 }
 0x466   : > { %3107 = vmatmul.msk.bf16.gmra.mxu1 %vm310_vm0, %v662_v3 }
 0x4d3   : > { %v678_v46 = vpop.f32.mrf.mxu1 }
 0x4d4   : > { %v679_v48 = vadd.f32 %v3956_v23, %v678_v46 }
 0x4d6   : > { %3370 = vtanh.f32 %v679_v48 }
 0x4db   : > { %v680_v49 = vpop.f32.mrf.mxu1 }
 0x4dc   : > { %v3371_v47 = vpop.eup %3370  ;;  %v681_v50 = vadd.f32 %v3956_v23, %v680_v49 }
 0x4dd   : > { %v692_v51 = vmul.f32 %v3371_v47, %v3988_v63 }
 0x4de   : > { %3372 = vtanh.f32 %v681_v50 }
 0x4df   : > { %v4062_v52 = vadd.f32 %v692_v51, %v604_v8 }
 0x4e1   : > { %3108 = vst.msk [vmem:[%s3917_s24 + $0x20] sm:$0xff] %vm310_vm0, %v4062_v52  ;;  %v706_v57 = vpack.c.bf16 %v4062_v52, %v4062_v52 }
 0x4e3   : > { %v683_v53 = vpop.f32.mrf.mxu1  ;;  %v712_v60 = vunpack.c.l.b16 %v706_v57 }
 0x4e4   : > { %v3373_v54 = vpop.eup %3372  ;;  %v684_v55 = vadd.f32 %v3956_v23, %v683_v53 }
 0x4e5   : > { %v693_v29 = vmul.f32 %v3373_v54, %v3988_v63 }
 0x4e6   : > { %3374 = vtanh.f32 %v684_v55 }
 0x4e7   : > { %v4069_v56 = vadd.f32 %v693_v29, %v605_v20 }
 0x4e9   : > { %3109 = vst.msk [vmem:[%s3917_s24 + $0x28] sm:$0xff] %vm310_vm0, %v4069_v56  ;;  %v707_v58 = vpack.c.bf16 %v4069_v56, %v4069_v56 }
 0x4eb   : > { %v685_v59 = vpop.f32.mrf.mxu1  ;;  %v713_v61 = vunpack.c.l.b16 %v707_v58 }
 0x4ec   : > { %v3375_v62 = vpop.eup %3374  ;;  %v686_v2 = vadd.f32 %v3956_v23, %v685_v59 }
 0x4ed   : > { %v694_v6 = vmul.f32 %v3375_v62, %v3988_v63  ;;  %v714_v7 = vpack.c.b16 %v713_v61, %v712_v60  ;;  %v4130_v62 = vstv %s781_s7 }
 0x4ee   : > { %3376 = vtanh.f32 %v686_v2 }
 0x4ef   : > { %v4080_v8 = vadd.f32 %v694_v6, %v606_v33  ;;  %723 = vmatpush.bf16.msrb.mxu2 %v714_v7  ;;  %v4134_v6 = vstv %s876_s12 }
 0x4f1   : > { %3110 = vst.msk [vmem:[%s3917_s24 + $0x30] sm:$0xff] %vm310_vm0, %v4080_v8  ;;  %v708_v14 = vpack.c.bf16 %v4080_v8, %v4080_v8 }
 0x4f2   : > { %3113 = vmatmul.msk.bf16.vlgmr.msrb.gmra.mxu2 %vm331_vm1, %v3935_v13 }
 0x4f3   : > { %v732_v18 = vunpack.c.l.b16 %v708_v14 }
 0x4f4   : > { %v3377_v9 = vpop.eup %3376 }
 0x4f5   : > { %v695_v10 = vmul.f32 %v3377_v9, %v3988_v63 }
 0x4f7   : > { %v4088_v12 = vadd.f32 %v695_v10, %v607_v37 }
 0x4f9   : > { %3111 = vst.msk [vmem:[%s3917_s24 + $0x38] sm:$0xff] %vm310_vm0, %v4088_v12  ;;  %v709_v17 = vpack.c.bf16 %v4088_v12, %v4088_v12 }
 0x4fb   : > { %v733_v19 = vunpack.c.l.b16 %v709_v17 }
 0x4fd   : > { %v734_v20 = vpack.c.b16 %v733_v19, %v732_v18 }
 0x4ff   : > { %743 = vmatpush.bf16.msra.mxu0 %v734_v20 }
 0x502   : > { %3114 = vmatmul.msk.bf16.vlgmr.msra.gmra.mxu0 %vm331_vm1, %v3935_v13 }
 0x575   : > { %v725_v21 = vpop.f32.mrf.mxu2 }
 0x57d   : > { %v727_v63 = vpop.f32.mrf.mxu2 }
 0x57e   : > { %v750_v22 = vpack.c.bf16 %v727_v63, %v725_v21 }
 0x57f   : > { %v745_v24 = vpop.f32.mrf.mxu0 }
 0x580   : > { %3115 = vmatmul.msk.bf16.vlgmr.msrb.gmra.mxu3 %vm310_vm0, %v750_v22 }
 0x581   : > { %1133 = vmatpush.bf16.msrb.mxu3 %v3941_v15 }
 0x585   : > { %1134 = vmatpush.bf16.msrb.mxu3 %v3945_v16 }
 0x587   : > { %v747_v26 = vpop.f32.mrf.mxu0 }
 0x588   : > { %v751_v27 = vpack.c.bf16 %v747_v26, %v745_v24 }
 0x590   : > { %3116 = vmatmul.msk.bf16.gmra.mxu3 %vm310_vm0, %v751_v27 }
 0x603   : > { %v767_v11 = vpop.f32.mrf.mxu3 }
 0x604   : > { %v768_v28 = vadd.f32 %v3956_v23, %v767_v11 }
 0x606   : > { %3378 = vtanh.f32 %v768_v28 }
 0x60b   : > { %v769_v0 = vpop.f32.mrf.mxu3 }
 0x60c   : > { %v3379_v30 = vpop.eup %3378  ;;  %v770_v32 = vadd.f32 %v3956_v23, %v769_v0 }
 0x60d   : > { %v793_v33 = vmul.f32 %v3379_v30, %v4107_v31  ;;  %v783_v2 = vmul.f32 %v3379_v30, %v4130_v62 }
 0x60e   : > { %3380 = vtanh.f32 %v770_v32 }
 0x60f   : > { %v797_v25 = vadd.f32 %v793_v33, %v4062_v52  ;;  %v787_v14 = vadd.f32 %v783_v2, %v4062_v52  ;;  %v977_v2 = vstv %s4103_s10  ;;  %s4511_s10 = sld [smem:[#allocation2 + $0x5]] }
 0x611   : > { %v801_v38 = vpack.c.bf16 %v797_v25, %v797_v25 }
 0x613   : > { %v772_v1 = vpop.f32.mrf.mxu3  ;;  %v807_v42 = vunpack.c.l.b16 %v801_v38 }
 0x614   : > { %v3381_v34 = vpop.eup %3380  ;;  %v773_v35 = vadd.f32 %v3956_v23, %v772_v1 }
 0x615   : > { %v794_v36 = vmul.f32 %v3381_v34, %v4107_v31  ;;  %v784_v20 = vmul.f32 %v3381_v34, %v4130_v62  ;;  %s1898_s11 = smul.f32 0.5, %s4511_s10 }
 0x616   : > { %3382 = vtanh.f32 %v773_v35  ;;  %s1888_s7 = smul.f32 0.16666667, %s4511_s10 }
 0x617   : > { %v798_v37 = vadd.f32 %v794_v36, %v4069_v56  ;;  %v788_v26 = vadd.f32 %v784_v20, %v4069_v56  ;;  %s1983_s12 = smul.f32 0.33333334, %s4511_s10 }
 0x619   : > { %v802_v39 = vpack.c.bf16 %v798_v37, %v798_v37 }
 0x61b   : > { %v774_v41 = vpop.f32.mrf.mxu3  ;;  %v808_v43 = vunpack.c.l.b16 %v802_v39 }
 0x61c   : > { %v3383_v4 = vpop.eup %3382  ;;  %v775_v40 = vadd.f32 %v3956_v23, %v774_v41 }
 0x61d   : > { %v809_v44 = vpack.c.b16 %v808_v43, %v807_v42  ;;  %v795_v45 = vmul.f32 %v3383_v4, %v4107_v31  ;;  %v785_v32 = vmul.f32 %v3383_v4, %v4130_v62 }
 0x61e   : > { %3384 = vtanh.f32 %v775_v40 }
 0x61f   : > { %818 = vmatpush.bf16.msra.mxu2 %v809_v44  ;;  %v799_v5 = vadd.f32 %v795_v45, %v4080_v8  ;;  %v789_v37 = vadd.f32 %v785_v32, %v4080_v8 }
 0x621   : > { %v803_v49 = vpack.c.bf16 %v799_v5, %v799_v5 }
 0x622   : > { %3117 = vmatmul.msk.bf16.vlgmr.msra.gmra.mxu2 %vm331_vm1, %v3935_v13 }
 0x623   : > { %v827_v50 = vunpack.c.l.b16 %v803_v49 }
 0x624   : > { %v3385_v3 = vpop.eup %3384 }
 0x625   : > { %v796_v46 = vmul.f32 %v3385_v3, %v4107_v31  ;;  %v786_v43 = vmul.f32 %v3385_v3, %v4130_v62 }
 0x627   : > { %v800_v48 = vadd.f32 %v796_v46, %v4088_v12  ;;  %v790_v44 = vadd.f32 %v786_v43, %v4088_v12 }
 0x629   : > { %v804_v47 = vpack.c.bf16 %v800_v48, %v800_v48 }
 0x62b   : > { %v828_v51 = vunpack.c.l.b16 %v804_v47 }
 0x62d   : > { %v829_v53 = vpack.c.b16 %v828_v51, %v827_v50 }
 0x62f   : > { %838 = vmatpush.bf16.msrb.mxu0 %v829_v53 }
 0x632   : > { %3118 = vmatmul.msk.bf16.vlgmr.msrb.gmra.mxu0 %vm331_vm1, %v3935_v13 }
 0x6a5   : > { %v820_v54 = vpop.f32.mrf.mxu2 }
 0x6ad   : > { %v822_v55 = vpop.f32.mrf.mxu2 }
 0x6ae   : > { %v845_v29 = vpack.c.bf16 %v822_v55, %v820_v54 }
 0x6af   : > { %v840_v57 = vpop.f32.mrf.mxu0 }
 0x6b0   : > { %3119 = vmatmul.msk.bf16.vlgmr.msra.gmra.mxu1 %vm310_vm0, %v845_v29 }
 0x6b1   : > { %1228 = vmatpush.bf16.msra.mxu1 %v3941_v15 }
 0x6b5   : > { %1229 = vmatpush.bf16.msra.mxu1 %v3945_v16 }
 0x6b7   : > { %v842_v58 = vpop.f32.mrf.mxu0 }
 0x6b8   : > { %v846_v59 = vpack.c.bf16 %v842_v58, %v840_v57 }
 0x6c0   : > { %3120 = vmatmul.msk.bf16.gmra.mxu1 %vm310_vm0, %v846_v59 }
 0x72d   : > { %v862_v60 = vpop.f32.mrf.mxu1 }
 0x72e   : > { %v863_v61 = vadd.f32 %v3956_v23, %v862_v60 }
 0x730   : > { %3386 = vtanh.f32 %v863_v61 }
 0x735   : > { %v864_v7 = vpop.f32.mrf.mxu1 }
 0x736   : > { %v3387_v9 = vpop.eup %3386  ;;  %v865_v10 = vadd.f32 %v3956_v23, %v864_v7 }
 0x737   : > { %v878_v17 = vmul.f32 %v3387_v9, %v4134_v6  ;;  %v886_v19 = vmul.f32 %v3387_v9, %v4107_v31 }
 0x738   : > { %3388 = vtanh.f32 %v865_v10 }
 0x739   : > { %v4139_v18 = vadd.f32 %v878_v17, %v787_v14  ;;  %v890_v21 = vadd.f32 %v886_v19, %v4062_v52 }
 0x73b   : > { %v894_v30 = vpack.c.bf16 %v890_v21, %v890_v21 }
 0x73d   : > { %v867_v63 = vpop.f32.mrf.mxu1  ;;  %v900_v1 = vunpack.c.l.b16 %v894_v30 }
 0x73e   : > { %v3389_v22 = vpop.eup %3388  ;;  %v868_v24 = vadd.f32 %v3956_v23, %v867_v63 }
 0x73f   : > { %v879_v27 = vmul.f32 %v3389_v22, %v4134_v6  ;;  %v887_v11 = vmul.f32 %v3389_v22, %v4107_v31 }
 0x740   : > { %3390 = vtanh.f32 %v868_v24 }
 0x741   : > { %v883_v28 = vadd.f32 %v879_v27, %v788_v26  ;;  %v891_v0 = vadd.f32 %v887_v11, %v4069_v56 }
 0x743   : > { %v895_v33 = vpack.c.bf16 %v891_v0, %v891_v0 }
 0x745   : > { %v869_v25 = vpop.f32.mrf.mxu1  ;;  %v901_v34 = vunpack.c.l.b16 %v895_v33 }
 0x746   : > { %v3391_v35 = vpop.eup %3390  ;;  %v870_v36 = vadd.f32 %v3956_v23, %v869_v25 }
 0x747   : > { %v880_v38 = vmul.f32 %v3391_v35, %v4134_v6  ;;  %v902_v39 = vpack.c.b16 %v901_v34, %v900_v1  ;;  %v888_v42 = vmul.f32 %v3391_v35, %v4107_v31 }
 0x748   : > { %3392 = vtanh.f32 %v870_v36 }
 0x749   : > { %v884_v41 = vadd.f32 %v880_v38, %v789_v37  ;;  %911 = vmatpush.bf16.msrb.mxu2 %v902_v39  ;;  %v892_v4 = vadd.f32 %v888_v42, %v4080_v8 }
 0x74b   : > { %v896_v49 = vpack.c.bf16 %v892_v4, %v892_v4 }
 0x74c   : > { %3121 = vmatmul.msk.bf16.vlgmr.msrb.gmra.mxu2 %vm331_vm1, %v3935_v13 }
 0x74d   : > { %v920_v50 = vunpack.c.l.b16 %v896_v49 }
 0x74e   : > { %v3393_v40 = vpop.eup %3392 }
 0x74f   : > { %v881_v45 = vmul.f32 %v3393_v40, %v4134_v6  ;;  %v889_v5 = vmul.f32 %v3393_v40, %v4107_v31 }
 0x751   : > { %v885_v46 = vadd.f32 %v881_v45, %v790_v44  ;;  %v893_v48 = vadd.f32 %v889_v5, %v4088_v12 }
 0x753   : > { %v897_v47 = vpack.c.bf16 %v893_v48, %v893_v48 }
 0x755   : > { %v921_v51 = vunpack.c.l.b16 %v897_v47 }
 0x757   : > { %v922_v3 = vpack.c.b16 %v921_v51, %v920_v50 }
 0x759   : > { %931 = vmatpush.bf16.msra.mxu0 %v922_v3 }
 0x75c   : > { %3122 = vmatmul.msk.bf16.vlgmr.msra.gmra.mxu0 %vm331_vm1, %v3935_v13 }
 0x7cf   : > { %v913_v53 = vpop.f32.mrf.mxu2 }
 0x7d7   : > { %v915_v54 = vpop.f32.mrf.mxu2 }
 0x7d8   : > { %v938_v55 = vpack.c.bf16 %v915_v54, %v913_v53 }
 0x7d9   : > { %v933_v29 = vpop.f32.mrf.mxu0 }
 0x7da   : > { %3123 = vmatmul.msk.bf16.vlgmr.msra.gmra.mxu3 %vm310_vm0, %v938_v55 }
 0x7db   : > { %1321 = vmatpush.bf16.msra.mxu3 %v3941_v15 }
 0x7df   : > { %1322 = vmatpush.bf16.msra.mxu3 %v3945_v16 }
 0x7e1   : > { %v935_v31 = vpop.f32.mrf.mxu0 }
 0x7e2   : > { %v939_v57 = vpack.c.bf16 %v935_v31, %v933_v29 }
 0x7ea   : > { %3124 = vmatmul.msk.bf16.gmra.mxu3 %vm310_vm0, %v939_v57 }
 0x85d   : > { %v955_v58 = vpop.f32.mrf.mxu3 }
 0x85e   : > { %v956_v59 = vadd.f32 %v3956_v23, %v955_v58 }
 0x860   : > { %3394 = vtanh.f32 %v956_v59 }
 0x865   : > { %v957_v60 = vpop.f32.mrf.mxu3 }
 0x866   : > { %v3395_v61 = vpop.eup %3394  ;;  %v958_v7 = vadd.f32 %v3956_v23, %v957_v60 }
 0x867   : > { %v969_v9 = vmul.f32 %v3395_v61, %v4134_v6  ;;  %v978_v14 = vmul.f32 %v3395_v61, %v977_v2 }
 0x868   : > { %3396 = vtanh.f32 %v958_v7 }
 0x869   : > { %v973_v10 = vadd.f32 %v969_v9, %v4139_v18  ;;  %v982_v17 = vadd.f32 %v978_v14, %v4062_v52 }
 0x86b   : > { %v986_v27 = vpack.c.bf16 %v982_v17, %v982_v17 }
 0x86d   : > { %v960_v19 = vpop.f32.mrf.mxu3  ;;  %v992_v30 = vunpack.c.l.b16 %v986_v27 }
 0x86e   : > { %v3397_v20 = vpop.eup %3396  ;;  %v961_v21 = vadd.f32 %v3956_v23, %v960_v19 }
 0x86f   : > { %v970_v63 = vmul.f32 %v3397_v20, %v4134_v6  ;;  %v979_v22 = vmul.f32 %v3397_v20, %v977_v2 }
 0x870   : > { %3398 = vtanh.f32 %v961_v21 }
 0x871   : > { %v974_v24 = vadd.f32 %v970_v63, %v883_v28  ;;  %v983_v26 = vadd.f32 %v979_v22, %v4069_v56 }
 0x873   : > { %v987_v11 = vpack.c.bf16 %v983_v26, %v983_v26 }
 0x875   : > { %v962_v0 = vpop.f32.mrf.mxu3  ;;  %v993_v32 = vunpack.c.l.b16 %v987_v11 }
 0x876   : > { %v3399_v18 = vpop.eup %3398  ;;  %v963_v33 = vadd.f32 %v3956_v23, %v962_v0 }
 0x877   : > { %v971_v52 = vmul.f32 %v3399_v18, %v4134_v6  ;;  %v994_v25 = vpack.c.b16 %v993_v32, %v992_v30  ;;  %v980_v34 = vmul.f32 %v3399_v18, %v977_v2 }
 0x878   : > { %3400 = vtanh.f32 %v963_v33 }
 0x879   : > { %v975_v1 = vadd.f32 %v971_v52, %v884_v41  ;;  %1003 = vmatpush.bf16.msra.mxu2 %v994_v25  ;;  %v984_v56 = vadd.f32 %v980_v34, %v4080_v8  ;;  %v4238_v52 = vstv %s1160_s27 }
 0x87b   : > { %v988_v39 = vpack.c.bf16 %v984_v56, %v984_v56 }
 0x87c   : > { %3125 = vmatmul.msk.bf16.vlgmr.msra.gmra.mxu2 %vm331_vm1, %v3935_v13 }
 0x87d   : > { %v1012_v43 = vunpack.c.l.b16 %v988_v39 }
 0x87e   : > { %v3401_v28 = vpop.eup %3400 }
 0x87f   : > { %v972_v35 = vmul.f32 %v3401_v28, %v4134_v6  ;;  %v981_v36 = vmul.f32 %v3401_v28, %v977_v2 }
 0x881   : > { %v976_v37 = vadd.f32 %v972_v35, %v885_v46  ;;  %v985_v38 = vadd.f32 %v981_v36, %v4088_v12 }
 0x883   : > { %v989_v42 = vpack.c.bf16 %v985_v38, %v985_v38 }
 0x885   : > { %v1013_v4 = vunpack.c.l.b16 %v989_v42 }
 0x887   : > { %v1014_v40 = vpack.c.b16 %v1013_v4, %v1012_v43 }
 0x889   : > { %1023 = vmatpush.bf16.msrb.mxu0 %v1014_v40 }
 0x88c   : > { %3126 = vmatmul.msk.bf16.vlgmr.msrb.gmra.mxu0 %vm331_vm1, %v3935_v13 }
 0x8ff   : > { %v1005_v41 = vpop.f32.mrf.mxu2 }
 0x907   : > { %v1007_v44 = vpop.f32.mrf.mxu2 }
 0x908   : > { %v1030_v45 = vpack.c.bf16 %v1007_v44, %v1005_v41  ;;  %v4248_v44 = vld [vmem:[#allocation7] sm:$0xff] }
 0x909   : > { %v1025_v8 = vpop.f32.mrf.mxu0 }
 0x90a   : > { %3127 = vmatmul.msk.bf16.vlgmr.msrb.gmra.mxu1 %vm310_vm0, %v1030_v45 }
 0x90b   : > { %1413 = vmatpush.bf16.msrb.mxu1 %v3941_v15 }
 0x90f   : > { %1414 = vmatpush.bf16.msrb.mxu1 %v3945_v16 }
 0x911   : > { %v1027_v12 = vpop.f32.mrf.mxu0 }
 0x912   : > { %v1031_v6 = vpack.c.bf16 %v1027_v12, %v1025_v8 }
 0x91a   : > { %3128 = vmatmul.msk.bf16.gmra.mxu1 %vm310_vm0, %v1031_v6 }
 0x987   : > { %v1047_v5 = vpop.f32.mrf.mxu1 }
 0x988   : > { %v1048_v46 = vadd.f32 %v3956_v23, %v1047_v5 }
 0x98a   : > { %3402 = vtanh.f32 %v1048_v46 }
 0x98f   : > { %v1049_v48 = vpop.f32.mrf.mxu1 }
 0x990   : > { %v3403_v49 = vpop.eup %3402  ;;  %v1050_v47 = vadd.f32 %v3956_v23, %v1049_v48 }
 0x991   : > { %v1061_v50 = vmul.f32 %v3403_v49, %v4130_v62 }
 0x992   : > { %3404 = vtanh.f32 %v1050_v47 }
 0x993   : > { %v4193_v51 = vadd.f32 %v1061_v50, %v973_v10 }
 0x995   : > { %3129 = vst.msk [vmem:[%s3917_s24 + $0x40] sm:$0xff] %vm310_vm0, %v4193_v51  ;;  %v1075_v31 = vpack.c.bf16 %v4193_v51, %v4193_v51 }
 0x997   : > { %v1052_v3 = vpop.f32.mrf.mxu1  ;;  %v1081_v59 = vunpack.c.l.b16 %v1075_v31 }
 0x998   : > { %v3405_v53 = vpop.eup %3404  ;;  %v1053_v54 = vadd.f32 %v3956_v23, %v1052_v3 }
 0x999   : > { %v1062_v55 = vmul.f32 %v3405_v53, %v4130_v62 }
 0x99a   : > { %3406 = vtanh.f32 %v1053_v54  ;;  %v4261_v54 = vld [vmem:[#allocation9 + $0x8] sm:$0xff] }
 0x99b   : > { %v4200_v29 = vadd.f32 %v1062_v55, %v974_v24  ;;  %v4264_v55 = vld [vmem:[#allocation9] sm:$0xff] }
 0x99d   : > { %3130 = vst.msk [vmem:[%s3917_s24 + $0x48] sm:$0xff] %vm310_vm0, %v4200_v29  ;;  %v1076_v57 = vpack.c.bf16 %v4200_v29, %v4200_v29 }
 0x99f   : > { %v1054_v58 = vpop.f32.mrf.mxu1  ;;  %v1082_v60 = vunpack.c.l.b16 %v1076_v57 }
 0x9a0   : > { %v3407_v61 = vpop.eup %3406  ;;  %v1055_v2 = vadd.f32 %v3956_v23, %v1054_v58 }
 0x9a1   : > { %v1063_v7 = vmul.f32 %v3407_v61, %v4130_v62  ;;  %v1083_v9 = vpack.c.b16 %v1082_v60, %v1081_v59  ;;  %v4272_v59 = vld [vmem:[%s4924_s4] ss:$0 sm:$0xff]  ;;  %v4275_v61 = vstv %s1150_s28  ;;  %s4659_s28 = sld [smem:[#allocation2 + $0x6]] }
 0x9a2   : > { %3408 = vtanh.f32 %v1055_v2 }
 0x9a3   : > { %v4211_v10 = vadd.f32 %v1063_v7, %v975_v1  ;;  %1092 = vmatpush.bf16.msrb.mxu2 %v1083_v9  ;;  %v4279_v7 = vstv %s1245_s15 }
 0x9a5   : > { %3131 = vst.msk [vmem:[%s3917_s24 + $0x50] sm:$0xff] %vm310_vm0, %v4211_v10  ;;  %v1077_v20 = vpack.c.bf16 %v4211_v10, %v4211_v10 }
 0x9a6   : > { %3134 = vmatmul.msk.bf16.vlgmr.msrb.gmra.mxu2 %vm331_vm1, %v3935_v13 }
 0x9a7   : > { %v1101_v63 = vunpack.c.l.b16 %v1077_v20  ;;  %s2267_s29 = smul.f32 0.5, %s4659_s28 }
 0x9a8   : > { %v3409_v14 = vpop.eup %3408  ;;  %s2257_s13 = smul.f32 0.16666667, %s4659_s28 }
 0x9a9   : > { %v1064_v17 = vmul.f32 %v3409_v14, %v4130_v62  ;;  %s2352_s15 = smul.f32 0.33333334, %s4659_s28 }
 0x9ab   : > { %v4219_v19 = vadd.f32 %v1064_v17, %v976_v37 }
 0x9ad   : > { %3132 = vst.msk [vmem:[%s3917_s24 + $0x58] sm:$0xff] %vm310_vm0, %v4219_v19  ;;  %v1078_v21 = vpack.c.bf16 %v4219_v19, %v4219_v19 }
 0x9af   : > { %v1102_v22 = vunpack.c.l.b16 %v1078_v21 }
 0x9b1   : > { %v1103_v24 = vpack.c.b16 %v1102_v22, %v1101_v63 }
 0x9b3   : > { %1112 = vmatpush.bf16.msra.mxu0 %v1103_v24 }
 0x9b6   : > { %3135 = vmatmul.msk.bf16.vlgmr.msra.gmra.mxu0 %vm331_vm1, %v3935_v13 }
 0xa29   : > { %v1094_v26 = vpop.f32.mrf.mxu2 }
 0xa31   : > { %v1096_v62 = vpop.f32.mrf.mxu2 }
 0xa32   : > { %v1119_v27 = vpack.c.bf16 %v1096_v62, %v1094_v26 }
 0xa33   : > { %v1114_v11 = vpop.f32.mrf.mxu0 }
 0xa34   : > { %3136 = vmatmul.msk.bf16.vlgmr.msrb.gmra.mxu3 %vm310_vm0, %v1119_v27 }
 0xa35   : > { %1502 = vmatpush.bf16.msrb.mxu3 %v3941_v15 }
 0xa39   : > { %1503 = vmatpush.bf16.msrb.mxu3 %v3945_v16 }
 0xa3b   : > { %v1116_v0 = vpop.f32.mrf.mxu0 }
 0xa3c   : > { %v1120_v30 = vpack.c.bf16 %v1116_v0, %v1114_v11 }
 0xa44   : > { %3137 = vmatmul.msk.bf16.gmra.mxu3 %vm310_vm0, %v1120_v30 }
 0xab7   : > { %v1136_v32 = vpop.f32.mrf.mxu3 }
 0xab8   : > { %v1137_v13 = vadd.f32 %v3956_v23, %v1136_v32 }
 0xaba   : > { %3410 = vtanh.f32 %v1137_v13 }
 0xabf   : > { %v1138_v18 = vpop.f32.mrf.mxu3 }
 0xac0   : > { %v3411_v33 = vpop.eup %3410  ;;  %v1139_v15 = vadd.f32 %v3956_v23, %v1138_v18 }
 0xac1   : > { %v1162_v16 = vmul.f32 %v3411_v33, %v4238_v52  ;;  %v1152_v2 = vmul.f32 %v3411_v33, %v4275_v61 }
 0xac2   : > { %3412 = vtanh.f32 %v1139_v15 }
 0xac3   : > { %v1166_v25 = vadd.f32 %v1162_v16, %v4193_v51  ;;  %v1156_v20 = vadd.f32 %v1152_v2, %v4193_v51  ;;  %v1346_v2 = vstv %s4234_s23 }
 0xac5   : > { %v1170_v36 = vpack.c.bf16 %v1166_v25, %v1166_v25 }
 0xac7   : > { %v1141_v1 = vpop.f32.mrf.mxu3  ;;  %v1176_v39 = vunpack.c.l.b16 %v1170_v36 }
 0xac8   : > { %v3413_v34 = vpop.eup %3412  ;;  %v1142_v56 = vadd.f32 %v3956_v23, %v1141_v1 }
 0xac9   : > { %v1163_v28 = vmul.f32 %v3413_v34, %v4238_v52  ;;  %v1153_v24 = vmul.f32 %v3413_v34, %v4275_v61 }
 0xaca   : > { %3414 = vtanh.f32 %v1142_v56 }
 0xacb   : > { %v1167_v35 = vadd.f32 %v1163_v28, %v4200_v29  ;;  %v1157_v0 = vadd.f32 %v1153_v24, %v4200_v29 }
 0xacd   : > { %v1171_v37 = vpack.c.bf16 %v1167_v35, %v1167_v35 }
 0xacf   : > { %v1143_v38 = vpop.f32.mrf.mxu3  ;;  %v1177_v42 = vunpack.c.l.b16 %v1171_v37 }
 0xad0   : > { %v3415_v43 = vpop.eup %3414  ;;  %v1144_v4 = vadd.f32 %v3956_v23, %v1143_v38 }
 0xad1   : > { %v1178_v40 = vpack.c.b16 %v1177_v42, %v1176_v39  ;;  %v1164_v41 = vmul.f32 %v3415_v43, %v4238_v52  ;;  %v1154_v15 = vmul.f32 %v3415_v43, %v4275_v61 }
 0xad2   : > { %3416 = vtanh.f32 %v1144_v4 }
 0xad3   : > { %1187 = vmatpush.bf16.msra.mxu2 %v1178_v40  ;;  %v1168_v45 = vadd.f32 %v1164_v41, %v4211_v10  ;;  %v1158_v35 = vadd.f32 %v1154_v15, %v4211_v10 }
 0xad5   : > { %v1172_v23 = vpack.c.bf16 %v1168_v45, %v1168_v45 }
 0xad6   : > { %3138 = vmatmul.msk.bf16.vlgmr.msra.gmra.mxu2 %vm331_vm1, %v4248_v44 }
 0xad7   : > { %v1196_v46 = vunpack.c.l.b16 %v1172_v23 }
 0xad8   : > { %v4253_v8 = vpop.eup %3416 }
 0xad9   : > { %v1165_v12 = vmul.f32 %v4253_v8, %v4238_v52  ;;  %v1155_v42 = vmul.f32 %v4253_v8, %v4275_v61 }
 0xadb   : > { %v1169_v6 = vadd.f32 %v1165_v12, %v4219_v19  ;;  %v1159_v40 = vadd.f32 %v1155_v42, %v4219_v19 }
 0xadd   : > { %v1173_v5 = vpack.c.bf16 %v1169_v6, %v1169_v6 }
 0xadf   : > { %v1197_v48 = vunpack.c.l.b16 %v1173_v5 }
 0xae1   : > { %v1198_v49 = vpack.c.b16 %v1197_v48, %v1196_v46 }
 0xae3   : > { %1207 = vmatpush.bf16.msrb.mxu0 %v1198_v49 }
 0xae6   : > { %3139 = vmatmul.msk.bf16.vlgmr.msrb.gmra.mxu0 %vm331_vm1, %v4248_v44 }
 0xb59   : > { %v1189_v47 = vpop.f32.mrf.mxu2 }
 0xb61   : > { %v1191_v50 = vpop.f32.mrf.mxu2 }
 0xb62   : > { %v1214_v3 = vpack.c.bf16 %v1191_v50, %v1189_v47 }
 0xb63   : > { %v1209_v53 = vpop.f32.mrf.mxu0 }
 0xb64   : > { %3140 = vmatmul.msk.bf16.vlgmr.msra.gmra.mxu1 %vm310_vm0, %v1214_v3 }
 0xb65   : > { %1597 = vmatpush.bf16.msra.mxu1 %v4261_v54 }
 0xb69   : > { %1598 = vmatpush.bf16.msra.mxu1 %v4264_v55 }
 0xb6b   : > { %v1211_v31 = vpop.f32.mrf.mxu0 }
 0xb6c   : > { %v1215_v57 = vpack.c.bf16 %v1211_v31, %v1209_v53 }
 0xb74   : > { %3141 = vmatmul.msk.bf16.gmra.mxu1 %vm310_vm0, %v1215_v57 }
 0xbe1   : > { %v1231_v58 = vpop.f32.mrf.mxu1 }
 0xbe2   : > { %v1232_v60 = vadd.f32 %v4272_v59, %v1231_v58 }
 0xbe4   : > { %3418 = vtanh.f32 %v1232_v60 }
 0xbe9   : > { %v1233_v9 = vpop.f32.mrf.mxu1 }
 0xbea   : > { %v3419_v14 = vpop.eup %3418  ;;  %v1234_v17 = vadd.f32 %v4272_v59, %v1233_v9 }
 0xbeb   : > { %v1247_v21 = vmul.f32 %v3419_v14, %v4279_v7  ;;  %v1255_v22 = vmul.f32 %v3419_v14, %v4238_v52 }
 0xbec   : > { %3420 = vtanh.f32 %v1234_v17 }
 0xbed   : > { %v4284_v63 = vadd.f32 %v1247_v21, %v1156_v20  ;;  %v1259_v26 = vadd.f32 %v1255_v22, %v4193_v51 }
 0xbef   : > { %v1263_v33 = vpack.c.bf16 %v1259_v26, %v1259_v26 }
 0xbf1   : > { %v1236_v62 = vpop.f32.mrf.mxu1  ;;  %v1269_v1 = vunpack.c.l.b16 %v1263_v33 }
 0xbf2   : > { %v3421_v27 = vpop.eup %3420  ;;  %v1237_v11 = vadd.f32 %v4272_v59, %v1236_v62 }
 0xbf3   : > { %v1248_v30 = vmul.f32 %v3421_v27, %v4279_v7  ;;  %v1256_v32 = vmul.f32 %v3421_v27, %v4238_v52 }
 0xbf4   : > { %3422 = vtanh.f32 %v1237_v11 }
 0xbf5   : > { %v1252_v13 = vadd.f32 %v1248_v30, %v1157_v0  ;;  %v1260_v18 = vadd.f32 %v1256_v32, %v4200_v29 }
 0xbf7   : > { %v1264_v16 = vpack.c.bf16 %v1260_v18, %v1260_v18 }
 0xbf9   : > { %v1238_v25 = vpop.f32.mrf.mxu1  ;;  %v1270_v34 = vunpack.c.l.b16 %v1264_v16 }
 0xbfa   : > { %v3423_v56 = vpop.eup %3422  ;;  %v1239_v28 = vadd.f32 %v4272_v59, %v1238_v25 }
 0xbfb   : > { %v1249_v36 = vmul.f32 %v3423_v56, %v4279_v7  ;;  %v1271_v37 = vpack.c.b16 %v1270_v34, %v1269_v1  ;;  %v1257_v39 = vmul.f32 %v3423_v56, %v4238_v52 }
 0xbfc   : > { %3424 = vtanh.f32 %v1239_v28 }
 0xbfd   : > { %v1253_v38 = vadd.f32 %v1249_v36, %v1158_v35  ;;  %1280 = vmatpush.bf16.msrb.mxu2 %v1271_v37  ;;  %v1261_v43 = vadd.f32 %v1257_v39, %v4211_v10 }
 0xbff   : > { %v1265_v23 = vpack.c.bf16 %v1261_v43, %v1261_v43 }
 0xc00   : > { %3142 = vmatmul.msk.bf16.vlgmr.msrb.gmra.mxu2 %vm331_vm1, %v4248_v44 }
 0xc01   : > { %v1289_v46 = vunpack.c.l.b16 %v1265_v23 }
 0xc02   : > { %v3425_v4 = vpop.eup %3424 }
 0xc03   : > { %v1250_v41 = vmul.f32 %v3425_v4, %v4279_v7  ;;  %v1258_v45 = vmul.f32 %v3425_v4, %v4238_v52 }
 0xc05   : > { %v1254_v12 = vadd.f32 %v1250_v41, %v1159_v40  ;;  %v1262_v6 = vadd.f32 %v1258_v45, %v4219_v19 }
 0xc07   : > { %v1266_v5 = vpack.c.bf16 %v1262_v6, %v1262_v6 }
 0xc09   : > { %v1290_v48 = vunpack.c.l.b16 %v1266_v5 }
 0xc0b   : > { %v1291_v8 = vpack.c.b16 %v1290_v48, %v1289_v46 }
 0xc0d   : > { %1300 = vmatpush.bf16.msra.mxu0 %v1291_v8 }
 0xc10   : > { %3143 = vmatmul.msk.bf16.vlgmr.msra.gmra.mxu0 %vm331_vm1, %v4248_v44 }
 0xc83   : > { %v1282_v49 = vpop.f32.mrf.mxu2 }
 0xc8b   : > { %v1284_v47 = vpop.f32.mrf.mxu2 }
 0xc8c   : > { %v1307_v50 = vpack.c.bf16 %v1284_v47, %v1282_v49 }
 0xc8d   : > { %v1302_v3 = vpop.f32.mrf.mxu0 }
 0xc8e   : > { %3144 = vmatmul.msk.bf16.vlgmr.msra.gmra.mxu3 %vm310_vm0, %v1307_v50 }
 0xc8f   : > { %1690 = vmatpush.bf16.msra.mxu3 %v4261_v54 }
 0xc93   : > { %1691 = vmatpush.bf16.msra.mxu3 %v4264_v55 }
 0xc95   : > { %v1304_v52 = vpop.f32.mrf.mxu0 }
 0xc96   : > { %v1308_v53 = vpack.c.bf16 %v1304_v52, %v1302_v3 }
 0xc9e   : > { %3145 = vmatmul.msk.bf16.gmra.mxu3 %vm310_vm0, %v1308_v53 }
 0xd11   : > { %v1324_v31 = vpop.f32.mrf.mxu3 }
 0xd12   : > { %v1325_v57 = vadd.f32 %v4272_v59, %v1324_v31 }
 0xd14   : > { %3426 = vtanh.f32 %v1325_v57 }
 0xd19   : > { %v1326_v58 = vpop.f32.mrf.mxu3 }
 0xd1a   : > { %v3427_v60 = vpop.eup %3426  ;;  %v1327_v9 = vadd.f32 %v4272_v59, %v1326_v58 }
 0xd1b   : > { %v1338_v14 = vmul.f32 %v3427_v60, %v4279_v7  ;;  %v1347_v20 = vmul.f32 %v3427_v60, %v1346_v2 }
 0xd1c   : > { %3428 = vtanh.f32 %v1327_v9 }
 0xd1d   : > { %v1342_v17 = vadd.f32 %v1338_v14, %v4284_v63  ;;  %v1351_v21 = vadd.f32 %v1347_v20, %v4193_v51 }
 0xd1f   : > { %v1355_v30 = vpack.c.bf16 %v1351_v21, %v1351_v21 }
 0xd21   : > { %v1329_v22 = vpop.f32.mrf.mxu3  ;;  %v1361_v33 = vunpack.c.l.b16 %v1355_v30 }
 0xd22   : > { %v3429_v24 = vpop.eup %3428  ;;  %v1330_v26 = vadd.f32 %v4272_v59, %v1329_v22 }
 0xd23   : > { %v1339_v62 = vmul.f32 %v3429_v24, %v4279_v7  ;;  %v1348_v27 = vmul.f32 %v3429_v24, %v1346_v2 }
 0xd24   : > { %3430 = vtanh.f32 %v1330_v26 }
 0xd25   : > { %v1343_v11 = vadd.f32 %v1339_v62, %v1252_v13  ;;  %v1352_v0 = vadd.f32 %v1348_v27, %v4200_v29 }
 0xd27   : > { %v1356_v32 = vpack.c.bf16 %v1352_v0, %v1352_v0 }
 0xd29   : > { %v1331_v18 = vpop.f32.mrf.mxu3  ;;  %v1362_v15 = vunpack.c.l.b16 %v1356_v32 }
 0xd2a   : > { %v3431_v63 = vpop.eup %3430  ;;  %v1332_v16 = vadd.f32 %v4272_v59, %v1331_v18 }
 0xd2b   : > { %v1340_v51 = vmul.f32 %v3431_v63, %v4279_v7  ;;  %v1363_v25 = vpack.c.b16 %v1362_v15, %v1361_v33  ;;  %v1349_v34 = vmul.f32 %v3431_v63, %v1346_v2 }
 0xd2c   : > { %3432 = vtanh.f32 %v1332_v16 }
 0xd2d   : > { %v1344_v1 = vadd.f32 %v1340_v51, %v1253_v38  ;;  %1372 = vmatpush.bf16.msra.mxu2 %v1363_v25  ;;  %v1353_v29 = vadd.f32 %v1349_v34, %v4211_v10  ;;  %v4384_v25 = vstv %s1529_s17 }
 0xd2f   : > { %v1357_v37 = vpack.c.bf16 %v1353_v29, %v1353_v29 }
 0xd30   : > { %3146 = vmatmul.msk.bf16.vlgmr.msra.gmra.mxu2 %vm331_vm1, %v4248_v44 }
 0xd31   : > { %v1381_v42 = vunpack.c.l.b16 %v1357_v37 }
 0xd32   : > { %v3433_v13 = vpop.eup %3432 }
 0xd33   : > { %v1341_v56 = vmul.f32 %v3433_v13, %v4279_v7  ;;  %v1350_v28 = vmul.f32 %v3433_v13, %v1346_v2 }
 0xd35   : > { %v1345_v35 = vadd.f32 %v1341_v56, %v1254_v12  ;;  %v1354_v36 = vadd.f32 %v1350_v28, %v4219_v19 }
 0xd37   : > { %v1358_v39 = vpack.c.bf16 %v1354_v36, %v1354_v36 }
 0xd39   : > { %v1382_v43 = vunpack.c.l.b16 %v1358_v39 }
 0xd3b   : > { %v1383_v4 = vpack.c.b16 %v1382_v43, %v1381_v42 }
 0xd3d   : > { %1392 = vmatpush.bf16.msrb.mxu0 %v1383_v4 }
 0xd40   : > { %3147 = vmatmul.msk.bf16.vlgmr.msrb.gmra.mxu0 %vm331_vm1, %v4248_v44 }
 0xdb3   : > { %v1374_v38 = vpop.f32.mrf.mxu2 }
 0xdbb   : > { %v1376_v40 = vpop.f32.mrf.mxu2 }
 0xdbc   : > { %v1399_v41 = vpack.c.bf16 %v1376_v40, %v1374_v38 }
 0xdbd   : > { %v1394_v10 = vpop.f32.mrf.mxu0 }
 0xdbe   : > { %3148 = vmatmul.msk.bf16.vlgmr.msrb.gmra.mxu1 %vm310_vm0, %v1399_v41 }
 0xdbf   : > { %1782 = vmatpush.bf16.msrb.mxu1 %v4261_v54 }
 0xdc3   : > { %1783 = vmatpush.bf16.msrb.mxu1 %v4264_v55 }
 0xdc5   : > { %v1396_v19 = vpop.f32.mrf.mxu0 }
 0xdc6   : > { %v1400_v7 = vpack.c.bf16 %v1396_v19, %v1394_v10 }
 0xdce   : > { %3149 = vmatmul.msk.bf16.gmra.mxu1 %vm310_vm0, %v1400_v7 }
 0xe3b   : > { %v1416_v45 = vpop.f32.mrf.mxu1 }
 0xe3c   : > { %v1417_v12 = vadd.f32 %v4272_v59, %v1416_v45 }
 0xe3e   : > { %3434 = vtanh.f32 %v1417_v12 }
 0xe43   : > { %v1418_v6 = vpop.f32.mrf.mxu1 }
 0xe44   : > { %v3435_v23 = vpop.eup %3434  ;;  %v1419_v5 = vadd.f32 %v4272_v59, %v1418_v6 }
 0xe45   : > { %v1430_v46 = vmul.f32 %v3435_v23, %v4275_v61 }
 0xe46   : > { %3436 = vtanh.f32 %v1419_v5 }
 0xe47   : > { %v4339_v48 = vadd.f32 %v1430_v46, %v1342_v17 }
 0xe49   : > { %3150 = vst.msk [vmem:[%s3917_s24 + $0x60] sm:$0xff] %vm310_vm0, %v4339_v48  ;;  %v1444_v52 = vpack.c.bf16 %v4339_v48, %v4339_v48 }
 0xe4b   : > { %v1421_v8 = vpop.f32.mrf.mxu1  ;;  %v1450_v57 = vunpack.c.l.b16 %v1444_v52 }
 0xe4c   : > { %v3437_v49 = vpop.eup %3436  ;;  %v1422_v47 = vadd.f32 %v4272_v59, %v1421_v8 }
 0xe4d   : > { %v1431_v50 = vmul.f32 %v3437_v49, %v4275_v61 }
 0xe4e   : > { %3438 = vtanh.f32 %v1422_v47 }
 0xe4f   : > { %v4346_v3 = vadd.f32 %v1431_v50, %v1343_v11 }
 0xe51   : > { %3151 = vst.msk [vmem:[%s3917_s24 + $0x68] sm:$0xff] %vm310_vm0, %v4346_v3  ;;  %v1445_v53 = vpack.c.bf16 %v4346_v3, %v4346_v3 }
 0xe53   : > { %v1423_v31 = vpop.f32.mrf.mxu1  ;;  %v1451_v58 = vunpack.c.l.b16 %v1445_v53 }
 0xe54   : > { %v3439_v60 = vpop.eup %3438  ;;  %v1424_v2 = vadd.f32 %v4272_v59, %v1423_v31 }
 0xe55   : > { %v1432_v9 = vmul.f32 %v3439_v60, %v4275_v61  ;;  %v1452_v14 = vpack.c.b16 %v1451_v58, %v1450_v57  ;;  %v4407_v60 = vstv %s1519_s8 }
 0xe56   : > { %3440 = vtanh.f32 %v1424_v2 }
 0xe57   : > { %v4357_v17 = vadd.f32 %v1432_v9, %v1344_v1  ;;  %1461 = vmatpush.bf16.msrb.mxu2 %v1452_v14  ;;  %v4411_v9 = vstv %s1614_s9 }
 0xe59   : > { %3152 = vst.msk [vmem:[%s3917_s24 + $0x70] sm:$0xff] %vm310_vm0, %v4357_v17  ;;  %v1446_v24 = vpack.c.bf16 %v4357_v17, %v4357_v17 }
 0xe5a   : > { %3155 = vmatmul.msk.bf16.vlgmr.msrb.gmra.mxu2 %vm331_vm1, %v4248_v44 }
 0xe5b   : > { %v1470_v62 = vunpack.c.l.b16 %v1446_v24 }
 0xe5c   : > { %v3441_v20 = vpop.eup %3440 }
 0xe5d   : > { %v1433_v21 = vmul.f32 %v3441_v20, %v4275_v61 }
 0xe5f   : > { %v4365_v22 = vadd.f32 %v1433_v21, %v1345_v35 }
 0xe61   : > { %3153 = vst.msk [vmem:[%s3917_s24 + $0x78] sm:$0xff] %vm310_vm0, %v4365_v22  ;;  %v1447_v26 = vpack.c.bf16 %v4365_v22, %v4365_v22 }
 0xe63   : > { %v1471_v27 = vunpack.c.l.b16 %v1447_v26 }
 0xe65   : > { %v1472_v11 = vpack.c.b16 %v1471_v27, %v1470_v62 }
 0xe67   : > { %1481 = vmatpush.bf16.msra.mxu0 %v1472_v11 }
 0xe6a   : > { %3156 = vmatmul.msk.bf16.vlgmr.msra.gmra.mxu0 %vm331_vm1, %v4248_v44 }
 0xedd   : > { %v1463_v0 = vpop.f32.mrf.mxu2 }
 0xee5   : > { %v1465_v61 = vpop.f32.mrf.mxu2 }
 0xee6   : > { %v1488_v30 = vpack.c.bf16 %v1465_v61, %v1463_v0 }
 0xee7   : > { %v1483_v32 = vpop.f32.mrf.mxu0 }
 0xee8   : > { %3157 = vmatmul.msk.bf16.vlgmr.msrb.gmra.mxu3 %vm310_vm0, %v1488_v30 }
 0xee9   : > { %1871 = vmatpush.bf16.msrb.mxu3 %v4261_v54 }
 0xeed   : > { %1872 = vmatpush.bf16.msrb.mxu3 %v4264_v55 }
 0xeef   : > { %v1485_v18 = vpop.f32.mrf.mxu0 }
 0xef0   : > { %v1489_v33 = vpack.c.bf16 %v1485_v18, %v1483_v32 }
 0xef8   : > { %3158 = vmatmul.msk.bf16.gmra.mxu3 %vm310_vm0, %v1489_v33 }
 0xf6b   : > { %v1505_v15 = vpop.f32.mrf.mxu3 }
 0xf6c   : > { %v1506_v63 = vadd.f32 %v4272_v59, %v1505_v15 }
 0xf6e   : > { %3442 = vtanh.f32 %v1506_v63 }
 0xf73   : > { %v1507_v16 = vpop.f32.mrf.mxu3 }
 0xf74   : > { %v3443_v51 = vpop.eup %3442  ;;  %v1508_v1 = vadd.f32 %v4272_v59, %v1507_v16 }
 0xf75   : > { %v1531_v34 = vmul.f32 %v3443_v51, %v4384_v25  ;;  %v1521_v2 = vmul.f32 %v3443_v51, %v4407_v60 }
 0xf76   : > { %3444 = vtanh.f32 %v1508_v1 }
 0xf77   : > { %v1535_v29 = vadd.f32 %v1531_v34, %v4339_v48  ;;  %v1525_v24 = vadd.f32 %v1521_v2, %v4339_v48  ;;  %v1715_v2 = vstv %s4380_s16  ;;  %s4788_s16 = sld [smem:[#allocation2 + $0x7]] }
 0xf79   : > { %v1539_v37 = vpack.c.bf16 %v1535_v29, %v1535_v29 }
 0xf7b   : > { %v1510_v13 = vpop.f32.mrf.mxu3  ;;  %v1545_v43 = vunpack.c.l.b16 %v1539_v37 }
 0xf7c   : > { %v3445_v56 = vpop.eup %3444  ;;  %v1511_v28 = vadd.f32 %v4272_v59, %v1510_v13 }
 0xf7d   : > { %v1532_v35 = vmul.f32 %v3445_v56, %v4384_v25  ;;  %v1522_v11 = vmul.f32 %v3445_v56, %v4407_v60  ;;  %s2636_s17 = smul.f32 0.5, %s4788_s16 }
 0xf7e   : > { %3446 = vtanh.f32 %v1511_v28  ;;  %s2626_s8 = smul.f32 0.16666667, %s4788_s16 }
 0xf7f   : > { %v1536_v36 = vadd.f32 %v1532_v35, %v4346_v3  ;;  %v1526_v18 = vadd.f32 %v1522_v11, %v4346_v3  ;;  %s2721_s9 = smul.f32 0.33333334, %s4788_s16 }
 0xf81   : > { %v1540_v39 = vpack.c.bf16 %v1536_v36, %v1536_v36 }
 0xf83   : > { %v1512_v42 = vpop.f32.mrf.mxu3  ;;  %v1546_v4 = vunpack.c.l.b16 %v1540_v39 }
 0xf84   : > { %v3447_v38 = vpop.eup %3446  ;;  %v1513_v40 = vadd.f32 %v4272_v59, %v1512_v42 }
 0xf85   : > { %v1547_v41 = vpack.c.b16 %v1546_v4, %v1545_v43  ;;  %v1533_v10 = vmul.f32 %v3447_v38, %v4384_v25  ;;  %v1523_v1 = vmul.f32 %v3447_v38, %v4407_v60 }
 0xf86   : > { %3448 = vtanh.f32 %v1513_v40 }
 0xf87   : > { %1556 = vmatpush.bf16.msra.mxu2 %v1547_v41  ;;  %v1537_v19 = vadd.f32 %v1533_v10, %v4357_v17  ;;  %v1527_v36 = vadd.f32 %v1523_v1, %v4357_v17 }
 0xf89   : > { %v1541_v6 = vpack.c.bf16 %v1537_v19, %v1537_v19 }
 0xf8a   : > { %3159 = vmatmul.msk.bf16.vlgmr.msra.gmra.mxu2 %vm331_vm1, %v4248_v44 }
 0xf8b   : > { %v1565_v5 = vunpack.c.l.b16 %v1541_v6 }
 0xf8c   : > { %v3449_v7 = vpop.eup %3448 }
 0xf8d   : > { %v1534_v45 = vmul.f32 %v3449_v7, %v4384_v25  ;;  %v1524_v4 = vmul.f32 %v3449_v7, %v4407_v60 }
 0xf8f   : > { %v1538_v12 = vadd.f32 %v1534_v45, %v4365_v22  ;;  %v1528_v41 = vadd.f32 %v1524_v4, %v4365_v22 }
 0xf91   : > { %v1542_v23 = vpack.c.bf16 %v1538_v12, %v1538_v12 }
 0xf93   : > { %v1566_v46 = vunpack.c.l.b16 %v1542_v23 }
 0xf95   : > { %v1567_v8 = vpack.c.b16 %v1566_v46, %v1565_v5 }
 0xf97   : > { %1576 = vmatpush.bf16.msrb.mxu0 %v1567_v8 }
 0xf9a   : > { %3160 = vmatmul.msk.bf16.vlgmr.msrb.gmra.mxu0 %vm331_vm1, %v4248_v44 }
0x100d   : > { %v1558_v49 = vpop.f32.mrf.mxu2 }
0x1015   : > { %v1560_v47 = vpop.f32.mrf.mxu2 }
0x1016   : > { %v1583_v50 = vpack.c.bf16 %v1560_v47, %v1558_v49 }
0x1017   : > { %v1578_v52 = vpop.f32.mrf.mxu0 }
0x1018   : > { %3161 = vmatmul.msk.bf16.vlgmr.msra.gmra.mxu1 %vm310_vm0, %v1583_v50 }
0x1019   : > { %1966 = vmatpush.bf16.msra.mxu1 %v4261_v54 }
0x101d   : > { %1967 = vmatpush.bf16.msra.mxu1 %v4264_v55 }
0x101f   : > { %v1580_v53 = vpop.f32.mrf.mxu0 }
0x1020   : > { %v1584_v31 = vpack.c.bf16 %v1580_v53, %v1578_v52 }
0x1028   : > { %3162 = vmatmul.msk.bf16.gmra.mxu1 %vm310_vm0, %v1584_v31 }
0x1095   : > { %v1600_v57 = vpop.f32.mrf.mxu1 }
0x1096   : > { %v1601_v58 = vadd.f32 %v4272_v59, %v1600_v57 }
0x1098   : > { %3450 = vtanh.f32 %v1601_v58 }
0x109d   : > { %v1602_v14 = vpop.f32.mrf.mxu1 }
0x109e   : > { %v3451_v20 = vpop.eup %3450  ;;  %v1603_v21 = vadd.f32 %v4272_v59, %v1602_v14 }
0x109f   : > { %v1616_v26 = vmul.f32 %v3451_v20, %v4411_v9  ;;  %v1624_v27 = vmul.f32 %v3451_v20, %v4384_v25 }
0x10a0   : > { %3452 = vtanh.f32 %v1603_v21 }
0x10a1   : > { %v4416_v62 = vadd.f32 %v1616_v26, %v1525_v24  ;;  %v1628_v0 = vadd.f32 %v1624_v27, %v4339_v48 }
0x10a3   : > { %v1632_v51 = vpack.c.bf16 %v1628_v0, %v1628_v0 }
0x10a5   : > { %v1605_v61 = vpop.f32.mrf.mxu1  ;;  %v1638_v13 = vunpack.c.l.b16 %v1632_v51 }
0x10a6   : > { %v3453_v30 = vpop.eup %3452  ;;  %v1606_v32 = vadd.f32 %v4272_v59, %v1605_v61 }
0x10a7   : > { %v1617_v33 = vmul.f32 %v3453_v30, %v4411_v9  ;;  %v1625_v15 = vmul.f32 %v3453_v30, %v4384_v25 }
0x10a8   : > { %3454 = vtanh.f32 %v1606_v32 }
0x10a9   : > { %v1621_v63 = vadd.f32 %v1617_v33, %v1526_v18  ;;  %v1629_v16 = vadd.f32 %v1625_v15, %v4346_v3 }
0x10ab   : > { %v1633_v34 = vpack.c.bf16 %v1629_v16, %v1629_v16 }
0x10ad   : > { %v1607_v29 = vpop.f32.mrf.mxu1  ;;  %v1639_v56 = vunpack.c.l.b16 %v1633_v34 }
0x10ae   : > { %v3455_v28 = vpop.eup %3454  ;;  %v1608_v35 = vadd.f32 %v4272_v59, %v1607_v29 }
0x10af   : > { %v1618_v37 = vmul.f32 %v3455_v28, %v4411_v9  ;;  %v1640_v39 = vpack.c.b16 %v1639_v56, %v1638_v13  ;;  %v1626_v43 = vmul.f32 %v3455_v28, %v4384_v25 }
0x10b0   : > { %3456 = vtanh.f32 %v1608_v35 }
0x10b1   : > { %v1622_v42 = vadd.f32 %v1618_v37, %v1527_v36  ;;  %1649 = vmatpush.bf16.msrb.mxu2 %v1640_v39  ;;  %v1630_v38 = vadd.f32 %v1626_v43, %v4357_v17 }
0x10b3   : > { %v1634_v6 = vpack.c.bf16 %v1630_v38, %v1630_v38 }
0x10b4   : > { %3163 = vmatmul.msk.bf16.vlgmr.msrb.gmra.mxu2 %vm331_vm1, %v4248_v44 }
0x10b5   : > { %v1658_v5 = vunpack.c.l.b16 %v1634_v6 }
0x10b6   : > { %v3457_v40 = vpop.eup %3456 }
0x10b7   : > { %v1619_v10 = vmul.f32 %v3457_v40, %v4411_v9  ;;  %v1627_v19 = vmul.f32 %v3457_v40, %v4384_v25 }
0x10b9   : > { %v1623_v45 = vadd.f32 %v1619_v10, %v1528_v41  ;;  %v1631_v12 = vadd.f32 %v1627_v19, %v4365_v22 }
0x10bb   : > { %v1635_v23 = vpack.c.bf16 %v1631_v12, %v1631_v12 }
0x10bd   : > { %v1659_v46 = vunpack.c.l.b16 %v1635_v23 }
0x10bf   : > { %v1660_v7 = vpack.c.b16 %v1659_v46, %v1658_v5 }
0x10c1   : > { %1669 = vmatpush.bf16.msra.mxu0 %v1660_v7 }
0x10c4   : > { %3164 = vmatmul.msk.bf16.vlgmr.msra.gmra.mxu0 %vm331_vm1, %v4248_v44 }
0x1137   : > { %v1651_v8 = vpop.f32.mrf.mxu2 }
0x113f   : > { %v1653_v49 = vpop.f32.mrf.mxu2 }
0x1140   : > { %v1676_v47 = vpack.c.bf16 %v1653_v49, %v1651_v8 }
0x1141   : > { %v1671_v50 = vpop.f32.mrf.mxu0 }
0x1142   : > { %3165 = vmatmul.msk.bf16.vlgmr.msra.gmra.mxu3 %vm310_vm0, %v1676_v47 }
0x1143   : > { %2059 = vmatpush.bf16.msra.mxu3 %v4261_v54 }
0x1147   : > { %2060 = vmatpush.bf16.msra.mxu3 %v4264_v55 }
0x1149   : > { %v1673_v25 = vpop.f32.mrf.mxu0 }
0x114a   : > { %v1677_v52 = vpack.c.bf16 %v1673_v25, %v1671_v50 }
0x1152   : > { %3166 = vmatmul.msk.bf16.gmra.mxu3 %vm310_vm0, %v1677_v52 }
0x11c5   : > { %v1693_v53 = vpop.f32.mrf.mxu3 }
0x11c6   : > { %v1694_v31 = vadd.f32 %v4272_v59, %v1693_v53 }
0x11c8   : > { %3458 = vtanh.f32 %v1694_v31 }
0x11cd   : > { %v1695_v57 = vpop.f32.mrf.mxu3 }
0x11ce   : > { %v3459_v58 = vpop.eup %3458  ;;  %v1696_v14 = vadd.f32 %v4272_v59, %v1695_v57 }
0x11cf   : > { %v1707_v20 = vmul.f32 %v3459_v58, %v4411_v9  ;;  %v1716_v24 = vmul.f32 %v3459_v58, %v1715_v2 }
0x11d0   : > { %3460 = vtanh.f32 %v1696_v14 }
0x11d1   : > { %v1711_v21 = vadd.f32 %v1707_v20, %v4416_v62  ;;  %v1720_v26 = vadd.f32 %v1716_v24, %v4339_v48 }
0x11d3   : > { %v1724_v33 = vpack.c.bf16 %v1720_v26, %v1720_v26 }
0x11d5   : > { %v1698_v27 = vpop.f32.mrf.mxu3  ;;  %v1730_v51 = vunpack.c.l.b16 %v1724_v33 }
0x11d6   : > { %v3461_v11 = vpop.eup %3460  ;;  %v1699_v0 = vadd.f32 %v4272_v59, %v1698_v27 }
0x11d7   : > { %v1708_v61 = vmul.f32 %v3461_v11, %v4411_v9  ;;  %v1717_v30 = vmul.f32 %v3461_v11, %v1715_v2 }
0x11d8   : > { %3462 = vtanh.f32 %v1699_v0 }
0x11d9   : > { %v1712_v32 = vadd.f32 %v1708_v61, %v1621_v63  ;;  %v1721_v18 = vadd.f32 %v1717_v30, %v4346_v3 }
0x11db   : > { %v1725_v15 = vpack.c.bf16 %v1721_v18, %v1721_v18 }
0x11dd   : > { %v1700_v16 = vpop.f32.mrf.mxu3  ;;  %v1731_v1 = vunpack.c.l.b16 %v1725_v15 }
0x11de   : > { %v3463_v62 = vpop.eup %3462  ;;  %v1701_v34 = vadd.f32 %v4272_v59, %v1700_v16 }
0x11df   : > { %v1709_v48 = vmul.f32 %v3463_v62, %v4411_v9  ;;  %v1732_v29 = vpack.c.b16 %v1731_v1, %v1730_v51  ;;  %v1718_v56 = vmul.f32 %v3463_v62, %v1715_v2 }
0x11e0   : > { %3464 = vtanh.f32 %v1701_v34 }
0x11e1   : > { %v1713_v13 = vadd.f32 %v1709_v48, %v1622_v42  ;;  %1741 = vmatpush.bf16.msra.mxu2 %v1732_v29  ;;  %v1722_v3 = vadd.f32 %v1718_v56, %v4357_v17  ;;  %v4515_v29 = vstv %s1898_s11 }
0x11e3   : > { %v1726_v39 = vpack.c.bf16 %v1722_v3, %v1722_v3 }
0x11e4   : > { %3167 = vmatmul.msk.bf16.vlgmr.msra.gmra.mxu2 %vm331_vm1, %v4248_v44 }
0x11e5   : > { %v1750_v4 = vunpack.c.l.b16 %v1726_v39 }
0x11e6   : > { %v3465_v63 = vpop.eup %3464 }
0x11e7   : > { %v1710_v28 = vmul.f32 %v3465_v63, %v4411_v9  ;;  %v1719_v35 = vmul.f32 %v3465_v63, %v1715_v2 }
0x11e9   : > { %v1714_v36 = vadd.f32 %v1710_v28, %v1623_v45  ;;  %v1723_v37 = vadd.f32 %v1719_v35, %v4365_v22 }
0x11eb   : > { %v1727_v43 = vpack.c.bf16 %v1723_v37, %v1723_v37 }
0x11ed   : > { %v1751_v38 = vunpack.c.l.b16 %v1727_v43 }
0x11ef   : > { %v1752_v40 = vpack.c.b16 %v1751_v38, %v1750_v4 }
0x11f1   : > { %1761 = vmatpush.bf16.msrb.mxu0 %v1752_v40 }
0x11f4   : > { %3168 = vmatmul.msk.bf16.vlgmr.msrb.gmra.mxu0 %vm331_vm1, %v4248_v44 }
0x1267   : > { %v1743_v42 = vpop.f32.mrf.mxu2 }
0x126f   : > { %v1745_v41 = vpop.f32.mrf.mxu2 }
0x1270   : > { %v1768_v10 = vpack.c.bf16 %v1745_v41, %v1743_v42 }
0x1271   : > { %v1763_v17 = vpop.f32.mrf.mxu0 }
0x1272   : > { %3169 = vmatmul.msk.bf16.vlgmr.msrb.gmra.mxu1 %vm310_vm0, %v1768_v10 }
0x1273   : > { %2151 = vmatpush.bf16.msrb.mxu1 %v4261_v54 }
0x1277   : > { %2152 = vmatpush.bf16.msrb.mxu1 %v4264_v55 }
0x1279   : > { %v1765_v22 = vpop.f32.mrf.mxu0 }
0x127a   : > { %v1769_v9 = vpack.c.bf16 %v1765_v22, %v1763_v17 }
0x1282   : > { %3170 = vmatmul.msk.bf16.gmra.mxu1 %vm310_vm0, %v1769_v9 }
0x12ef   : > { %v1785_v19 = vpop.f32.mrf.mxu1 }
0x12f0   : > { %v1786_v45 = vadd.f32 %v4272_v59, %v1785_v19 }
0x12f2   : > { %3466 = vtanh.f32 %v1786_v45 }
0x12f7   : > { %v1787_v12 = vpop.f32.mrf.mxu1 }
0x12f8   : > { %v3467_v6 = vpop.eup %3466  ;;  %v1788_v23 = vadd.f32 %v4272_v59, %v1787_v12 }
0x12f9   : > { %v1799_v5 = vmul.f32 %v3467_v6, %v4407_v60 }
0x12fa   : > { %3468 = vtanh.f32 %v1788_v23 }
0x12fb   : > { %v4470_v46 = vadd.f32 %v1799_v5, %v1711_v21 }
0x12fd   : > { %3171 = vst.msk [vmem:[%s3917_s24 + $0x80] sm:$0xff] %vm310_vm0, %v4470_v46  ;;  %v1813_v25 = vpack.c.bf16 %v4470_v46, %v4470_v46 }
0x12ff   : > { %v1790_v7 = vpop.f32.mrf.mxu1  ;;  %v1819_v31 = vunpack.c.l.b16 %v1813_v25 }
0x1300   : > { %v3469_v8 = vpop.eup %3468  ;;  %v1791_v49 = vadd.f32 %v4272_v59, %v1790_v7 }
0x1301   : > { %v1800_v47 = vmul.f32 %v3469_v8, %v4407_v60 }
0x1302   : > { %3470 = vtanh.f32 %v1791_v49 }
0x1303   : > { %v4477_v50 = vadd.f32 %v1800_v47, %v1712_v32 }
0x1305   : > { %3172 = vst.msk [vmem:[%s3917_s24 + $0x88] sm:$0xff] %vm310_vm0, %v4477_v50  ;;  %v1814_v52 = vpack.c.bf16 %v4477_v50, %v4477_v50 }
0x1307   : > { %v1792_v53 = vpop.f32.mrf.mxu1  ;;  %v1820_v57 = vunpack.c.l.b16 %v1814_v52 }
0x1308   : > { %v3471_v58 = vpop.eup %3470  ;;  %v1793_v2 = vadd.f32 %v4272_v59, %v1792_v53 }
0x1309   : > { %v1801_v14 = vmul.f32 %v3471_v58, %v4407_v60  ;;  %v1821_v20 = vpack.c.b16 %v1820_v57, %v1819_v31 }
0x130a   : > { %3472 = vtanh.f32 %v1793_v2  ;;  %v4542_v2 = vstv %s1983_s12 }
0x130b   : > { %v4488_v21 = vadd.f32 %v1801_v14, %v1713_v13  ;;  %1830 = vmatpush.bf16.msrb.mxu2 %v1821_v20 }
0x130d   : > { %3173 = vst.msk [vmem:[%s3917_s24 + $0x90] sm:$0xff] %vm310_vm0, %v4488_v21  ;;  %v1815_v11 = vpack.c.bf16 %v4488_v21, %v4488_v21 }
0x130e   : > { %3176 = vmatmul.msk.bf16.vlgmr.msrb.gmra.mxu2 %vm331_vm1, %v4248_v44 }
0x130f   : > { %v1839_v61 = vunpack.c.l.b16 %v1815_v11 }
0x1310   : > { %v3473_v24 = vpop.eup %3472 }
0x1311   : > { %v1802_v26 = vmul.f32 %v3473_v24, %v4407_v60 }
0x1313   : > { %v4496_v27 = vadd.f32 %v1802_v26, %v1714_v36 }
0x1315   : > { %3174 = vst.msk [vmem:[%s3917_s24 + $0x98] sm:$0xff] %vm310_vm0, %v4496_v27  ;;  %v1816_v0 = vpack.c.bf16 %v4496_v27, %v4496_v27 }
0x1317   : > { %v1840_v30 = vunpack.c.l.b16 %v1816_v0 }
0x1319   : > { %v1841_v32 = vpack.c.b16 %v1840_v30, %v1839_v61 }
0x131b   : > { %1850 = vmatpush.bf16.msra.mxu0 %v1841_v32 }
0x131e   : > { %3177 = vmatmul.msk.bf16.vlgmr.msra.gmra.mxu0 %vm331_vm1, %v4248_v44 }
0x1391   : > { %v1832_v18 = vpop.f32.mrf.mxu2 }
0x1399   : > { %v1834_v60 = vpop.f32.mrf.mxu2 }
0x139a   : > { %v1857_v33 = vpack.c.bf16 %v1834_v60, %v1832_v18 }
0x139b   : > { %v1852_v15 = vpop.f32.mrf.mxu0 }
0x139c   : > { %3178 = vmatmul.msk.bf16.vlgmr.msrb.gmra.mxu3 %vm310_vm0, %v1857_v33 }
0x139d   : > { %2240 = vmatpush.bf16.msrb.mxu3 %v4261_v54 }
0x13a1   : > { %2241 = vmatpush.bf16.msrb.mxu3 %v4264_v55 }
0x13a3   : > { %v1854_v16 = vpop.f32.mrf.mxu0 }
0x13a4   : > { %v1858_v51 = vpack.c.bf16 %v1854_v16, %v1852_v15 }
0x13ac   : > { %3179 = vmatmul.msk.bf16.gmra.mxu3 %vm310_vm0, %v1858_v51 }
0x141f   : > { %v1874_v1 = vpop.f32.mrf.mxu3 }
0x1420   : > { %v1875_v62 = vadd.f32 %v4272_v59, %v1874_v1 }
0x1422   : > { %3474 = vtanh.f32 %v1875_v62 }
0x1427   : > { %v1876_v34 = vpop.f32.mrf.mxu3 }
0x1428   : > { %v3475_v48 = vpop.eup %3474  ;;  %v1877_v13 = vadd.f32 %v4272_v59, %v1876_v34 }
0x1429   : > { %v1900_v56 = vmul.f32 %v3475_v48, %v4515_v29 }
0x142a   : > { %3476 = vtanh.f32 %v1877_v13 }
0x142b   : > { %v1904_v3 = vadd.f32 %v1900_v56, %v4470_v46 }
0x142d   : > { %v1908_v39 = vpack.c.bf16 %v1904_v3, %v1904_v3 }
0x142f   : > { %v1879_v63 = vpop.f32.mrf.mxu3  ;;  %v1914_v38 = vunpack.c.l.b16 %v1908_v39 }
0x1430   : > { %v3477_v28 = vpop.eup %3476  ;;  %v1880_v35 = vadd.f32 %v4272_v59, %v1879_v63 }
0x1431   : > { %v1901_v36 = vmul.f32 %v3477_v28, %v4515_v29 }
0x1432   : > { %3478 = vtanh.f32 %v1880_v35 }
0x1433   : > { %v1905_v37 = vadd.f32 %v1901_v36, %v4477_v50 }
0x1435   : > { %v1909_v43 = vpack.c.bf16 %v1905_v37, %v1905_v37 }
0x1437   : > { %v1881_v4 = vpop.f32.mrf.mxu3  ;;  %v1915_v40 = vunpack.c.l.b16 %v1909_v43 }
0x1438   : > { %v3479_v42 = vpop.eup %3478  ;;  %v1882_v41 = vadd.f32 %v4272_v59, %v1881_v4  ;;  %v4567_v4 = vld [vmem:[#allocation7] sm:$0xff] }
0x1439   : > { %v1916_v10 = vpack.c.b16 %v1915_v40, %v1914_v38  ;;  %v1902_v17 = vmul.f32 %v3479_v42, %v4515_v29 }
0x143a   : > { %3480 = vtanh.f32 %v1882_v41 }
0x143b   : > { %1925 = vmatpush.bf16.msra.mxu2 %v1916_v10  ;;  %v1906_v22 = vadd.f32 %v1902_v17, %v4488_v21 }
0x143d   : > { %v1910_v12 = vpack.c.bf16 %v1906_v22, %v1906_v22 }
0x143e   : > { %3180 = vmatmul.msk.bf16.vlgmr.msra.gmra.mxu2 %vm331_vm1, %v4248_v44 }
0x143f   : > { %v1934_v23 = vunpack.c.l.b16 %v1910_v12 }
0x1440   : > { %v3481_v9 = vpop.eup %3480 }
0x1441   : > { %v1903_v19 = vmul.f32 %v3481_v9, %v4515_v29 }
0x1443   : > { %v1907_v45 = vadd.f32 %v1903_v19, %v4496_v27 }
0x1445   : > { %v1911_v6 = vpack.c.bf16 %v1907_v45, %v1907_v45 }
0x1447   : > { %v1935_v5 = vunpack.c.l.b16 %v1911_v6 }
0x1449   : > { %v1936_v7 = vpack.c.b16 %v1935_v5, %v1934_v23 }
0x144b   : > { %1945 = vmatpush.bf16.msrb.mxu0 %v1936_v7 }
0x144e   : > { %3181 = vmatmul.msk.bf16.vlgmr.msrb.gmra.mxu0 %vm331_vm1, %v4248_v44  ;;  %v4538_v44 = vstv %s1888_s7  ;;  %s2920_s7 = scalar_lea.sflag [#allocation4], %s3892_s14 }
0x144f   : > { %v1890_v58 = vmul.f32 %v3475_v48, %v4538_v44  ;;  %v1891_v0 = vmul.f32 %v3477_v28, %v4538_v44  ;;  %v1892_v62 = vmul.f32 %v3479_v42, %v4538_v44  ;;  %v1893_v43 = vmul.f32 %v3481_v9, %v4538_v44 }
0x1451   : > { %v1894_v20 = vadd.f32 %v1890_v58, %v4470_v46  ;;  %v1895_v60 = vadd.f32 %v1891_v0, %v4477_v50  ;;  %v1896_v28 = vadd.f32 %v1892_v62, %v4488_v21  ;;  %v1897_v40 = vadd.f32 %v1893_v43, %v4496_v27 }
0x1452   : > { %v2084_v58 = vstv %s4511_s10 }
0x14c1   : > { %v1927_v8 = vpop.f32.mrf.mxu2 }
0x14c9   : > { %v1929_v49 = vpop.f32.mrf.mxu2 }
0x14ca   : > { %v1952_v47 = vpack.c.bf16 %v1929_v49, %v1927_v8  ;;  %v4582_v8 = vld [vmem:[#allocation9] sm:$0xff] }
0x14cb   : > { %v1947_v25 = vpop.f32.mrf.mxu0 }
0x14cc   : > { %3182 = vmatmul.msk.bf16.vlgmr.msra.gmra.mxu1 %vm310_vm0, %v1952_v47 }
0x14cd   : > { %2335 = vmatpush.bf16.msra.mxu1 %v4261_v54 }
0x14d1   : > { %2336 = vmatpush.bf16.msra.mxu1 %v4264_v55 }
0x14d3   : > { %v1949_v52 = vpop.f32.mrf.mxu0 }
0x14d4   : > { %v1953_v53 = vpack.c.bf16 %v1949_v52, %v1947_v25  ;;  %v4589_v52 = vld [vmem:[%s4924_s4] ss:$0 sm:$0xff] }
0x14dc   : > { %3183 = vmatmul.msk.bf16.gmra.mxu1 %vm310_vm0, %v1953_v53 }
0x1549   : > { %v1969_v31 = vpop.f32.mrf.mxu1 }
0x154a   : > { %v1970_v57 = vadd.f32 %v4272_v59, %v1969_v31 }
0x154c   : > { %3482 = vtanh.f32 %v1970_v57 }
0x1551   : > { %v1971_v14 = vpop.f32.mrf.mxu1 }
0x1552   : > { %v3483_v54 = vpop.eup %3482  ;;  %v1972_v55 = vadd.f32 %v4272_v59, %v1971_v14 }
0x1553   : > { %v1985_v24 = vmul.f32 %v3483_v54, %v4542_v2  ;;  %v1993_v11 = vmul.f32 %v3483_v54, %v4515_v29 }
0x1554   : > { %3484 = vtanh.f32 %v1972_v55 }
0x1555   : > { %v4547_v26 = vadd.f32 %v1985_v24, %v1894_v20  ;;  %v1997_v61 = vadd.f32 %v1993_v11, %v4470_v46 }
0x1557   : > { %v2001_v1 = vpack.c.bf16 %v1997_v61, %v1997_v61 }
0x1559   : > { %v1974_v30 = vpop.f32.mrf.mxu1  ;;  %v2007_v13 = vunpack.c.l.b16 %v2001_v1 }
0x155a   : > { %v3485_v32 = vpop.eup %3484  ;;  %v1975_v18 = vadd.f32 %v4272_v59, %v1974_v30 }
0x155b   : > { %v1986_v33 = vmul.f32 %v3485_v32, %v4542_v2  ;;  %v1994_v15 = vmul.f32 %v3485_v32, %v4515_v29 }
0x155c   : > { %3486 = vtanh.f32 %v1975_v18 }
0x155d   : > { %v4556_v16 = vadd.f32 %v1986_v33, %v1895_v60  ;;  %v1998_v51 = vadd.f32 %v1994_v15, %v4477_v50 }
0x155f   : > { %v2002_v34 = vpack.c.bf16 %v1998_v51, %v1998_v51 }
0x1561   : > { %v1976_v48 = vpop.f32.mrf.mxu1  ;;  %v2008_v56 = vunpack.c.l.b16 %v2002_v34 }
0x1562   : > { %v3487_v3 = vpop.eup %3486  ;;  %v1977_v63 = vadd.f32 %v4272_v59, %v1976_v48 }
0x1563   : > { %v1987_v35 = vmul.f32 %v3487_v3, %v4542_v2  ;;  %v2009_v36 = vpack.c.b16 %v2008_v56, %v2007_v13  ;;  %v1995_v39 = vmul.f32 %v3487_v3, %v4515_v29 }
0x1564   : > { %3488 = vtanh.f32 %v1977_v63 }
0x1565   : > { %v4563_v37 = vadd.f32 %v1987_v35, %v1896_v28  ;;  %2018 = vmatpush.bf16.msrb.mxu2 %v2009_v36  ;;  %v1999_v59 = vadd.f32 %v1995_v39, %v4488_v21 }
0x1567   : > { %v2003_v22 = vpack.c.bf16 %v1999_v59, %v1999_v59 }
0x1568   : > { %3184 = vmatmul.msk.bf16.vlgmr.msrb.gmra.mxu2 %vm331_vm1, %v4567_v4 }
0x1569   : > { %v2027_v9 = vunpack.c.l.b16 %v2003_v22 }
0x156a   : > { %v3489_v38 = vpop.eup %3488 }
0x156b   : > { %v1988_v42 = vmul.f32 %v3489_v38, %v4542_v2  ;;  %v1996_v41 = vmul.f32 %v3489_v38, %v4515_v29  ;;  %v4579_v29 = vld [vmem:[#allocation9 + $0x8] sm:$0xff] }
0x156d   : > { %v1992_v10 = vadd.f32 %v1988_v42, %v1897_v40  ;;  %v2000_v17 = vadd.f32 %v1996_v41, %v4496_v27 }
0x156f   : > { %v2004_v19 = vpack.c.bf16 %v2000_v17, %v2000_v17 }
0x1571   : > { %v2028_v45 = vunpack.c.l.b16 %v2004_v19 }
0x1573   : > { %v2029_v12 = vpack.c.b16 %v2028_v45, %v2027_v9 }
0x1575   : > { %2038 = vmatpush.bf16.msra.mxu0 %v2029_v12 }
0x1578   : > { %3185 = vmatmul.msk.bf16.vlgmr.msra.gmra.mxu0 %vm331_vm1, %v4567_v4 }
0x15eb   : > { %v2020_v6 = vpop.f32.mrf.mxu2 }
0x15f3   : > { %v2022_v23 = vpop.f32.mrf.mxu2 }
0x15f4   : > { %v2045_v5 = vpack.c.bf16 %v2022_v23, %v2020_v6 }
0x15f5   : > { %v2040_v7 = vpop.f32.mrf.mxu0 }
0x15f6   : > { %3186 = vmatmul.msk.bf16.vlgmr.msra.gmra.mxu3 %vm310_vm0, %v2045_v5 }
0x15f7   : > { %2428 = vmatpush.bf16.msra.mxu3 %v4579_v29 }
0x15fb   : > { %2429 = vmatpush.bf16.msra.mxu3 %v4582_v8 }
0x15fd   : > { %v2042_v49 = vpop.f32.mrf.mxu0 }
0x15fe   : > { %v2046_v47 = vpack.c.bf16 %v2042_v49, %v2040_v7 }
0x1606   : > { %3187 = vmatmul.msk.bf16.gmra.mxu3 %vm310_vm0, %v2046_v47 }
0x1679   : > { %v2062_v25 = vpop.f32.mrf.mxu3 }
0x167a   : > { %v2063_v53 = vadd.f32 %v4589_v52, %v2062_v25 }
0x167c   : > { %3490 = vtanh.f32 %v2063_v53 }
0x1681   : > { %v2064_v31 = vpop.f32.mrf.mxu3 }
0x1682   : > { %v3491_v57 = vpop.eup %3490  ;;  %v2065_v14 = vadd.f32 %v4589_v52, %v2064_v31 }
0x1683   : > { %v2076_v54 = vmul.f32 %v3491_v57, %v4542_v2  ;;  %v2085_v20 = vmul.f32 %v3491_v57, %v2084_v58 }
0x1684   : > { %3492 = vtanh.f32 %v2065_v14 }
0x1685   : > { %v2080_v55 = vadd.f32 %v2076_v54, %v4547_v26  ;;  %v2089_v24 = vadd.f32 %v2085_v20, %v4470_v46 }
0x1687   : > { %v2093_v33 = vpack.c.bf16 %v2089_v24, %v2089_v24 }
0x1689   : > { %v2067_v11 = vpop.f32.mrf.mxu3  ;;  %v2099_v1 = vunpack.c.l.b16 %v2093_v33 }
0x168a   : > { %v3493_v0 = vpop.eup %3492  ;;  %v2068_v61 = vadd.f32 %v4589_v52, %v2067_v11 }
0x168b   : > { %v2077_v30 = vmul.f32 %v3493_v0, %v4542_v2  ;;  %v2086_v32 = vmul.f32 %v3493_v0, %v2084_v58 }
0x168c   : > { %3494 = vtanh.f32 %v2068_v61 }
0x168d   : > { %v2081_v18 = vadd.f32 %v2077_v30, %v4556_v16  ;;  %v2090_v60 = vadd.f32 %v2086_v32, %v4477_v50 }
0x168f   : > { %v2094_v15 = vpack.c.bf16 %v2090_v60, %v2090_v60 }
0x1691   : > { %v2069_v51 = vpop.f32.mrf.mxu3  ;;  %v2100_v26 = vunpack.c.l.b16 %v2094_v15 }
0x1692   : > { %v3495_v62 = vpop.eup %3494  ;;  %v2070_v46 = vadd.f32 %v4589_v52, %v2069_v51 }
0x1693   : > { %v2078_v34 = vmul.f32 %v3495_v62, %v4542_v2  ;;  %v2101_v48 = vpack.c.b16 %v2100_v26, %v2099_v1  ;;  %v2087_v56 = vmul.f32 %v3495_v62, %v2084_v58 }
0x1694   : > { %3496 = vtanh.f32 %v2070_v46 }
0x1695   : > { %v2082_v13 = vadd.f32 %v2078_v34, %v4563_v37  ;;  %2110 = vmatpush.bf16.msra.mxu2 %v2101_v48  ;;  %v2091_v50 = vadd.f32 %v2087_v56, %v4488_v21  ;;  %v4663_v48 = vstv %s2267_s29 }
0x1697   : > { %v2095_v36 = vpack.c.bf16 %v2091_v50, %v2091_v50 }
0x1698   : > { %3188 = vmatmul.msk.bf16.vlgmr.msra.gmra.mxu2 %vm331_vm1, %v4567_v4 }
0x1699   : > { %v2119_v43 = vunpack.c.l.b16 %v2095_v36 }
0x169a   : > { %v3497_v16 = vpop.eup %3496 }
0x169b   : > { %v2079_v3 = vmul.f32 %v3497_v16, %v4542_v2  ;;  %v2088_v63 = vmul.f32 %v3497_v16, %v2084_v58 }
0x169d   : > { %v2083_v28 = vadd.f32 %v2079_v3, %v1992_v10  ;;  %v2092_v35 = vadd.f32 %v2088_v63, %v4496_v27 }
0x169f   : > { %v2096_v39 = vpack.c.bf16 %v2092_v35, %v2092_v35 }
0x16a1   : > { %v2120_v59 = vunpack.c.l.b16 %v2096_v39 }
0x16a3   : > { %v2121_v38 = vpack.c.b16 %v2120_v59, %v2119_v43 }
0x16a5   : > { %2130 = vmatpush.bf16.msrb.mxu0 %v2121_v38 }
0x16a8   : > { %3189 = vmatmul.msk.bf16.vlgmr.msrb.gmra.mxu0 %vm331_vm1, %v4567_v4 }
0x171b   : > { %v2112_v37 = vpop.f32.mrf.mxu2 }
0x1723   : > { %v2114_v40 = vpop.f32.mrf.mxu2 }
0x1724   : > { %v2137_v42 = vpack.c.bf16 %v2114_v40, %v2112_v37 }
0x1725   : > { %v2132_v21 = vpop.f32.mrf.mxu0 }
0x1726   : > { %3190 = vmatmul.msk.bf16.vlgmr.msrb.gmra.mxu1 %vm310_vm0, %v2137_v42 }
0x1727   : > { %2520 = vmatpush.bf16.msrb.mxu1 %v4579_v29 }
0x172b   : > { %2521 = vmatpush.bf16.msrb.mxu1 %v4582_v8 }
0x172d   : > { %v2134_v27 = vpop.f32.mrf.mxu0 }
0x172e   : > { %v2138_v2 = vpack.c.bf16 %v2134_v27, %v2132_v21 }
0x1736   : > { %3191 = vmatmul.msk.bf16.gmra.mxu1 %vm310_vm0, %v2138_v2 }
0x17a3   : > { %v2154_v41 = vpop.f32.mrf.mxu1 }
0x17a4   : > { %v2155_v10 = vadd.f32 %v4589_v52, %v2154_v41 }
0x17a6   : > { %3498 = vtanh.f32 %v2155_v10 }
0x17ab   : > { %v2156_v17 = vpop.f32.mrf.mxu1 }
0x17ac   : > { %v3499_v22 = vpop.eup %3498  ;;  %v2157_v19 = vadd.f32 %v4589_v52, %v2156_v17 }
0x17ad   : > { %v2168_v9 = vmul.f32 %v3499_v22, %v4538_v44 }
0x17ae   : > { %3500 = vtanh.f32 %v2157_v19 }
0x17af   : > { %v4618_v45 = vadd.f32 %v2168_v9, %v2080_v55 }
0x17b1   : > { %3192 = vst.msk [vmem:[%s3917_s24 + $0xa0] sm:$0xff] %vm310_vm0, %v4618_v45  ;;  %v2182_v49 = vpack.c.bf16 %v4618_v45, %v4618_v45 }
0x17b3   : > { %v2159_v12 = vpop.f32.mrf.mxu1  ;;  %v2188_v53 = vunpack.c.l.b16 %v2182_v49 }
0x17b4   : > { %v3501_v6 = vpop.eup %3500  ;;  %v2160_v23 = vadd.f32 %v4589_v52, %v2159_v12 }
0x17b5   : > { %v2169_v5 = vmul.f32 %v3501_v6, %v4538_v44 }
0x17b6   : > { %3502 = vtanh.f32 %v2160_v23 }
0x17b7   : > { %v4625_v7 = vadd.f32 %v2169_v5, %v2081_v18 }
0x17b9   : > { %3193 = vst.msk [vmem:[%s3917_s24 + $0xa8] sm:$0xff] %vm310_vm0, %v4625_v7  ;;  %v2183_v47 = vpack.c.bf16 %v4625_v7, %v4625_v7 }
0x17bb   : > { %v2161_v25 = vpop.f32.mrf.mxu1  ;;  %v2189_v31 = vunpack.c.l.b16 %v2183_v47 }
0x17bc   : > { %v3503_v57 = vpop.eup %3502  ;;  %v2162_v58 = vadd.f32 %v4589_v52, %v2161_v25 }
0x17bd   : > { %v2170_v14 = vmul.f32 %v3503_v57, %v4538_v44  ;;  %v2190_v54 = vpack.c.b16 %v2189_v31, %v2188_v53  ;;  %v4686_v57 = vstv %s2257_s13 }
0x17be   : > { %3504 = vtanh.f32 %v2162_v58 }
0x17bf   : > { %v4636_v55 = vadd.f32 %v2170_v14, %v2082_v13  ;;  %2199 = vmatpush.bf16.msrb.mxu2 %v2190_v54  ;;  %v4690_v14 = vstv %s2352_s15 }
0x17c1   : > { %3194 = vst.msk [vmem:[%s3917_s24 + $0xb0] sm:$0xff] %vm310_vm0, %v4636_v55  ;;  %v2184_v0 = vpack.c.bf16 %v4636_v55, %v4636_v55 }
0x17c2   : > { %3197 = vmatmul.msk.bf16.vlgmr.msrb.gmra.mxu2 %vm331_vm1, %v4567_v4 }
0x17c3   : > { %v2208_v30 = vunpack.c.l.b16 %v2184_v0 }
0x17c4   : > { %v3505_v20 = vpop.eup %3504 }
0x17c5   : > { %v2171_v24 = vmul.f32 %v3505_v20, %v4538_v44 }
0x17c7   : > { %v4644_v11 = vadd.f32 %v2171_v24, %v2083_v28 }
0x17c9   : > { %3195 = vst.msk [vmem:[%s3917_s24 + $0xb8] sm:$0xff] %vm310_vm0, %v4644_v11  ;;  %v2185_v61 = vpack.c.bf16 %v4644_v11, %v4644_v11 }
0x17cb   : > { %v2209_v32 = vunpack.c.l.b16 %v2185_v61 }
0x17cd   : > { %v2210_v18 = vpack.c.b16 %v2209_v32, %v2208_v30 }
0x17cf   : > { %2219 = vmatpush.bf16.msra.mxu0 %v2210_v18 }
0x17d2   : > { %3198 = vmatmul.msk.bf16.vlgmr.msra.gmra.mxu0 %vm331_vm1, %v4567_v4 }
0x1845   : > { %v2201_v60 = vpop.f32.mrf.mxu2 }
0x184d   : > { %v2203_v44 = vpop.f32.mrf.mxu2 }
0x184e   : > { %v2226_v33 = vpack.c.bf16 %v2203_v44, %v2201_v60 }
0x184f   : > { %v2221_v15 = vpop.f32.mrf.mxu0 }
0x1850   : > { %3199 = vmatmul.msk.bf16.vlgmr.msrb.gmra.mxu3 %vm310_vm0, %v2226_v33 }
0x1851   : > { %2609 = vmatpush.bf16.msrb.mxu3 %v4579_v29 }
0x1855   : > { %2610 = vmatpush.bf16.msrb.mxu3 %v4582_v8 }
0x1857   : > { %v2223_v51 = vpop.f32.mrf.mxu0 }
0x1858   : > { %v2227_v1 = vpack.c.bf16 %v2223_v51, %v2221_v15 }
0x1860   : > { %3200 = vmatmul.msk.bf16.gmra.mxu3 %vm310_vm0, %v2227_v1 }
0x18d3   : > { %v2243_v26 = vpop.f32.mrf.mxu3 }
0x18d4   : > { %v2244_v62 = vadd.f32 %v4589_v52, %v2243_v26 }
0x18d6   : > { %3506 = vtanh.f32 %v2244_v62 }
0x18db   : > { %v2245_v46 = vpop.f32.mrf.mxu3 }
0x18dc   : > { %v3507_v34 = vpop.eup %3506  ;;  %v2246_v13 = vadd.f32 %v4589_v52, %v2245_v46 }
0x18dd   : > { %v2269_v56 = vmul.f32 %v3507_v34, %v4663_v48  ;;  %v2259_v58 = vmul.f32 %v3507_v34, %v4686_v57 }
0x18de   : > { %3508 = vtanh.f32 %v2246_v13 }
0x18df   : > { %v2273_v50 = vadd.f32 %v2269_v56, %v4618_v45  ;;  %v2263_v0 = vadd.f32 %v2259_v58, %v4618_v45  ;;  %v2453_v58 = vstv %s4659_s28 }
0x18e1   : > { %v2277_v36 = vpack.c.bf16 %v2273_v50, %v2273_v50 }
0x18e3   : > { %v2248_v16 = vpop.f32.mrf.mxu3  ;;  %v2283_v59 = vunpack.c.l.b16 %v2277_v36 }
0x18e4   : > { %v3509_v3 = vpop.eup %3508  ;;  %v2249_v63 = vadd.f32 %v4589_v52, %v2248_v16 }
0x18e5   : > { %v2270_v28 = vmul.f32 %v3509_v3, %v4663_v48  ;;  %v2260_v18 = vmul.f32 %v3509_v3, %v4686_v57 }
0x18e6   : > { %3510 = vtanh.f32 %v2249_v63 }
0x18e7   : > { %v2274_v35 = vadd.f32 %v2270_v28, %v4625_v7  ;;  %v2264_v51 = vadd.f32 %v2260_v18, %v4625_v7 }
0x18e9   : > { %v2278_v39 = vpack.c.bf16 %v2274_v35, %v2274_v35 }
0x18eb   : > { %v2250_v43 = vpop.f32.mrf.mxu3  ;;  %v2284_v38 = vunpack.c.l.b16 %v2278_v39 }
0x18ec   : > { %v3511_v37 = vpop.eup %3510  ;;  %v2251_v40 = vadd.f32 %v4589_v52, %v2250_v43 }
0x18ed   : > { %v2285_v42 = vpack.c.b16 %v2284_v38, %v2283_v59  ;;  %v2271_v21 = vmul.f32 %v3511_v37, %v4663_v48  ;;  %v2261_v13 = vmul.f32 %v3511_v37, %v4686_v57 }
0x18ee   : > { %3512 = vtanh.f32 %v2251_v40 }
0x18ef   : > { %2294 = vmatpush.bf16.msra.mxu2 %v2285_v42  ;;  %v2275_v27 = vadd.f32 %v2271_v21, %v4636_v55  ;;  %v2265_v35 = vadd.f32 %v2261_v13, %v4636_v55 }
0x18f1   : > { %v2279_v17 = vpack.c.bf16 %v2275_v27, %v2275_v27 }
0x18f2   : > { %3201 = vmatmul.msk.bf16.vlgmr.msra.gmra.mxu2 %vm331_vm1, %v4567_v4 }
0x18f3   : > { %v2303_v19 = vunpack.c.l.b16 %v2279_v17 }
0x18f4   : > { %v3513_v2 = vpop.eup %3512 }
0x18f5   : > { %v2272_v41 = vmul.f32 %v3513_v2, %v4663_v48  ;;  %v2262_v38 = vmul.f32 %v3513_v2, %v4686_v57 }
0x18f7   : > { %v2276_v10 = vadd.f32 %v2272_v41, %v4644_v11  ;;  %v2266_v42 = vadd.f32 %v2262_v38, %v4644_v11 }
0x18f9   : > { %v2280_v22 = vpack.c.bf16 %v2276_v10, %v2276_v10 }
0x18fb   : > { %v2304_v9 = vunpack.c.l.b16 %v2280_v22 }
0x18fd   : > { %v2305_v12 = vpack.c.b16 %v2304_v9, %v2303_v19 }
0x18ff   : > { %2314 = vmatpush.bf16.msrb.mxu0 %v2305_v12 }
0x1902   : > { %3202 = vmatmul.msk.bf16.vlgmr.msrb.gmra.mxu0 %vm331_vm1, %v4567_v4 }
0x1975   : > { %v2296_v6 = vpop.f32.mrf.mxu2 }
0x197d   : > { %v2298_v23 = vpop.f32.mrf.mxu2 }
0x197e   : > { %v2321_v5 = vpack.c.bf16 %v2298_v23, %v2296_v6 }
0x197f   : > { %v2316_v49 = vpop.f32.mrf.mxu0 }
0x1980   : > { %3203 = vmatmul.msk.bf16.vlgmr.msra.gmra.mxu1 %vm310_vm0, %v2321_v5 }
0x1981   : > { %2704 = vmatpush.bf16.msra.mxu1 %v4579_v29 }
0x1985   : > { %2705 = vmatpush.bf16.msra.mxu1 %v4582_v8 }
0x1987   : > { %v2318_v47 = vpop.f32.mrf.mxu0 }
0x1988   : > { %v2322_v25 = vpack.c.bf16 %v2318_v47, %v2316_v49 }
0x1990   : > { %3204 = vmatmul.msk.bf16.gmra.mxu1 %vm310_vm0, %v2322_v25 }
0x19fd   : > { %v2338_v53 = vpop.f32.mrf.mxu1 }
0x19fe   : > { %v2339_v31 = vadd.f32 %v4589_v52, %v2338_v53 }
0x1a00   : > { %3514 = vtanh.f32 %v2339_v31 }
0x1a05   : > { %v2340_v54 = vpop.f32.mrf.mxu1 }
0x1a06   : > { %v3515_v20 = vpop.eup %3514  ;;  %v2341_v24 = vadd.f32 %v4589_v52, %v2340_v54 }
0x1a07   : > { %v2354_v61 = vmul.f32 %v3515_v20, %v4690_v14  ;;  %v2362_v32 = vmul.f32 %v3515_v20, %v4663_v48 }
0x1a08   : > { %3516 = vtanh.f32 %v2341_v24 }
0x1a09   : > { %v4695_v30 = vadd.f32 %v2354_v61, %v2263_v0  ;;  %v2366_v60 = vadd.f32 %v2362_v32, %v4618_v45 }
0x1a0b   : > { %v2370_v34 = vpack.c.bf16 %v2366_v60, %v2366_v60 }
0x1a0d   : > { %v2343_v44 = vpop.f32.mrf.mxu1  ;;  %v2376_v16 = vunpack.c.l.b16 %v2370_v34 }
0x1a0e   : > { %v3517_v33 = vpop.eup %3516  ;;  %v2344_v15 = vadd.f32 %v4589_v52, %v2343_v44 }
0x1a0f   : > { %v2355_v1 = vmul.f32 %v3517_v33, %v4690_v14  ;;  %v2363_v26 = vmul.f32 %v3517_v33, %v4663_v48 }
0x1a10   : > { %3518 = vtanh.f32 %v2344_v15 }
0x1a11   : > { %v2359_v62 = vadd.f32 %v2355_v1, %v2264_v51  ;;  %v2367_v46 = vadd.f32 %v2363_v26, %v4625_v7 }
0x1a13   : > { %v2371_v56 = vpack.c.bf16 %v2367_v46, %v2367_v46 }
0x1a15   : > { %v2345_v50 = vpop.f32.mrf.mxu1  ;;  %v2377_v3 = vunpack.c.l.b16 %v2371_v56 }
0x1a16   : > { %v3519_v63 = vpop.eup %3518  ;;  %v2346_v28 = vadd.f32 %v4589_v52, %v2345_v50 }
0x1a17   : > { %v2356_v36 = vmul.f32 %v3519_v63, %v4690_v14  ;;  %v2378_v39 = vpack.c.b16 %v2377_v3, %v2376_v16  ;;  %v2364_v59 = vmul.f32 %v3519_v63, %v4663_v48 }
0x1a18   : > { %3520 = vtanh.f32 %v2346_v28 }
0x1a19   : > { %v2360_v43 = vadd.f32 %v2356_v36, %v2265_v35  ;;  %2387 = vmatpush.bf16.msrb.mxu2 %v2378_v39  ;;  %v2368_v37 = vadd.f32 %v2364_v59, %v4636_v55 }
0x1a1b   : > { %v2372_v17 = vpack.c.bf16 %v2368_v37, %v2368_v37 }
0x1a1c   : > { %3205 = vmatmul.msk.bf16.vlgmr.msrb.gmra.mxu2 %vm331_vm1, %v4567_v4 }
0x1a1d   : > { %v2396_v19 = vunpack.c.l.b16 %v2372_v17 }
0x1a1e   : > { %v3521_v40 = vpop.eup %3520 }
0x1a1f   : > { %v2357_v21 = vmul.f32 %v3521_v40, %v4690_v14  ;;  %v2365_v27 = vmul.f32 %v3521_v40, %v4663_v48 }
0x1a21   : > { %v2361_v41 = vadd.f32 %v2357_v21, %v2266_v42  ;;  %v2369_v10 = vadd.f32 %v2365_v27, %v4644_v11 }
0x1a23   : > { %v2373_v22 = vpack.c.bf16 %v2369_v10, %v2369_v10 }
0x1a25   : > { %v2397_v9 = vunpack.c.l.b16 %v2373_v22 }
0x1a27   : > { %v2398_v2 = vpack.c.b16 %v2397_v9, %v2396_v19 }
0x1a29   : > { %2407 = vmatpush.bf16.msra.mxu0 %v2398_v2 }
0x1a2c   : > { %3206 = vmatmul.msk.bf16.vlgmr.msra.gmra.mxu0 %vm331_vm1, %v4567_v4 }
0x1a9f   : > { %v2389_v12 = vpop.f32.mrf.mxu2 }
0x1aa7   : > { %v2391_v6 = vpop.f32.mrf.mxu2 }
0x1aa8   : > { %v2414_v23 = vpack.c.bf16 %v2391_v6, %v2389_v12 }
0x1aa9   : > { %v2409_v5 = vpop.f32.mrf.mxu0 }
0x1aaa   : > { %3207 = vmatmul.msk.bf16.vlgmr.msra.gmra.mxu3 %vm310_vm0, %v2414_v23 }
0x1aab   : > { %2797 = vmatpush.bf16.msra.mxu3 %v4579_v29 }
0x1aaf   : > { %2798 = vmatpush.bf16.msra.mxu3 %v4582_v8 }
0x1ab1   : > { %v2411_v48 = vpop.f32.mrf.mxu0 }
0x1ab2   : > { %v2415_v49 = vpack.c.bf16 %v2411_v48, %v2409_v5 }
0x1aba   : > { %3208 = vmatmul.msk.bf16.gmra.mxu3 %vm310_vm0, %v2415_v49 }
0x1b2d   : > { %v2431_v47 = vpop.f32.mrf.mxu3 }
0x1b2e   : > { %v2432_v25 = vadd.f32 %v4589_v52, %v2431_v47 }
0x1b30   : > { %3522 = vtanh.f32 %v2432_v25 }
0x1b35   : > { %v2433_v53 = vpop.f32.mrf.mxu3 }
0x1b36   : > { %v3523_v31 = vpop.eup %3522  ;;  %v2434_v54 = vadd.f32 %v4589_v52, %v2433_v53 }
0x1b37   : > { %v2445_v20 = vmul.f32 %v3523_v31, %v4690_v14  ;;  %v2454_v0 = vmul.f32 %v3523_v31, %v2453_v58 }
0x1b38   : > { %3524 = vtanh.f32 %v2434_v54 }
0x1b39   : > { %v2449_v24 = vadd.f32 %v2445_v20, %v4695_v30  ;;  %v2458_v61 = vadd.f32 %v2454_v0, %v4618_v45 }
0x1b3b   : > { %v2462_v1 = vpack.c.bf16 %v2458_v61, %v2458_v61 }
0x1b3d   : > { %v2436_v32 = vpop.f32.mrf.mxu3  ;;  %v2468_v34 = vunpack.c.l.b16 %v2462_v1 }
0x1b3e   : > { %v3525_v18 = vpop.eup %3524  ;;  %v2437_v60 = vadd.f32 %v4589_v52, %v2436_v32 }
0x1b3f   : > { %v2446_v44 = vmul.f32 %v3525_v18, %v4690_v14  ;;  %v2455_v33 = vmul.f32 %v3525_v18, %v2453_v58 }
0x1b40   : > { %3526 = vtanh.f32 %v2437_v60 }
0x1b41   : > { %v2450_v15 = vadd.f32 %v2446_v44, %v2359_v62  ;;  %v2459_v51 = vadd.f32 %v2455_v33, %v4625_v7 }
0x1b43   : > { %v2463_v26 = vpack.c.bf16 %v2459_v51, %v2459_v51 }
0x1b45   : > { %v2438_v46 = vpop.f32.mrf.mxu3  ;;  %v2469_v13 = vunpack.c.l.b16 %v2463_v26 }
0x1b46   : > { %v3527_v30 = vpop.eup %3526  ;;  %v2439_v56 = vadd.f32 %v4589_v52, %v2438_v46 }
0x1b47   : > { %v2447_v45 = vmul.f32 %v3527_v30, %v4690_v14  ;;  %v2470_v50 = vpack.c.b16 %v2469_v13, %v2468_v34  ;;  %v2456_v3 = vmul.f32 %v3527_v30, %v2453_v58 }
0x1b48   : > { %3528 = vtanh.f32 %v2439_v56  ;;  %v4792_v56 = vstv %s2636_s17 }
0x1b49   : > { %v2451_v16 = vadd.f32 %v2447_v45, %v2360_v43  ;;  %2479 = vmatpush.bf16.msra.mxu2 %v2470_v50  ;;  %v2460_v7 = vadd.f32 %v2456_v3, %v4636_v55 }
0x1b4b   : > { %v2464_v39 = vpack.c.bf16 %v2460_v7, %v2460_v7 }
0x1b4c   : > { %3209 = vmatmul.msk.bf16.vlgmr.msra.gmra.mxu2 %vm331_vm1, %v4567_v4 }
0x1b4d   : > { %v2488_v38 = vunpack.c.l.b16 %v2464_v39 }
0x1b4e   : > { %v3529_v62 = vpop.eup %3528 }
0x1b4f   : > { %v2448_v63 = vmul.f32 %v3529_v62, %v4690_v14  ;;  %v2457_v28 = vmul.f32 %v3529_v62, %v2453_v58 }
0x1b51   : > { %v2452_v35 = vadd.f32 %v2448_v63, %v2361_v41  ;;  %v2461_v36 = vadd.f32 %v2457_v28, %v4644_v11 }
0x1b53   : > { %v2465_v59 = vpack.c.bf16 %v2461_v36, %v2461_v36 }
0x1b55   : > { %v2489_v37 = vunpack.c.l.b16 %v2465_v59 }
0x1b57   : > { %v2490_v40 = vpack.c.b16 %v2489_v37, %v2488_v38 }
0x1b59   : > { %2499 = vmatpush.bf16.msrb.mxu0 %v2490_v40 }
0x1b5c   : > { %3210 = vmatmul.msk.bf16.vlgmr.msrb.gmra.mxu0 %vm331_vm1, %v4567_v4 }
0x1bcf   : > { %v2481_v43 = vpop.f32.mrf.mxu2 }
0x1bd7   : > { %v2483_v42 = vpop.f32.mrf.mxu2 }
0x1bd8   : > { %v2506_v21 = vpack.c.bf16 %v2483_v42, %v2481_v43 }
0x1bd9   : > { %v2501_v55 = vpop.f32.mrf.mxu0 }
0x1bda   : > { %3211 = vmatmul.msk.bf16.vlgmr.msrb.gmra.mxu1 %vm310_vm0, %v2506_v21 }
0x1bdb   : > { %2889 = vmatpush.bf16.msrb.mxu1 %v4579_v29 }
0x1bdf   : > { %2890 = vmatpush.bf16.msrb.mxu1 %v4582_v8 }
0x1be1   : > { %v2503_v11 = vpop.f32.mrf.mxu0 }
0x1be2   : > { %v2507_v14 = vpack.c.bf16 %v2503_v11, %v2501_v55 }
0x1bea   : > { %3212 = vmatmul.msk.bf16.gmra.mxu1 %vm310_vm0, %v2507_v14 }
0x1c57   : > { %v2523_v27 = vpop.f32.mrf.mxu1 }
0x1c58   : > { %v2524_v41 = vadd.f32 %v4589_v52, %v2523_v27 }
0x1c5a   : > { %3530 = vtanh.f32 %v2524_v41 }
0x1c5f   : > { %v2525_v10 = vpop.f32.mrf.mxu1 }
0x1c60   : > { %v3531_v17 = vpop.eup %3530  ;;  %v2526_v22 = vadd.f32 %v4589_v52, %v2525_v10 }
0x1c61   : > { %v2537_v19 = vmul.f32 %v3531_v17, %v4686_v57 }
0x1c62   : > { %3532 = vtanh.f32 %v2526_v22 }
0x1c63   : > { %v4749_v9 = vadd.f32 %v2537_v19, %v2449_v24 }
0x1c65   : > { %3213 = vst.msk [vmem:[%s3917_s24 + $0xc0] sm:$0xff] %vm310_vm0, %v4749_v9  ;;  %v2551_v23 = vpack.c.bf16 %v4749_v9, %v4749_v9 }
0x1c67   : > { %v2528_v29 = vpop.f32.mrf.mxu1  ;;  %v2557_v49 = vunpack.c.l.b16 %v2551_v23 }
0x1c68   : > { %v3533_v8 = vpop.eup %3532  ;;  %v2529_v2 = vadd.f32 %v4589_v52, %v2528_v29 }
0x1c69   : > { %v2538_v12 = vmul.f32 %v3533_v8, %v4686_v57 }
0x1c6a   : > { %3534 = vtanh.f32 %v2529_v2 }
0x1c6b   : > { %v4756_v6 = vadd.f32 %v2538_v12, %v2450_v15 }
0x1c6d   : > { %3214 = vst.msk [vmem:[%s3917_s24 + $0xc8] sm:$0xff] %vm310_vm0, %v4756_v6  ;;  %v2552_v5 = vpack.c.bf16 %v4756_v6, %v4756_v6 }
0x1c6f   : > { %v2530_v48 = vpop.f32.mrf.mxu1  ;;  %v2558_v47 = vunpack.c.l.b16 %v2552_v5 }
0x1c70   : > { %v3535_v25 = vpop.eup %3534  ;;  %v2531_v53 = vadd.f32 %v4589_v52, %v2530_v48 }
0x1c71   : > { %v2539_v31 = vmul.f32 %v3535_v25, %v4686_v57  ;;  %v2559_v58 = vpack.c.b16 %v2558_v47, %v2557_v49  ;;  %v4813_v49 = vstv %s2626_s8  ;;  %v4817_v25 = vstv %s2721_s9 }
0x1c72   : > { %3536 = vtanh.f32 %v2531_v53 }
0x1c73   : > { %v4767_v54 = vadd.f32 %v2539_v31, %v2451_v16  ;;  %2568 = vmatpush.bf16.msrb.mxu2 %v2559_v58 }
0x1c75   : > { %3215 = vst.msk [vmem:[%s3917_s24 + $0xd0] sm:$0xff] %vm310_vm0, %v4767_v54  ;;  %v2553_v61 = vpack.c.bf16 %v4767_v54, %v4767_v54 }
0x1c76   : > { %3218 = vmatmul.msk.bf16.vlgmr.msrb.gmra.mxu2 %vm331_vm1, %v4567_v4 }
0x1c77   : > { %v2577_v18 = vunpack.c.l.b16 %v2553_v61 }
0x1c78   : > { %v3537_v20 = vpop.eup %3536 }
0x1c79   : > { %v2540_v24 = vmul.f32 %v3537_v20, %v4686_v57 }
0x1c7b   : > { %v4775_v0 = vadd.f32 %v2540_v24, %v2452_v35 }
0x1c7d   : > { %3216 = vst.msk [vmem:[%s3917_s24 + $0xd8] sm:$0xff] %vm310_vm0, %v4775_v0  ;;  %v2554_v32 = vpack.c.bf16 %v4775_v0, %v4775_v0 }
0x1c7f   : > { %v2578_v60 = vunpack.c.l.b16 %v2554_v32 }
0x1c81   : > { %v2579_v44 = vpack.c.b16 %v2578_v60, %v2577_v18 }
0x1c83   : > { %2588 = vmatpush.bf16.msra.mxu0 %v2579_v44 }
0x1c86   : > { %3219 = vmatmul.msk.bf16.vlgmr.msra.gmra.mxu0 %vm331_vm1, %v4567_v4 }
0x1cf9   : > { %v2570_v33 = vpop.f32.mrf.mxu2 }
0x1d01   : > { %v2572_v57 = vpop.f32.mrf.mxu2 }
0x1d02   : > { %v2595_v15 = vpack.c.bf16 %v2572_v57, %v2570_v33 }
0x1d03   : > { %v2590_v51 = vpop.f32.mrf.mxu0 }
0x1d04   : > { %3220 = vmatmul.msk.bf16.vlgmr.msrb.gmra.mxu3 %vm310_vm0, %v2595_v15 }
0x1d0b   : > { %v2592_v1 = vpop.f32.mrf.mxu0 }
0x1d0c   : > { %v2596_v26 = vpack.c.bf16 %v2592_v1, %v2590_v51 }
0x1d14   : > { %3221 = vmatmul.msk.bf16.gmra.mxu3 %vm310_vm0, %v2596_v26 }
0x1d87   : > { %v2612_v46 = vpop.f32.mrf.mxu3 }
0x1d88   : > { %v2613_v34 = vadd.f32 %v4589_v52, %v2612_v46 }
0x1d8a   : > { %3538 = vtanh.f32 %v2613_v34 }
0x1d8f   : > { %v2614_v13 = vpop.f32.mrf.mxu3 }
0x1d90   : > { %v3539_v30 = vpop.eup %3538  ;;  %v2615_v45 = vadd.f32 %v4589_v52, %v2614_v13 }
0x1d91   : > { %v2638_v50 = vmul.f32 %v3539_v30, %v4792_v56  ;;  %v2628_v47 = vmul.f32 %v3539_v30, %v4813_v49 }
0x1d92   : > { %3540 = vtanh.f32 %v2615_v45 }
0x1d93   : > { %v2642_v16 = vadd.f32 %v2638_v50, %v4749_v9  ;;  %v2632_v20 = vadd.f32 %v2628_v47, %v4749_v9 }
0x1d95   : > { %v2646_v35 = vpack.c.bf16 %v2642_v16, %v2642_v16 }
0x1d97   : > { %v2617_v3 = vpop.f32.mrf.mxu3  ;;  %v2652_v59 = vunpack.c.l.b16 %v2646_v35 }
0x1d98   : > { %v3541_v7 = vpop.eup %3540  ;;  %v2618_v62 = vadd.f32 %v4589_v52, %v2617_v3 }
0x1d99   : > { %v2639_v63 = vmul.f32 %v3541_v7, %v4792_v56  ;;  %v2629_v18 = vmul.f32 %v3541_v7, %v4813_v49 }
0x1d9a   : > { %3542 = vtanh.f32 %v2618_v62 }
0x1d9b   : > { %v2643_v28 = vadd.f32 %v2639_v63, %v4756_v6  ;;  %v2633_v15 = vadd.f32 %v2629_v18, %v4756_v6 }
0x1d9d   : > { %v2647_v36 = vpack.c.bf16 %v2643_v28, %v2643_v28 }
0x1d9f   : > { %v2619_v39 = vpop.f32.mrf.mxu3  ;;  %v2653_v38 = vunpack.c.l.b16 %v2647_v36 }
0x1da0   : > { %v3543_v37 = vpop.eup %3542  ;;  %v2620_v40 = vadd.f32 %v4589_v52, %v2619_v39 }
0x1da1   : > { %v2654_v43 = vpack.c.b16 %v2653_v38, %v2652_v59  ;;  %v2640_v42 = vmul.f32 %v3543_v37, %v4792_v56  ;;  %v2630_v13 = vmul.f32 %v3543_v37, %v4813_v49 }
0x1da2   : > { %3544 = vtanh.f32 %v2620_v40 }
0x1da3   : > { %2663 = vmatpush.bf16.msra.mxu2 %v2654_v43  ;;  %v2644_v21 = vadd.f32 %v2640_v42, %v4767_v54  ;;  %v2634_v62 = vadd.f32 %v2630_v13, %v4767_v54 }
0x1da5   : > { %v2648_v27 = vpack.c.bf16 %v2644_v21, %v2644_v21 }
0x1da6   : > { %3222 = vmatmul.msk.bf16.vlgmr.msra.gmra.mxu2 %vm331_vm1, %v4567_v4 }
0x1da7   : > { %v2672_v10 = vunpack.c.l.b16 %v2648_v27 }
0x1da8   : > { %v3545_v55 = vpop.eup %3544 }
0x1da9   : > { %v2641_v11 = vmul.f32 %v3545_v55, %v4792_v56  ;;  %v2631_v39 = vmul.f32 %v3545_v55, %v4813_v49 }
0x1dab   : > { %v2645_v14 = vadd.f32 %v2641_v11, %v4775_v0  ;;  %v2635_v37 = vadd.f32 %v2631_v39, %v4775_v0 }
0x1dad   : > { %v2649_v41 = vpack.c.bf16 %v2645_v14, %v2645_v14 }
0x1daf   : > { %v2673_v17 = vunpack.c.l.b16 %v2649_v41 }
0x1db1   : > { %v2674_v22 = vpack.c.b16 %v2673_v17, %v2672_v10 }
0x1db3   : > { %2683 = vmatpush.bf16.msrb.mxu0 %v2674_v22 }
0x1db6   : > { %3223 = vmatmul.msk.bf16.vlgmr.msrb.gmra.mxu0 %vm331_vm1, %v4567_v4 }
0x1e29   : > { %v2665_v19 = vpop.f32.mrf.mxu2 }
0x1e31   : > { %v2667_v29 = vpop.f32.mrf.mxu2 }
0x1e32   : > { %v2690_v8 = vpack.c.bf16 %v2667_v29, %v2665_v19 }
0x1e33   : > { %v2685_v2 = vpop.f32.mrf.mxu0 }
0x1e34   : > { %3224 = vmatmul.msk.bf16.vlgmr.msra.gmra.mxu1 %vm310_vm0, %v2690_v8 }
0x1e3b   : > { %v2687_v12 = vpop.f32.mrf.mxu0 }
0x1e3c   : > { %v2691_v23 = vpack.c.bf16 %v2687_v12, %v2685_v2 }
0x1e44   : > { %3225 = vmatmul.msk.bf16.gmra.mxu1 %vm310_vm0, %v2691_v23 }
0x1eb1   : > { %v2707_v5 = vpop.f32.mrf.mxu1 }
0x1eb2   : > { %v2708_v48 = vadd.f32 %v4589_v52, %v2707_v5  ;;  %v2822_v5 = vstv %s4788_s16 }
0x1eb4   : > { %3546 = vtanh.f32 %v2708_v48 }
0x1eb9   : > { %v2709_v53 = vpop.f32.mrf.mxu1 }
0x1eba   : > { %v3547_v31 = vpop.eup %3546  ;;  %v2710_v58 = vadd.f32 %v4589_v52, %v2709_v53 }
0x1ebb   : > { %v2723_v24 = vmul.f32 %v3547_v31, %v4817_v25  ;;  %v2731_v32 = vmul.f32 %v3547_v31, %v4792_v56 }
0x1ebc   : > { %3548 = vtanh.f32 %v2710_v58 }
0x1ebd   : > { %v2727_v61 = vadd.f32 %v2723_v24, %v2632_v20  ;;  %v2735_v60 = vadd.f32 %v2731_v32, %v4749_v9 }
0x1ebf   : > { %v2739_v34 = vpack.c.bf16 %v2735_v60, %v2735_v60 }
0x1ec1   : > { %v2712_v44 = vpop.f32.mrf.mxu1  ;;  %v2745_v50 = vunpack.c.l.b16 %v2739_v34 }
0x1ec2   : > { %v3549_v33 = vpop.eup %3548  ;;  %v2713_v57 = vadd.f32 %v4589_v52, %v2712_v44 }
0x1ec3   : > { %v2724_v51 = vmul.f32 %v3549_v33, %v4817_v25  ;;  %v2732_v1 = vmul.f32 %v3549_v33, %v4792_v56 }
0x1ec4   : > { %3550 = vtanh.f32 %v2713_v57 }
0x1ec5   : > { %v2728_v26 = vadd.f32 %v2724_v51, %v2633_v15  ;;  %v2736_v46 = vadd.f32 %v2732_v1, %v4756_v6 }
0x1ec7   : > { %v2740_v30 = vpack.c.bf16 %v2736_v46, %v2736_v46 }
0x1ec9   : > { %v2714_v45 = vpop.f32.mrf.mxu1  ;;  %v2746_v16 = vunpack.c.l.b16 %v2740_v30 }
0x1eca   : > { %v3551_v3 = vpop.eup %3550  ;;  %v2715_v7 = vadd.f32 %v4589_v52, %v2714_v45 }
0x1ecb   : > { %v2725_v63 = vmul.f32 %v3551_v3, %v4817_v25  ;;  %v2747_v28 = vpack.c.b16 %v2746_v16, %v2745_v50  ;;  %v2733_v36 = vmul.f32 %v3551_v3, %v4792_v56 }
0x1ecc   : > { %3552 = vtanh.f32 %v2715_v7 }
0x1ecd   : > { %v2729_v35 = vadd.f32 %v2725_v63, %v2634_v62  ;;  %2756 = vmatpush.bf16.msrb.mxu2 %v2747_v28  ;;  %v2737_v59 = vadd.f32 %v2733_v36, %v4767_v54 }
0x1ecf   : > { %v2741_v11 = vpack.c.bf16 %v2737_v59, %v2737_v59 }
0x1ed0   : > { %3226 = vmatmul.msk.bf16.vlgmr.msrb.gmra.mxu2 %vm331_vm1, %v4567_v4 }
0x1ed1   : > { %v2765_v27 = vunpack.c.l.b16 %v2741_v11 }
0x1ed2   : > { %v3553_v38 = vpop.eup %3552 }
0x1ed3   : > { %v2726_v40 = vmul.f32 %v3553_v38, %v4817_v25  ;;  %v2734_v43 = vmul.f32 %v3553_v38, %v4792_v56 }
0x1ed5   : > { %v2730_v42 = vadd.f32 %v2726_v40, %v2635_v37  ;;  %v2738_v21 = vadd.f32 %v2734_v43, %v4775_v0 }
0x1ed7   : > { %v2742_v14 = vpack.c.bf16 %v2738_v21, %v2738_v21 }
0x1ed9   : > { %v2766_v41 = vunpack.c.l.b16 %v2742_v14 }
0x1edb   : > { %v2767_v55 = vpack.c.b16 %v2766_v41, %v2765_v27 }
0x1edd   : > { %2776 = vmatpush.bf16.msra.mxu0 %v2767_v55  ;;  %v3579_v55 = vld [vmem:[%s4924_s4] ss:$0 sm:$0xff] }
0x1ee0   : > { %3227 = vmatmul.msk.bf16.vlgmr.msra.gmra.mxu0 %vm331_vm1, %v4567_v4 }
0x1f53   : > { %v2758_v10 = vpop.f32.mrf.mxu2 }
0x1f5b   : > { %v2760_v17 = vpop.f32.mrf.mxu2 }
0x1f5c   : > { %v2783_v22 = vpack.c.bf16 %v2760_v17, %v2758_v10 }
0x1f5d   : > { %v2778_v19 = vpop.f32.mrf.mxu0 }
0x1f5e   : > { %3228 = vmatmul.msk.bf16.vlgmr.msra.gmra.mxu3 %vm310_vm0, %v2783_v22 }
0x1f65   : > { %v2780_v56 = vpop.f32.mrf.mxu0 }
0x1f66   : > { %v2784_v29 = vpack.c.bf16 %v2780_v56, %v2778_v19 }
0x1f6e   : > { %3229 = vmatmul.msk.bf16.gmra.mxu3 %vm310_vm0, %v2784_v29 }
0x1fe1   : > { %v2800_v8 = vpop.f32.mrf.mxu3 }
0x1fe2   : > { %v2801_v2 = vadd.f32 %v4589_v52, %v2800_v8 }
0x1fe4   : > { %3554 = vtanh.f32 %v2801_v2 }
0x1fe9   : > { %v2802_v12 = vpop.f32.mrf.mxu3 }
0x1fea   : > { %v3555_v23 = vpop.eup %3554  ;;  %v2803_v48 = vadd.f32 %v4589_v52, %v2802_v12 }
0x1feb   : > { %v2814_v47 = vmul.f32 %v3555_v23, %v4817_v25  ;;  %v2823_v31 = vmul.f32 %v3555_v23, %v2822_v5 }
0x1fec   : > { %3556 = vtanh.f32 %v2803_v48 }
0x1fed   : > { %v2818_v53 = vadd.f32 %v2814_v47, %v2727_v61  ;;  %v2827_v58 = vadd.f32 %v2823_v31, %v4749_v9 }
0x1fef   : > { %v2831_v57 = vpack.c.bf16 %v2827_v58, %v2827_v58 }
0x1ff1   : > { %v2805_v20 = vpop.f32.mrf.mxu3  ;;  %v2837_v1 = vunpack.c.l.b16 %v2831_v57 }
0x1ff2   : > { %v3557_v24 = vpop.eup %3556  ;;  %v2806_v32 = vadd.f32 %v4589_v52, %v2805_v20 }
0x1ff3   : > { %v2815_v18 = vmul.f32 %v3557_v24, %v4817_v25  ;;  %v2824_v60 = vmul.f32 %v3557_v24, %v2822_v5 }
0x1ff4   : > { %3558 = vtanh.f32 %v2806_v32 }
0x1ff5   : > { %v2819_v44 = vadd.f32 %v2815_v18, %v2728_v26  ;;  %v2828_v33 = vadd.f32 %v2824_v60, %v4756_v6 }
0x1ff7   : > { %v2832_v15 = vpack.c.bf16 %v2828_v33, %v2828_v33 }
0x1ff9   : > { %v2807_v51 = vpop.f32.mrf.mxu3  ;;  %v2838_v46 = vunpack.c.l.b16 %v2832_v15 }
0x1ffa   : > { %v3559_v61 = vpop.eup %3558  ;;  %v2808_v34 = vadd.f32 %v4589_v52, %v2807_v51 }
0x1ffb   : > { %v2816_v9 = vmul.f32 %v3559_v61, %v4817_v25  ;;  %v2839_v13 = vpack.c.b16 %v2838_v46, %v2837_v1  ;;  %v2825_v45 = vmul.f32 %v3559_v61, %v2822_v5 }
0x1ffc   : > { %3560 = vtanh.f32 %v2808_v34 }
0x1ffd   : > { %v2820_v30 = vadd.f32 %v2816_v9, %v2729_v35  ;;  %2848 = vmatpush.bf16.msra.mxu2 %v2839_v13  ;;  %v2829_v6 = vadd.f32 %v2825_v45, %v4767_v54  ;;  %v3578_v35 = vld [vmem:[#allocation7] sm:$0xff] }
0x1fff   : > { %v2833_v62 = vpack.c.bf16 %v2829_v6, %v2829_v6 }
0x2000   : > { %3230 = vmatmul.msk.bf16.vlgmr.msra.gmra.mxu2 %vm331_vm1, %v4567_v4 }
0x2001   : > { %v2857_v28 = vunpack.c.l.b16 %v2833_v62 }
0x2002   : > { %v3561_v26 = vpop.eup %3560 }
0x2003   : > { %v2817_v50 = vmul.f32 %v3561_v26, %v4817_v25  ;;  %v2826_v16 = vmul.f32 %v3561_v26, %v2822_v5 }
0x2005   : > { %v2821_v3 = vadd.f32 %v2817_v50, %v2730_v42  ;;  %v2830_v7 = vadd.f32 %v2826_v16, %v4775_v0 }
0x2007   : > { %v2834_v63 = vpack.c.bf16 %v2830_v7, %v2830_v7 }
0x2009   : > { %v2858_v36 = vunpack.c.l.b16 %v2834_v63 }
0x200b   : > { %v2859_v39 = vpack.c.b16 %v2858_v36, %v2857_v28 }
0x200d   : > { %2868 = vmatpush.bf16.msrb.mxu0 %v2859_v39 }
0x2010   : > { %3231 = vmatmul.msk.bf16.vlgmr.msrb.gmra.mxu0 %vm331_vm1, %v3578_v35 }
0x2083   : > { %v2850_v59 = vpop.f32.mrf.mxu2 }
0x208b   : > { %v2852_v4 = vpop.f32.mrf.mxu2 }
0x208c   : > { %v2875_v54 = vpack.c.bf16 %v2852_v4, %v2850_v59 }
0x208d   : > { %v2870_v25 = vpop.f32.mrf.mxu0 }
0x208e   : > { %3232 = vmatmul.msk.bf16.vlgmr.msrb.gmra.mxu1 %vm310_vm0, %v2875_v54 }
0x2095   : > { %v2872_v38 = vpop.f32.mrf.mxu0 }
0x2096   : > { %v2876_v37 = vpack.c.bf16 %v2872_v38, %v2870_v25 }
0x209e   : > { %3233 = vmatmul.msk.bf16.gmra.mxu1 %vm310_vm0, %v2876_v37 }
0x210b   : > { %v2892_v0 = vpop.f32.mrf.mxu1 }
0x210c   : > { %v2893_v40 = vadd.f32 %v4589_v52, %v2892_v0 }
0x210e   : > { %3562 = vtanh.f32 %v2893_v40 }
0x2113   : > { %v2894_v43 = vpop.f32.mrf.mxu1 }
0x2114   : > { %v3563_v42 = vpop.eup %3562  ;;  %v2895_v21 = vadd.f32 %v4589_v52, %v2894_v43 }
0x2115   : > { %v2906_v11 = vmul.f32 %v3563_v42, %v4813_v49 }
0x2116   : > { %3564 = vtanh.f32 %v2895_v21 }
0x2117   : > { %v2910_v14 = vadd.f32 %v2906_v11, %v2818_v53 }
0x2119   : > { %3234 = vst.msk [vmem:[%s3917_s24 + $0xe0] sm:$0xff] %vm310_vm0, %v2910_v14 }
0x211b   : > { %v2897_v27 = vpop.f32.mrf.mxu1 }
0x211c   : > { %v3565_v41 = vpop.eup %3564  ;;  %v2898_v10 = vadd.f32 %v3579_v55, %v2897_v27 }
0x211d   : > { %v2907_v17 = vmul.f32 %v3565_v41, %v4813_v49 }
0x211e   : > { %3566 = vtanh.f32 %v2898_v10 }
0x211f   : > { %v2911_v52 = vadd.f32 %v2907_v17, %v2819_v44 }
0x2121   : > { %3235 = vst.msk [vmem:[%s3917_s24 + $0xe8] sm:$0xff] %vm310_vm0, %v2911_v52 }
0x2123   : > { %v2899_v22 = vpop.f32.mrf.mxu1 }
0x2124   : > { %v3567_v19 = vpop.eup %3566  ;;  %v2900_v56 = vadd.f32 %v3579_v55, %v2899_v22 }
0x2125   : > { %v2908_v29 = vmul.f32 %v3567_v19, %v4813_v49 }
0x2126   : > { %3568 = vtanh.f32 %v2900_v56 }
0x2127   : > { %v2912_v8 = vadd.f32 %v2908_v29, %v2820_v30 }
0x2129   : > { %3236 = vst.msk [vmem:[%s3917_s24 + $0xf0] sm:$0xff] %vm310_vm0, %v2912_v8 }
0x212c   : > { %v3569_v2 = vpop.eup %3568 }
0x212d   : > { %v2909_v12 = vmul.f32 %v3569_v2, %v4813_v49 }
0x212f   : > { %v2913_v23 = vadd.f32 %v2909_v12, %v2821_v3 }
0x2131   : > { %3237 = vst.msk [vmem:[%s3917_s24 + $0xf8] sm:$0xff] %vm310_vm0, %v2913_v23 }
0x2132   : > { %s3250_s12 = sshll.u32 %s3798_s22, 5  ;;  %s2943_s23 = sshll.u32 %s3917_s24, 4  ;;  %s2944_s23 = int_to_ptr.vmem [resolvable:$true] %s2943_s23 }
0x2133   : > { %s2932_s29 = scalar_lea.hbm %s4925_s5, %s3250_s12  ;;  %s3740_s15 = smov 512  }
0x2134   : > { %s2945_s13 = sshll.u32 %s2932_s29, 4  ;;  %3265 = sst [smem:[#allocation12]] (%p3860_p7), %s3740_s15  ;;  %s2946_s13 = int_to_ptr.hbm [resolvable:$true] %s2945_s13 }
0x2135   : > { %s3741_s14 = smov 1024   ;;  %s3742_s16 = smov 4  }
0x2136   : > { %3266 = sst [smem:[#allocation12 + $0x1]] (%p3860_p7), %s3741_s14  ;;  %s3743_s22 = smov 128  }
0x2137   : > { %3267 = sst [smem:[#allocation12 + $0x2]] (%p3860_p7), %s3742_s16  ;;  %s3744_s24 = smov 8  }
0x2138   : > { %3268 = sst [smem:[#allocation12 + $0x3]] (%p3860_p7), %s3743_s22  ;;  %s3745_s17 = smov [#allocation11]  }
0x2139   : > { %3269 = sst [smem:[#allocation12 + $0x4]] (%p3860_p7), %s3743_s22  ;;  %s3746_s8 = smov 0  }
0x213a   : > { %3270 = sst [smem:[#allocation12 + $0x5]] (%p3860_p7), %s3744_s24 }
0x213b   : > { %3271 = dma.general (%p3860_p7), %s2944_s23, 4096, %s2946_s13, %s2920_s7, %s3745_s17, [#allocation12], %s3746_s8, 0  }
0x213c PF: > { %s2973_s9 = sand.u32 1, %s3719_s18   ;;  %p4932_p1 = scmp.ge.s32.totalorder %s3731_s21, 2 }
0x213d   : > { %s2974_s10 = scalar_lea.sflag [#allocation4], %s2973_s9 }
0x213e   : > { %p3288_p4 = pnand %p4932_p1, %p3812_p6 }
0x2140   : > { %p3289_p8 = pneg %p3288_p4 }
0x2142   : > { %3714 = dma.done.wait (%p3289_p8), %s2974_s10, 4096  }
0x2143   : > { %3716 = vsyncadd (%p3289_p8), %s2974_s10, 4294963200  ;;  %p20_p11 = scmp.ge.s32.totalorder %s3846_s26, 4   ;;  %s4933_s18 = smov %s3723_s19 }
0x2144   : > { %s4934_s19 = smov %s3727_s20  ;;  %s4935_s20 = smov %s3856_s30 }
0x2145   : > { %s4936_s21 = smov %s3846_s26  ;;  %22 = sbr.rel (!%p20_p11) target bundleno = 7 (0x7), region = 110 }
0x214a   :  { %2980 = vsyncpa [#allocation3], 1 }
0x214b   :  { %2982 = vsyncpa [#allocation3 + $0x1], 1 }
0x214c   :  { %2983 = vsyncpa [#allocation8], 1 }
0x214d   :  { %2984 = vsyncpa [#allocation4], 1 }
0x214e   :  { %2986 = vsyncpa [#allocation4 + $0x1], 1 }
0x214f   :  { %2987 = vsyncpa [#allocation5], 1 }
0x2150   :  { %2989 = vsyncpa [#allocation5 + $0x1], 1 }

</bundles_post_ra>
